<compile_context>
chip_gen: v5e
topology: v5e:2x2
jax: 0.10.0
libtpu: 0.0.40
codegen_flags: <defaults>
</compile_context>

<pallas_src>
import functools

import jax
import jax.numpy as jnp
from jax.experimental import pallas as pl
from jax.experimental.pallas import tpu as pltpu


def _round_up(x, m):
    return ((x + m - 1) // m) * m


# ----------------------------- Pallas kernel ------------------------------ #

def _make_kernel(k, s, TH, OWp, C1, TC2):
    """Folded-tap conv + folded BN + SiLU for one (batch, row-tile, C2-tile)."""
    KKC1 = k * k * C1
    M = TH * OWp

    def kernel(x_ref, w_ref, shift_ref, o_ref, lhs_ref):
        # x_ref:     (1, Hp, Wp, C1)    bf16  padded NHWC image (one batch elem)
        # w_ref:     (k*k*C1, C2p)      bf16  BN-scale-folded weights, full slab
        # shift_ref: (1, C2p)           f32   folded BN shift
        # o_ref:     (1, TH, OWp, TC2)  bf16  output tile
        # lhs_ref:   (M, k*k*C1)        bf16  VMEM scratch: im2col patch
        r = pl.program_id(1)
        j = pl.program_id(2)
        row0 = pl.multiple_of(r * (TH * s), TH * s)

        # Build the im2col patch once per (n, r); the scratch persists across
        # grid steps, so every C2-tile j > 0 reuses it.
        @pl.when(j == 0)
        def _build_patch():
            for ki in range(k):                    # k*k static taps, unrolled
                for kj in range(k):
                    if s == 1:
                        win = x_ref[0, pl.ds(row0 + ki, TH), pl.ds(kj, OWp), :]
                    else:
                        win = x_ref[0, pl.ds(row0 + ki, TH, s),
                                    pl.ds(kj, OWp, s), :]
                    tap = ki * k + kj
                    # (TH, OWp, C1) -> (TH*OWp, C1): OWp % 16 == 0, so the
                    # sublane merge is tile-aligned (no relayout copy).
                    lhs_ref[:, pl.ds(tap * C1, C1)] = win.reshape(M, C1)

        jj = pl.multiple_of(j * TC2, TC2)
        # Single MXU matmul with the taps folded into the contraction
        # (K = k*k*C1), f32 accumulation.
        acc = jnp.dot(lhs_ref[...], w_ref[:, pl.ds(jj, TC2)],
                      preferred_element_type=jnp.float32)
        y = acc + shift_ref[:, pl.ds(jj, TC2)]     # BN shift (scale is in w)
        y = y * jax.nn.sigmoid(y)                  # SiLU, f32
        o_ref[0] = y.reshape(TH, OWp, TC2).astype(o_ref.dtype)

    return kernel


# ------------------------------- wrapper ----------------------------------- #

@functools.partial(jax.jit, static_argnames=("k", "s"))
def conv_bn_silu(x, weight, gamma, beta, running_mean, running_var,
                 *, k, s, eps=1e-5):
    """Forward of the PyTorch Conv module (eval-mode BN). x NCHW, returns NCHW bf16."""
    N, C1, H, W = x.shape
    C2 = weight.shape[0]
    p = k // 2                                    # autopad
    OH = (H + 2 * p - k) // s + 1
    OW = (W + 2 * p - k) // s + 1

    LANE = 128
    C2p = _round_up(C2, LANE)
    TC2 = 256 if C2p % 256 == 0 else 128          # fill 256-wide MXU on v6e/v7x

    # Output-column tile padded to a multiple of 16 so in-kernel reshapes are
    # always (sublane, lane) tile-aligned; extra columns are dropped afterwards.
    OWp = _round_up(OW, 16)
    # Row tile: keep the per-step f32 result block at <= ~(512, TC2).
    TH = max(1, min(OH, 512 // OWp))
    R = -(-OH // TH)                              # cdiv
    OHp = R * TH

    # Spatial padding: conv autopad + extra right/bottom so the padded-out
    # OHp/OWp windows stay in bounds (their outputs are dropped afterwards).
    need_h = (OHp - 1) * s + k
    need_w = (OWp - 1) * s + k
    pad_h_hi = p + max(0, need_h - (H + 2 * p))
    pad_w_hi = p + max(0, need_w - (W + 2 * p))
    Hp = H + p + pad_h_hi
    Wp = W + p + pad_w_hi

    # Input glue: one bf16 NHWC transpose+pad pass (half the bytes of f32).
    # TODO(synk): keeping activations NHWC bf16 between layers would remove
    # this per-layer NCHW<->NHWC pass entirely.
    x_nhwc = jnp.transpose(x.astype(jnp.bfloat16), (0, 2, 3, 1))
    x_pad = jnp.pad(x_nhwc, ((0, 0), (p, pad_h_hi), (p, pad_w_hi), (0, 0)))

    # Fold BatchNorm (eval mode): scale into the f32 weights, shift stays.
    scale = gamma / jnp.sqrt(running_var + eps)
    shift = (beta - running_mean * scale).astype(jnp.float32)
    w_f32 = weight.astype(jnp.float32) * scale[:, None, None, None]
    # (C2, C1, k, k) -> (ki, kj, C1, C2) -> (k*k*C1, C2p): taps folded into K.
    w_flat = jnp.transpose(w_f32, (2, 3, 1, 0)).reshape(k * k * C1, C2)
    w_flat = jnp.pad(w_flat, ((0, 0), (0, C2p - C2))).astype(jnp.bfloat16)
    shift_p = jnp.pad(shift, (0, C2p - C2)).reshape(1, C2p)

    KKC1 = k * k * C1
    M = TH * OWp
    kernel = _make_kernel(k, s, TH, OWp, C1, TC2)

    cost = pl.CostEstimate(
        flops=2 * N * OHp * OWp * KKC1 * C2p,
        transcendentals=N * OHp * OWp * C2p,
        bytes_accessed=(x_pad.size * 2 + w_flat.size * 2 + shift_p.size * 4
                        + N * OHp * OWp * C2p * 2))

    # VMEM budget including (16, 128) tile padding of every block (the
    # small-C1 image slab is lane-padded to 128).  Capped at 48 MiB so the
    # same budget remains valid on v7x (64 MiB physical VMEM).
    x_blk = Hp * _round_up(Wp, 16) * _round_up(C1, LANE) * 2
    w_blk = _round_up(KKC1, 16) * C2p * 2
    sh_blk = 8 * C2p * 4
    o_blk = TH * OWp * TC2 * 2
    lhs_blk = M * _round_up(KKC1, LANE) * 2
    epi_tmp = 3 * M * TC2 * 4                     # f32 epilogue temporaries
    vmem_needed = 2 * (x_blk + w_blk + sh_blk + o_blk) + lhs_blk + epi_tmp
    vmem_limit = int(min(48 << 20, max(16 << 20, vmem_needed + (4 << 20))))

    out = pl.pallas_call(
        kernel,
        out_shape=jax.ShapeDtypeStruct((N, OHp, OWp, C2p), jnp.bfloat16),
        grid_spec=pltpu.PrefetchScalarGridSpec(
            num_scalar_prefetch=0,
            grid=(N, R, C2p // TC2),
            in_specs=[
                # Full padded image per batch element: its block index only
                # changes with n, so it is DMA'd once per n (not per r / j).
                pl.BlockSpec((1, Hp, Wp, C1), lambda n, r, j: (n, 0, 0, 0)),
                # Full weight slab / BN shift resident for the whole call.
                pl.BlockSpec((KKC1, C2p), lambda n, r, j: (0, 0)),
                pl.BlockSpec((1, C2p), lambda n, r, j: (0, 0)),
            ],
            out_specs=pl.BlockSpec((1, TH, OWp, TC2),
                                   lambda n, r, j: (n, r, 0, j)),
            scratch_shapes=[pltpu.VMEM((M, KKC1), jnp.bfloat16)],
        ),
        compiler_params=pltpu.CompilerParams(
            # j carries a dependency through the im2col scratch -> "arbitrary".
            dimension_semantics=("parallel", "parallel", "arbitrary"),
            vmem_limit_bytes=vmem_limit),
        cost_estimate=cost,
    )(x_pad, w_flat, shift_p)

    out = out[:, :OH, :OW, :C2]                   # drop spatial/channel padding
    return jnp.transpose(out, (0, 3, 1, 2))       # NHWC -> NCHW (bf16)


# ----------------------------- reference path ------------------------------ #

def _reference(x, weight, gamma, beta, running_mean, running_var, *, k, s,
               eps=1e-5):
    p = k // 2
    y = jax.lax.conv_general_dilated(
        x.astype(jnp.float32), weight.astype(jnp.float32),
        window_strides=(s, s), padding=[(p, p), (p, p)],
        dimension_numbers=("NCHW", "OIHW", "NCHW"))
    scale = (gamma / jnp.sqrt(running_var + eps))[None, :, None, None]
    shift = (beta - running_mean * gamma / jnp.sqrt(running_var + eps))[
        None, :, None, None]
    y = y * scale + shift
    return y * jax.nn.sigmoid(y)


# ---------------------------------- main ----------------------------------- #

if __name__ == "__main__":
    key = jax.random.PRNGKey(0)
    kx, kw, kg, kb, km, kv = jax.random.split(key, 6)

    N, C1, H, W = 2, 4, 16, 16
    C2, K, S = 8, 3, 1

    x = jax.random.normal(kx, (N, C1, H, W), dtype=jnp.float32)
    weight = 0.1 * jax.random.normal(kw, (C2, C1, K, K), dtype=jnp.float32)
    gamma = 1.0 + 0.1 * jax.random.normal(kg, (C2,), dtype=jnp.float32)
    beta = 0.1 * jax.random.normal(kb, (C2,), dtype=jnp.float32)
    running_mean = 0.1 * jax.random.normal(km, (C2,), dtype=jnp.float32)
    running_var = jnp.abs(1.0 + 0.1 * jax.random.normal(kv, (C2,),
                                                        dtype=jnp.float32))

    out = conv_bn_silu(x, weight, gamma, beta, running_mean, running_var,
                       k=K, s=S)
    out = jax.block_until_ready(out)

    ref = _reference(x, weight, gamma, beta, running_mean, running_var,
                     k=K, s=S)
    assert out.shape == (N, C2, H, W)
    # bf16 MXU operands + bf16 output store (f32 accumulate / epilogue) =>
    # slightly looser tolerance vs the pure-f32 reference.
    assert jnp.allclose(out.astype(jnp.float32), ref, rtol=2e-2, atol=2e-2), \
        float(jnp.max(jnp.abs(out.astype(jnp.float32) - ref)))

    print("KERNEL_OK")
</pallas_src>

<mosaic_0001>
module attributes {stable_mosaic.version = 11 : i64} {
  func.func @kernel(%arg0: i32, %arg1: i32, %arg2: i32, %arg3: memref<1x18x18x4xbf16, #tpu.memory_space<vmem>>, %arg4: memref<36x128xbf16, #tpu.memory_space<vmem>>, %arg5: memref<1x128xf32, #tpu.memory_space<vmem>>, %arg6: memref<1x16x16x128xbf16, #tpu.memory_space<vmem>>, %arg7: memref<256x36xbf16, #tpu.memory_space<vmem>>) attributes {dimension_semantics = [#tpu.dimension_semantics<parallel>, #tpu.dimension_semantics<parallel>, #tpu.dimension_semantics<arbitrary>], iteration_bounds = array<i64: 2, 1, 1>, scalar_prefetch = 0 : i64, scratch_operands = 1 : i64, tpu.core_type = #tpu.core_type<tc>, window_params = [{transform_indices = @transform_0, window_bounds = array<i64: 1, 18, 18, 4>}, {pipeline_mode = #tpu.pipeline_mode<synchronous>, transform_indices = @transform_1, window_bounds = array<i64: 36, 128>}, {pipeline_mode = #tpu.pipeline_mode<synchronous>, transform_indices = @transform_2, window_bounds = array<i64: 1, 128>}, {transform_indices = @transform_3, window_bounds = array<i64: 1, 16, 16, 128>}]} {
    %c16_i32 = arith.constant 16 : i32
    %0 = arith.muli %arg1, %c16_i32 : i32
    %1 = tpu.assume_multiple %0, 16 : i32
    %c0_i32 = arith.constant 0 : i32
    %2 = arith.cmpi eq, %arg2, %c0_i32 : i32
    %3 = arith.extui %2 : i1 to i32
    %c0_i32_0 = arith.constant 0 : i32
    %4 = arith.cmpi ne, %3, %c0_i32_0 : i32
    scf.if %4 {
      %c0_i32_9 = arith.constant 0 : i32
      %26 = arith.addi %1, %c0_i32_9 : i32
      %c0_10 = arith.constant 0 : index
      %27 = arith.index_cast %26 : i32 to index
      %c0_11 = arith.constant 0 : index
      %c0_12 = arith.constant 0 : index
      %28 = vector.load %arg3[%c0_10, %27, %c0_11, %c0_12] : memref<1x18x18x4xbf16, #tpu.memory_space<vmem>>, vector<1x16x16x4xbf16>
      %29 = vector.shape_cast %28 : vector<1x16x16x4xbf16> to vector<16x16x4xbf16>
      %30 = vector.shape_cast %29 : vector<16x16x4xbf16> to vector<256x4xbf16>
      %c0_13 = arith.constant 0 : index
      %c0_14 = arith.constant 0 : index
      %31 = vector.load %arg7[%c0_13, %c0_14] : memref<256x36xbf16, #tpu.memory_space<vmem>>, vector<256x4xbf16>
      tpu.vector_store %arg7[%c0_13, %c0_14], %30 {strides = array<i32>} : memref<256x36xbf16, #tpu.memory_space<vmem>>, vector<256x4xbf16>,
      %c0_i32_15 = arith.constant 0 : i32
      %32 = arith.addi %1, %c0_i32_15 : i32
      %c0_16 = arith.constant 0 : index
      %33 = arith.index_cast %32 : i32 to index
      %c1 = arith.constant 1 : index
      %c0_17 = arith.constant 0 : index
      %34 = vector.load %arg3[%c0_16, %33, %c1, %c0_17] : memref<1x18x18x4xbf16, #tpu.memory_space<vmem>>, vector<1x16x16x4xbf16>
      %35 = vector.shape_cast %34 : vector<1x16x16x4xbf16> to vector<16x16x4xbf16>
      %36 = vector.shape_cast %35 : vector<16x16x4xbf16> to vector<256x4xbf16>
      %c0_18 = arith.constant 0 : index
      %c4 = arith.constant 4 : index
      %37 = vector.load %arg7[%c0_18, %c4] : memref<256x36xbf16, #tpu.memory_space<vmem>>, vector<256x4xbf16>
      tpu.vector_store %arg7[%c0_18, %c4], %36 {strides = array<i32>} : memref<256x36xbf16, #tpu.memory_space<vmem>>, vector<256x4xbf16>,
      %c0_i32_19 = arith.constant 0 : i32
      %38 = arith.addi %1, %c0_i32_19 : i32
      %c0_20 = arith.constant 0 : index
      %39 = arith.index_cast %38 : i32 to index
      %c2 = arith.constant 2 : index
      %c0_21 = arith.constant 0 : index
      %40 = vector.load %arg3[%c0_20, %39, %c2, %c0_21] : memref<1x18x18x4xbf16, #tpu.memory_space<vmem>>, vector<1x16x16x4xbf16>
      %41 = vector.shape_cast %40 : vector<1x16x16x4xbf16> to vector<16x16x4xbf16>
      %42 = vector.shape_cast %41 : vector<16x16x4xbf16> to vector<256x4xbf16>
      %c0_22 = arith.constant 0 : index
      %c8 = arith.constant 8 : index
      %43 = vector.load %arg7[%c0_22, %c8] : memref<256x36xbf16, #tpu.memory_space<vmem>>, vector<256x4xbf16>
      tpu.vector_store %arg7[%c0_22, %c8], %42 {strides = array<i32>} : memref<256x36xbf16, #tpu.memory_space<vmem>>, vector<256x4xbf16>,
      %c1_i32 = arith.constant 1 : i32
      %44 = arith.addi %1, %c1_i32 : i32
      %c0_23 = arith.constant 0 : index
      %45 = arith.index_cast %44 : i32 to index
      %c0_24 = arith.constant 0 : index
      %c0_25 = arith.constant 0 : index
      %46 = vector.load %arg3[%c0_23, %45, %c0_24, %c0_25] : memref<1x18x18x4xbf16, #tpu.memory_space<vmem>>, vector<1x16x16x4xbf16>
      %47 = vector.shape_cast %46 : vector<1x16x16x4xbf16> to vector<16x16x4xbf16>
      %48 = vector.shape_cast %47 : vector<16x16x4xbf16> to vector<256x4xbf16>
      %c0_26 = arith.constant 0 : index
      %c12 = arith.constant 12 : index
      %49 = vector.load %arg7[%c0_26, %c12] : memref<256x36xbf16, #tpu.memory_space<vmem>>, vector<256x4xbf16>
      tpu.vector_store %arg7[%c0_26, %c12], %48 {strides = array<i32>} : memref<256x36xbf16, #tpu.memory_space<vmem>>, vector<256x4xbf16>,
      %c1_i32_27 = arith.constant 1 : i32
      %50 = arith.addi %1, %c1_i32_27 : i32
      %c0_28 = arith.constant 0 : index
      %51 = arith.index_cast %50 : i32 to index
      %c1_29 = arith.constant 1 : index
      %c0_30 = arith.constant 0 : index
      %52 = vector.load %arg3[%c0_28, %51, %c1_29, %c0_30] : memref<1x18x18x4xbf16, #tpu.memory_space<vmem>>, vector<1x16x16x4xbf16>
      %53 = vector.shape_cast %52 : vector<1x16x16x4xbf16> to vector<16x16x4xbf16>
      %54 = vector.shape_cast %53 : vector<16x16x4xbf16> to vector<256x4xbf16>
      %c0_31 = arith.constant 0 : index
      %c16 = arith.constant 16 : index
      %55 = vector.load %arg7[%c0_31, %c16] : memref<256x36xbf16, #tpu.memory_space<vmem>>, vector<256x4xbf16>
      tpu.vector_store %arg7[%c0_31, %c16], %54 {strides = array<i32>} : memref<256x36xbf16, #tpu.memory_space<vmem>>, vector<256x4xbf16>,
      %c1_i32_32 = arith.constant 1 : i32
      %56 = arith.addi %1, %c1_i32_32 : i32
      %c0_33 = arith.constant 0 : index
      %57 = arith.index_cast %56 : i32 to index
      %c2_34 = arith.constant 2 : index
      %c0_35 = arith.constant 0 : index
      %58 = vector.load %arg3[%c0_33, %57, %c2_34, %c0_35] : memref<1x18x18x4xbf16, #tpu.memory_space<vmem>>, vector<1x16x16x4xbf16>
      %59 = vector.shape_cast %58 : vector<1x16x16x4xbf16> to vector<16x16x4xbf16>
      %60 = vector.shape_cast %59 : vector<16x16x4xbf16> to vector<256x4xbf16>
      %c0_36 = arith.constant 0 : index
      %c20 = arith.constant 20 : index
      %61 = vector.load %arg7[%c0_36, %c20] : memref<256x36xbf16, #tpu.memory_space<vmem>>, vector<256x4xbf16>
      tpu.vector_store %arg7[%c0_36, %c20], %60 {strides = array<i32>} : memref<256x36xbf16, #tpu.memory_space<vmem>>, vector<256x4xbf16>,
      %c2_i32 = arith.constant 2 : i32
      %62 = arith.addi %1, %c2_i32 : i32
      %c0_37 = arith.constant 0 : index
      %63 = arith.index_cast %62 : i32 to index
      %c0_38 = arith.constant 0 : index
      %c0_39 = arith.constant 0 : index
      %64 = vector.load %arg3[%c0_37, %63, %c0_38, %c0_39] : memref<1x18x18x4xbf16, #tpu.memory_space<vmem>>, vector<1x16x16x4xbf16>
      %65 = vector.shape_cast %64 : vector<1x16x16x4xbf16> to vector<16x16x4xbf16>
      %66 = vector.shape_cast %65 : vector<16x16x4xbf16> to vector<256x4xbf16>
      %c0_40 = arith.constant 0 : index
      %c24 = arith.constant 24 : index
      %67 = vector.load %arg7[%c0_40, %c24] : memref<256x36xbf16, #tpu.memory_space<vmem>>, vector<256x4xbf16>
      tpu.vector_store %arg7[%c0_40, %c24], %66 {strides = array<i32>} : memref<256x36xbf16, #tpu.memory_space<vmem>>, vector<256x4xbf16>,
      %c2_i32_41 = arith.constant 2 : i32
      %68 = arith.addi %1, %c2_i32_41 : i32
      %c0_42 = arith.constant 0 : index
      %69 = arith.index_cast %68 : i32 to index
      %c1_43 = arith.constant 1 : index
      %c0_44 = arith.constant 0 : index
      %70 = vector.load %arg3[%c0_42, %69, %c1_43, %c0_44] : memref<1x18x18x4xbf16, #tpu.memory_space<vmem>>, vector<1x16x16x4xbf16>
      %71 = vector.shape_cast %70 : vector<1x16x16x4xbf16> to vector<16x16x4xbf16>
      %72 = vector.shape_cast %71 : vector<16x16x4xbf16> to vector<256x4xbf16>
      %c0_45 = arith.constant 0 : index
      %c28 = arith.constant 28 : index
      %73 = vector.load %arg7[%c0_45, %c28] : memref<256x36xbf16, #tpu.memory_space<vmem>>, vector<256x4xbf16>
      tpu.vector_store %arg7[%c0_45, %c28], %72 {strides = array<i32>} : memref<256x36xbf16, #tpu.memory_space<vmem>>, vector<256x4xbf16>,
      %c2_i32_46 = arith.constant 2 : i32
      %74 = arith.addi %1, %c2_i32_46 : i32
      %c0_47 = arith.constant 0 : index
      %75 = arith.index_cast %74 : i32 to index
      %c2_48 = arith.constant 2 : index
      %c0_49 = arith.constant 0 : index
      %76 = vector.load %arg3[%c0_47, %75, %c2_48, %c0_49] : memref<1x18x18x4xbf16, #tpu.memory_space<vmem>>, vector<1x16x16x4xbf16>
      %77 = vector.shape_cast %76 : vector<1x16x16x4xbf16> to vector<16x16x4xbf16>
      %78 = vector.shape_cast %77 : vector<16x16x4xbf16> to vector<256x4xbf16>
      %c0_50 = arith.constant 0 : index
      %c32 = arith.constant 32 : index
      %79 = vector.load %arg7[%c0_50, %c32] : memref<256x36xbf16, #tpu.memory_space<vmem>>, vector<256x4xbf16>
      tpu.vector_store %arg7[%c0_50, %c32], %78 {strides = array<i32>} : memref<256x36xbf16, #tpu.memory_space<vmem>>, vector<256x4xbf16>,
    } else {
    }
    %c128_i32 = arith.constant 128 : i32
    %5 = arith.muli %arg2, %c128_i32 : i32
    %6 = tpu.assume_multiple %5, 128 : i32
    %c0 = arith.constant 0 : index
    %c0_1 = arith.constant 0 : index
    %7 = vector.load %arg7[%c0, %c0_1] : memref<256x36xbf16, #tpu.memory_space<vmem>>, vector<256x36xbf16>
    %c0_2 = arith.constant 0 : index
    %8 = arith.index_cast %6 : i32 to index
    %9 = vector.load %arg4[%c0_2, %8] : memref<36x128xbf16, #tpu.memory_space<vmem>>, vector<36x128xbf16>
    %cst = arith.constant dense<0.000000e+00> : vector<256x128xf32>
    %10 = tpu.matmul %7, %9, %cst {dimension_numbers = #tpu.dot_dimension_numbers<[1], [0], [0], [1], [0, 0, 1, 1], [], []>} : vector<256x36xbf16>, vector<36x128xbf16>, vector<256x128xf32> -> vector<256x128xf32>
    %c0_3 = arith.constant 0 : index
    %11 = arith.index_cast %6 : i32 to index
    %12 = vector.load %arg5[%c0_3, %11] : memref<1x128xf32, #tpu.memory_space<vmem>>, vector<1x128xf32>
    %13 = vector.broadcast %12 : vector<1x128xf32> to vector<256x128xf32>
    %14 = arith.addf %10, %13 : vector<256x128xf32>
    %15 = arith.negf %14 : vector<256x128xf32>
    %16 = math.exp %15 : vector<256x128xf32>
    %cst_4 = arith.constant 1.000000e+00 : f32
    %17 = vector.broadcast %cst_4 : f32 to vector<256x128xf32>
    %18 = arith.addf %17, %16 : vector<256x128xf32>
    %19 = arith.divf %17, %18 : vector<256x128xf32>
    %20 = arith.mulf %14, %19 : vector<256x128xf32>
    %21 = vector.shape_cast %20 : vector<256x128xf32> to vector<16x16x128xf32>
    %22 = arith.truncf %21 : vector<16x16x128xf32> to vector<16x16x128xbf16>
    %c0_5 = arith.constant 0 : index
    %c0_6 = arith.constant 0 : index
    %c0_7 = arith.constant 0 : index
    %c0_8 = arith.constant 0 : index
    %23 = vector.load %arg6[%c0_5, %c0_6, %c0_7, %c0_8] : memref<1x16x16x128xbf16, #tpu.memory_space<vmem>>, vector<1x16x16x128xbf16>
    %24 = vector.shape_cast %23 : vector<1x16x16x128xbf16> to vector<16x16x128xbf16>
    %25 = vector.shape_cast %22 : vector<16x16x128xbf16> to vector<1x16x16x128xbf16>
    tpu.vector_store %arg6[%c0_5, %c0_6, %c0_7, %c0_8], %25 {strides = array<i32>} : memref<1x16x16x128xbf16, #tpu.memory_space<vmem>>, vector<1x16x16x128xbf16>,
    return
  }
  func.func @transform_0(%arg0: i32, %arg1: i32, %arg2: i32) -> (i32, i32, i32, i32) {
    %c0_i32 = arith.constant 0 : i32
    %c0_i32_0 = arith.constant 0 : i32
    %c0_i32_1 = arith.constant 0 : i32
    %c0_i32_2 = arith.constant 0 : i32
    return %arg0, %c0_i32, %c0_i32_0, %c0_i32_1 : i32, i32, i32, i32
  }
  func.func @transform_1(%arg0: i32, %arg1: i32, %arg2: i32) -> (i32, i32) {
    %c0_i32 = arith.constant 0 : i32
    %c0_i32_0 = arith.constant 0 : i32
    %c0_i32_1 = arith.constant 0 : i32
    return %c0_i32, %c0_i32_0 : i32, i32
  }
  func.func @transform_2(%arg0: i32, %arg1: i32, %arg2: i32) -> (i32, i32) {
    %c0_i32 = arith.constant 0 : i32
    %c0_i32_0 = arith.constant 0 : i32
    %c0_i32_1 = arith.constant 0 : i32
    return %c0_i32, %c0_i32_0 : i32, i32
  }
  func.func @transform_3(%arg0: i32, %arg1: i32, %arg2: i32) -> (i32, i32, i32, i32) {
    %c0_i32 = arith.constant 0 : i32
    %c0_i32_0 = arith.constant 0 : i32
    return %arg0, %arg1, %c0_i32, %arg2 : i32, i32, i32, i32
  }
}

</mosaic_0001>

<bundles_post_ra>
// kernel: conv_bn_silu.1
= control target key start
LH: loop header
LB: loop body
LE: loop exit
PB: predicated region body
PF: predicated region fallthrough
CT: control target
= control target key end

     0   :  { %s5252_s12 = smov 0   ;;  %s5254_s13 = smov 0   ;;  %s7172_s0 = inlined_call_operand.vmem [shape: bf16[2,18,18,4], index: 0, kind: input, shape index: {}]   ;;  %s7173_s1 = inlined_call_operand.vmem [shape: bf16[36,128], index: 1, kind: input, shape index: {}]   ;;  %s7174_s2 = inlined_call_operand.vmem [shape: f32[1,128], index: 2, kind: input, shape index: {}]   ;;  %s7175_s3 = inlined_call_operand.vmem [shape: bf16[2,16,16,128], index: 3, kind: output, shape index: {}]  }
   0x1   :  { %s5256_s14 = smov 0  }
   0x2 LB: > { %s32_s15 = sadd.s32 1, %s5218_s13  ;;  %p4484_p0 = scmp.ge.s32.totalorder %s5222_s14, 1  ;;  %s5222_s14 = sphi %s5256_s14, %s13_s14   ;;  %s5218_s13 = sphi %s5254_s13, %s7211_s13   ;;  %s5214_s12 = sphi %s5252_s12, %s7210_s12  }
   0x3   : > { %p34_p1 = scmp.ge.s32.totalorder %s32_s15, 2  ;;  %p160_p2 = scmp.lt.s32.totalorder %s5222_s14, 3 }
   0x5   : > { %s7213_s15 = smov (%p34_p1, %s32_s15), 0  ;;  %p161_p3 = pnand %p4484_p0, %p160_p2 }
   0x6   : > { %p192_p4 = scmp.lt.s32.totalorder (!%p161_p3), %s5214_s12, 1  ;;  %s5224_s20 = smov (!%p161_p3), 4  }
   0x7   : > { %164 = sbr.rel (%p161_p3) target bundleno = 999 (0x3e7), region = 32  ;;  %s5225_s21 = smov (!%p161_p3), 8  }
   0x8   : > { %s5226_s22 = smov (!%p161_p3), 12   ;;  %s5227_s23 = smov (!%p161_p3), 16  }
   0x9   : > { %s5228_s24 = smov (!%p161_p3), 20   ;;  %s5229_s25 = smov (!%p161_p3), 24  }
   0xa   : > { %s5230_s26 = smov (!%p161_p3), 28   ;;  %s5231_s27 = smov (!%p161_p3), 32  }
   0xc   : > { %s7215_s12 = smov (!%p192_p4, %s5214_s12), 1  ;;  %vm333_vm0 = vsmask.f32 3328  ;;  %vm334_vm1 = vsmask.f32 7440  ;;  %vm945_vm3 = vcmask 1042432  }
   0xd   : > { %s5037_s16 = smul.u32 216, %s7215_s12  ;;  %vm5287_vm2 = vmor %vm333_vm0, %vm334_vm1  ;;  %vm946_vm4 = vcmask 1046532   ;;  %vm252_vm5 = vcmask 27648   ;;  %vm816_vm7 = vcmask 60448   ;;  %vm1156_vm8 = vcmask 93248   ;;  %s4914_s9 = sshll.u32 %s7215_s12, 7 }
   0xe   : > { %vm5462_vm6 = vmor %vm945_vm3, %vm946_vm4  ;;  %vm1353_vm9 = vcmask 126048   ;;  %vm1914_vm10 = vcmask 158848   ;;  %vm2251_vm11 = vcmask 191648   ;;  %vm2448_vm12 = vcmask 224448   ;;  %s6810_s12 = scalar_lea.vmem %s7175_s3, %s4914_s9 }
   0xf   : > { %s5276_s19 = scalar_lea.vmem %s7172_s0, %s5037_s16  ;;  %vm3570_vm13 = vcmask 1041408   ;;  %vm3009_vm14 = vcmask 257248   ;;  %vm3346_vm15 = vcmask 290048   ;;  %vm3521_vm0 = vcmask 293888  }
  0x10   : > { %v288_v0 = vld [vmem:[%s5276_s19 + $0xc] sm:$0xf]  ;;  %v289_v1 = vld [vmem:[%s5276_s19 + $0x10] sm:$0xf]  ;;  %v285_v2 = vld [vmem:[%s5276_s19] sm:$0xf] }
  0x11   : > { %v361_v3 = vshrl.u32 %v288_v0, 16  ;;  %v364_v4 = vshll.u32 %v288_v0, 16  ;;  %v370_v5 = vshll.u32 %v289_v1, 16  ;;  %v374_v6 = vshrl.u32 %v289_v1, 16  ;;  %v286_v7 = vld [vmem:[%s5276_s19 + $0x4] sm:$0xf] }
  0x12   : > { %v337_v8 = vshrl.u32 %v285_v2, 16  ;;  %v340_v9 = vshll.u32 %v285_v2, 16  ;;  %v346_v10 = vshll.u32 %v286_v7, 16  ;;  %v350_v11 = vshrl.u32 %v286_v7, 16  ;;  %v290_v12 = vld [vmem:[%s5276_s19 + $0x14] sm:$0x1] }
  0x13   : > { %v363_v13 = vrot.slane %v361_v3, 4  ;;  %v366_v14 = vrot.slane %v364_v4, 5  ;;  %v372_v15 = vrot.slane %v370_v5, 5  ;;  %v376_v16 = vrot.slane %v374_v6, 4  ;;  %v287_v17 = vld [vmem:[%s5276_s19 + $0x8] sm:$0x1] }
  0x14   : > { %v339_v18 = vrot.slane %v337_v8, 4  ;;  %v342_v19 = vrot.slane %v340_v9, 5  ;;  %v352_v20 = vrot.slane %v350_v11, 4  ;;  %v295_v21 = vld [vmem:[%s5276_s19 + $0x28] sm:$0xf]  ;;  %v380_v24 = vshll.u32 %v290_v12, 16 }
  0x15   : > { %v367_v22 = vor.u32 %v366_v14, %v363_v13  ;;  %v377_v23 = vor.u32 %v376_v16, %v372_v15  ;;  %v348_v27 = vrot.slane %v346_v10, 5  ;;  %v418_v28 = vshll.u32 %v295_v21, 16  ;;  %v294_v30 = vld [vmem:[%s5276_s19 + $0x24] sm:$0xf]  ;;  %v291_v35 = vld [vmem:[%s5276_s19 + $0x18] sm:$0xf] }
  0x16   : > { %v343_v26 = vor.u32 %v342_v19, %v339_v18  ;;  %v422_v29 = vshrl.u32 %v295_v21, 16  ;;  %v356_v32 = vshll.u32 %v287_v17, 16  ;;  %v382_v38 = vrot.slane %v380_v24, 5  ;;  %v292_v40 = vld [vmem:[%s5276_s19 + $0x1c] sm:$0xf] }
  0x17   : > { %v368_v31 = vrot.slane %v367_v22, 4  ;;  %v353_v34 = vor.u32 %v352_v20, %v348_v27  ;;  %v378_v37 = vrot.slane %v377_v23, 4  ;;  %v409_v39 = vshrl.u32 %v294_v30, 16  ;;  %v296_v42 = vld [vmem:[%s5276_s19 + $0x2c] sm:$0x1] }
  0x18   : > { %v344_v33 = vrot.slane %v343_v26, 4  ;;  %v5300_v43 = vrot.slane %v418_v28, 5  ;;  %v424_v44 = vrot.slane %v422_v29, 4  ;;  %v412_v45 = vshll.u32 %v294_v30, 16  ;;  %v300_v50 = vld [vmem:[%s5276_s19 + $0x3c] sm:$0xf] }
  0x19   : > { %v373_v36 = vsel %vm5287_vm2, %v368_v31, %v372_v15  ;;  %v358_v46 = vrot.slane %v356_v32, 5  ;;  %v411_v47 = vrot.slane %v409_v39, 4  ;;  %v385_v48 = vshrl.u32 %v291_v35, 16  ;;  %v298_v58 = vld [vmem:[%s5276_s19 + $0x34] sm:$0xf] }
  0x1a   : > { %724 = vrot.lane.b32.xlu1 %v373_v36, %s5224_s20  ;;  %v349_v41 = vsel %vm5287_vm2, %v344_v33, %v348_v27  ;;  %v388_v49 = vshll.u32 %v291_v35, 16  ;;  %v354_v51 = vrot.slane %v353_v34, 4  ;;  %v414_v52 = vrot.slane %v412_v45, 5  ;;  %v293_v6 = vld [vmem:[%s5276_s19 + $0x20] sm:$0x1] }
  0x1b   : > { %720 = vrot.lane.b32.xlu0 %v349_v41, %s5224_s20  ;;  %v394_v53 = vshll.u32 %v292_v40, 16  ;;  %v398_v54 = vshrl.u32 %v292_v40, 16  ;;  %v428_v55 = vshll.u32 %v296_v42, 16  ;;  %v387_v56 = vrot.slane %v385_v48, 4  ;;  %v301_v15 = vld [vmem:[%s5276_s19 + $0x40] sm:$0xf] }
  0x1c   : > { %v390_v57 = vrot.slane %v388_v49, 5  ;;  %v425_v59 = vor.u32 %v424_v44, %v5300_v43  ;;  %v457_v61 = vshrl.u32 %v300_v50, 16  ;;  %v460_v62 = vshll.u32 %v300_v50, 16  ;;  %v299_v16 = vld [vmem:[%s5276_s19 + $0x38] sm:$0x1] }
  0x1d   : > { %v400_v60 = vrot.slane %v398_v54, 4  ;;  %v383_v63 = vsel %vm5287_vm2, %v378_v37, %v382_v38  ;;  %v415_v0 = vor.u32 %v414_v52, %v411_v47  ;;  %v396_v2 = vrot.slane %v394_v53, 5  ;;  %v304_v20 = vld [vmem:[%s5276_s19 + $0x4c] sm:$0xf]  ;;  %v297_v21 = vld [vmem:[%s5276_s19 + $0x30] sm:$0xf] }
  0x1e   : > { %v391_v1 = vor.u32 %v390_v57, %v387_v56  ;;  %v359_v3 = vsel %vm5287_vm2, %v354_v51, %v358_v46  ;;  %v442_v4 = vshll.u32 %v298_v58, 16  ;;  %v446_v5 = vshrl.u32 %v298_v58, 16  ;;  %v303_v24 = vld [vmem:[%s5276_s19 + $0x48] sm:$0xf]  ;;  %v309_v47 = vld [vmem:[%s5276_s19 + $0x60] sm:$0xf] }
  0x1f   : > { %v430_v7 = vrot.slane %v428_v55, 5  ;;  %v426_v9 = vrot.slane %v425_v59, 4  ;;  %v459_v10 = vrot.slane %v457_v61, 4  ;;  %v462_v11 = vrot.slane %v460_v62, 5  ;;  %v305_v49 = vld [vmem:[%s5276_s19 + $0x50] sm:$0x1] }
  0x20   : > { %v392_v8 = vrot.slane %v391_v1, 4  ;;  %v401_v12 = vor.u32 %v400_v60, %v396_v2  ;;  %v416_v13 = vrot.slane %v415_v0, 4  ;;  %v404_v17 = vshll.u32 %v293_v6, 16  ;;  %v307_v53 = vld [vmem:[%s5276_s19 + $0x58] sm:$0xf] }
  0x21   : > { %v5318_v18 = vrot.slane %v442_v4, 5  ;;  %v448_v19 = vrot.slane %v446_v5, 4  ;;  %v431_v26 = vsel %vm5287_vm2, %v426_v9, %v430_v7  ;;  %v463_v27 = vor.u32 %v462_v11, %v459_v10  ;;  %v302_v58 = vld [vmem:[%s5276_s19 + $0x44] sm:$0x1]  ;;  %v313_v11 = vld [vmem:[%s5276_s19 + $0x70] sm:$0xf] }
  0x22   : > { %726 = vrot.lane.b32.xlu1 %v383_v63, %s5224_s20  ;;  %v397_v14 = vsel %vm5287_vm2, %v392_v8, %v396_v2  ;;  %v402_v22 = vrot.slane %v401_v12, 4  ;;  %v406_v23 = vrot.slane %v404_v17, 5  ;;  %v466_v28 = vshll.u32 %v301_v15, 16  ;;  %v306_v2 = vld [vmem:[%s5276_s19 + $0x54] sm:$0xf] }
  0x23   : > { %722 = vrot.lane.b32.xlu0 %v359_v3, %s5224_s20  ;;  %728 = vrot.lane.b32.xlu2 %v397_v14, %s5224_s20  ;;  %v452_v29 = vshll.u32 %v299_v16, 16  ;;  %v421_v30 = vsel %vm5287_vm2, %v416_v13, %v5300_v43  ;;  %v490_v31 = vshll.u32 %v304_v20, 16  ;;  %v494_v32 = vshrl.u32 %v304_v20, 16  ;;  %v310_v6 = vld [vmem:[%s5276_s19 + $0x64] sm:$0xf] }
  0x24   : > { %v433_v33 = vshrl.u32 %v297_v21, 16  ;;  %v449_v34 = vor.u32 %v448_v19, %v5318_v18  ;;  %v481_v35 = vshrl.u32 %v303_v24, 16  ;;  %v484_v36 = vshll.u32 %v303_v24, 16  ;;  %v312_v20 = vld [vmem:[%s5276_s19 + $0x6c] sm:$0xf] }
  0x25   : > { %v436_v37 = vshll.u32 %v297_v21, 16  ;;  %v470_v38 = vshrl.u32 %v301_v15, 16  ;;  %v407_v39 = vsel %vm5287_vm2, %v402_v22, %v406_v23  ;;  %v468_v41 = vrot.slane %v466_v28, 5  ;;  %v308_v15 = vld [vmem:[%s5276_s19 + $0x5c] sm:$0x1] }
  0x26   : > { %v435_v40 = vrot.slane %v433_v33, 4  ;;  %v464_v43 = vrot.slane %v463_v27, 4  ;;  %v454_v44 = vrot.slane %v452_v29, 5  ;;  %v5333_v45 = vrot.slane %v490_v31, 5 }
  0x27   : > { %v438_v42 = vrot.slane %v436_v37, 5  ;;  %v496_v46 = vrot.slane %v494_v32, 4  ;;  %v450_v48 = vrot.slane %v449_v34, 4  ;;  %v483_v50 = vrot.slane %v481_v35, 4 }
  0x28   : > { %v486_v51 = vrot.slane %v484_v36, 5  ;;  %v472_v54 = vrot.slane %v470_v38, 4  ;;  %v529_v56 = vshrl.u32 %v309_v47, 16  ;;  %v532_v57 = vshll.u32 %v309_v47, 16  ;;  %v316_v47 = vld [vmem:[%s5276_s19 + $0x7c] sm:$0xf] }
  0x29   : > { %v439_v52 = vor.u32 %v438_v42, %v435_v40  ;;  %v469_v59 = vsel %vm5287_vm2, %v464_v43, %v468_v41  ;;  %v497_v60 = vor.u32 %v496_v46, %v5333_v45  ;;  %v500_v61 = vshll.u32 %v305_v49, 16  ;;  %v318_v42 = vld [vmem:[%s5276_s19 + $0x84] sm:$0xf]  ;;  %v311_v49 = vld [vmem:[%s5276_s19 + $0x68] sm:$0x1] }
  0x2a   : > { %734 = vrot.lane.b32.xlu1 %v431_v26, %s5224_s20  ;;  %v455_v62 = vsel %vm5287_vm2, %v450_v48, %v454_v44  ;;  %v487_v63 = vor.u32 %v486_v51, %v483_v50  ;;  %v514_v0 = vshll.u32 %v307_v53, 16  ;;  %v518_v1 = vshrl.u32 %v307_v53, 16 }
  0x2b   : > { %732 = vrot.lane.b32.xlu0 %v421_v30, %s5224_s20  ;;  %730 = vrot.lane.b32.xlu2 %v407_v39, %s5224_s20  ;;  %v440_v55 = vrot.slane %v439_v52, 4  ;;  %v473_v4 = vor.u32 %v472_v54, %v468_v41  ;;  %v476_v5 = vshll.u32 %v302_v58, 16  ;;  %v531_v7 = vrot.slane %v529_v56, 4  ;;  %v314_v41 = vld [vmem:[%s5276_s19 + $0x74] sm:$0x1] }
  0x2c   : > { %v534_v8 = vrot.slane %v532_v57, 5  ;;  %v498_v9 = vrot.slane %v497_v60, 4  ;;  %v502_v10 = vrot.slane %v500_v61, 5  ;;  %v505_v12 = vshrl.u32 %v306_v2, 16  ;;  %v315_v54 = vld [vmem:[%s5276_s19 + $0x78] sm:$0xf] }
  0x2d   : > { %v445_v3 = vsel %vm5287_vm2, %v440_v55, %v5318_v18  ;;  %v508_v13 = vshll.u32 %v306_v2, 16  ;;  %v488_v14 = vrot.slane %v487_v63, 4  ;;  %v5355_v16 = vrot.slane %v514_v0, 5 }
  0x2e   : > { %v520_v17 = vrot.slane %v518_v1, 4  ;;  %v474_v18 = vrot.slane %v473_v4, 4  ;;  %v478_v19 = vrot.slane %v476_v5, 5  ;;  %v507_v21 = vrot.slane %v505_v12, 4  ;;  %v319_v4 = vld [vmem:[%s5276_s19 + $0x88] sm:$0xf] }
  0x2f   : > { %v510_v22 = vrot.slane %v508_v13, 5  ;;  %v535_v23 = vor.u32 %v534_v8, %v531_v7  ;;  %v538_v24 = vshll.u32 %v310_v6, 16  ;;  %v562_v26 = vshll.u32 %v313_v11, 16 }
  0x30   : > { %v566_v27 = vshrl.u32 %v313_v11, 16  ;;  %v503_v28 = vsel %vm5287_vm2, %v498_v9, %v502_v10  ;;  %v524_v29 = vshll.u32 %v308_v15, 16  ;;  %v493_v30 = vsel %vm5287_vm2, %v488_v14, %v5333_v45  ;;  %v322_v9 = vld [vmem:[%s5276_s19 + $0x94] sm:$0xf]  ;;  %v317_v11 = vld [vmem:[%s5276_s19 + $0x80] sm:$0x1] }
  0x31   : > { %v521_v31 = vor.u32 %v520_v17, %v5355_v16  ;;  %v553_v32 = vshrl.u32 %v312_v20, 16  ;;  %v556_v33 = vshll.u32 %v312_v20, 16  ;;  %v542_v34 = vshrl.u32 %v310_v6, 16  ;;  %v321_v14 = vld [vmem:[%s5276_s19 + $0x90] sm:$0xf] }
  0x32   : > { %740 = vrot.lane.b32.xlu1 %v469_v59, %s5224_s20  ;;  %v479_v35 = vsel %vm5287_vm2, %v474_v18, %v478_v19  ;;  %v511_v36 = vor.u32 %v510_v22, %v507_v21  ;;  %v536_v37 = vrot.slane %v535_v23, 4  ;;  %v540_v38 = vrot.slane %v538_v24, 5 }
  0x33   : > { %738 = vrot.lane.b32.xlu0 %v455_v62, %s5224_s20  ;;  %736 = vrot.lane.b32.xlu2 %v445_v3, %s5224_s20  ;;  %v5367_v39 = vrot.slane %v562_v26, 5  ;;  %v568_v40 = vrot.slane %v566_v27, 4  ;;  %v522_v43 = vrot.slane %v521_v31, 4  ;;  %v526_v44 = vrot.slane %v524_v29, 5 }
  0x34   : > { %v555_v45 = vrot.slane %v553_v32, 4  ;;  %v558_v46 = vrot.slane %v556_v33, 5  ;;  %v512_v48 = vrot.slane %v511_v36, 4  ;;  %v544_v50 = vrot.slane %v542_v34, 4 }
  0x35   : > { %v541_v51 = vsel %vm5287_vm2, %v536_v37, %v540_v38  ;;  %v569_v52 = vor.u32 %v568_v40, %v5367_v39  ;;  %v572_v53 = vshll.u32 %v314_v41, 16  ;;  %v601_v55 = vshrl.u32 %v318_v42, 16  ;;  %v323_v37 = vld [vmem:[%s5276_s19 + $0x98] sm:$0x1]  ;;  %v327_v40 = vld [vmem:[%s5276_s19 + $0xa8] sm:$0xf] }
  0x36   : > { %v604_v56 = vshll.u32 %v318_v42, 16  ;;  %v586_v57 = vshll.u32 %v316_v47, 16  ;;  %v590_v58 = vshrl.u32 %v316_v47, 16  ;;  %v527_v59 = vsel %vm5287_vm2, %v522_v43, %v526_v44  ;;  %v325_v42 = vld [vmem:[%s5276_s19 + $0xa0] sm:$0xf] }
  0x37   : > { %v559_v60 = vor.u32 %v558_v46, %v555_v45  ;;  %v548_v61 = vshll.u32 %v311_v49, 16  ;;  %v517_v62 = vsel %vm5287_vm2, %v512_v48, %v5355_v16  ;;  %v545_v63 = vor.u32 %v544_v50, %v540_v38  ;;  %v320_v43 = vld [vmem:[%s5276_s19 + $0x8c] sm:$0x1]  ;;  %v324_v47 = vld [vmem:[%s5276_s19 + $0x9c] sm:$0xf] }
  0x38   : > { %v577_v0 = vshrl.u32 %v315_v54, 16  ;;  %v580_v1 = vshll.u32 %v315_v54, 16  ;;  %v570_v2 = vrot.slane %v569_v52, 4  ;;  %v574_v3 = vrot.slane %v572_v53, 5 }
  0x39   : > { %v603_v5 = vrot.slane %v601_v55, 4  ;;  %v606_v6 = vrot.slane %v604_v56, 5  ;;  %v5387_v7 = vrot.slane %v586_v57, 5  ;;  %v592_v8 = vrot.slane %v590_v58, 4 }
  0x3a   : > { %746 = vrot.lane.b32.xlu1 %v503_v28, %s5224_s20  ;;  %v560_v10 = vrot.slane %v559_v60, 4  ;;  %v546_v12 = vrot.slane %v545_v63, 4  ;;  %v550_v13 = vrot.slane %v548_v61, 5  ;;  %v579_v15 = vrot.slane %v577_v0, 4 }
  0x3b   : > { %744 = vrot.lane.b32.xlu0 %v493_v30, %s5224_s20  ;;  %742 = vrot.lane.b32.xlu2 %v479_v35, %s5224_s20  ;;  %v582_v16 = vrot.slane %v580_v1, 5  ;;  %v610_v17 = vshll.u32 %v319_v4, 16  ;;  %v634_v18 = vshll.u32 %v322_v9, 16  ;;  %v638_v19 = vshrl.u32 %v322_v9, 16  ;;  %v326_v1 = vld [vmem:[%s5276_s19 + $0xa4] sm:$0x1] }
  0x3c   : > { %v575_v20 = vsel %vm5287_vm2, %v570_v2, %v574_v3  ;;  %v607_v21 = vor.u32 %v606_v6, %v603_v5  ;;  %v593_v22 = vor.u32 %v592_v8, %v5387_v7  ;;  %v596_v23 = vshll.u32 %v317_v11, 16  ;;  %v331_v5 = vld [vmem:[%s5276_s19 + $0xb8] sm:$0xf]  ;;  %v330_v8 = vld [vmem:[%s5276_s19 + $0xb4] sm:$0xf] }
  0x3d   : > { %v565_v24 = vsel %vm5287_vm2, %v560_v10, %v5367_v39  ;;  %v625_v26 = vshrl.u32 %v321_v14, 16  ;;  %v628_v27 = vshll.u32 %v321_v14, 16  ;;  %v614_v28 = vshrl.u32 %v319_v4, 16 }
  0x3e   : > { %v551_v29 = vsel %vm5287_vm2, %v546_v12, %v550_v13  ;;  %v583_v30 = vor.u32 %v582_v16, %v579_v15  ;;  %v5402_v31 = vrot.slane %v634_v18, 5  ;;  %v640_v32 = vrot.slane %v638_v19, 4 }
  0x3f   : > { %v608_v33 = vrot.slane %v607_v21, 4  ;;  %v612_v34 = vrot.slane %v610_v17, 5  ;;  %v594_v35 = vrot.slane %v593_v22, 4  ;;  %v598_v36 = vrot.slane %v596_v23, 5 }
  0x40   : > { %v627_v38 = vrot.slane %v625_v26, 4  ;;  %v630_v39 = vrot.slane %v628_v27, 5  ;;  %v584_v41 = vrot.slane %v583_v30, 4  ;;  %v616_v44 = vrot.slane %v614_v28, 4 }
  0x41   : > { %v641_v45 = vor.u32 %v640_v32, %v5402_v31  ;;  %v644_v46 = vshll.u32 %v323_v37, 16  ;;  %v613_v48 = vsel %vm5287_vm2, %v608_v33, %v612_v34  ;;  %v599_v49 = vsel %vm5287_vm2, %v594_v35, %v598_v36  ;;  %v329_v36 = vld [vmem:[%s5276_s19 + $0xb0] sm:$0x1] }
  0x42   : > { %752 = vrot.lane.b32.xlu1 %v541_v51, %s5224_s20  ;;  %v673_v50 = vshrl.u32 %v327_v40, 16  ;;  %v676_v51 = vshll.u32 %v327_v40, 16  ;;  %v631_v52 = vor.u32 %v630_v39, %v627_v38  ;;  %v658_v53 = vshll.u32 %v325_v42, 16 }
  0x43   : > { %750 = vrot.lane.b32.xlu0 %v527_v59, %s5224_s20  ;;  %748 = vrot.lane.b32.xlu2 %v517_v62, %s5224_s20  ;;  %v662_v54 = vshrl.u32 %v325_v42, 16  ;;  %v620_v55 = vshll.u32 %v320_v43, 16  ;;  %v589_v56 = vsel %vm5287_vm2, %v584_v41, %v5387_v7  ;;  %v617_v57 = vor.u32 %v616_v44, %v612_v34  ;;  %v328_v62 = vld [vmem:[%s5276_s19 + $0xac] sm:$0xf] }
  0x44   : > { %v649_v58 = vshrl.u32 %v324_v47, 16  ;;  %v652_v59 = vshll.u32 %v324_v47, 16  ;;  %v642_v60 = vrot.slane %v641_v45, 4  ;;  %v646_v61 = vrot.slane %v644_v46, 5 }
  0x45   : > { %v675_v63 = vrot.slane %v673_v50, 4  ;;  %v678_v0 = vrot.slane %v676_v51, 5  ;;  %v632_v2 = vrot.slane %v631_v52, 4  ;;  %v660_v3 = vrot.slane %v658_v53, 5  ;;  %v852_v51 = vld [vmem:[%s5276_s19 + $0xc] sm:$0xe] }
  0x46   : > { %v664_v4 = vrot.slane %v662_v54, 4  ;;  %v618_v6 = vrot.slane %v617_v57, 4  ;;  %v622_v7 = vrot.slane %v620_v55, 5  ;;  %v651_v9 = vrot.slane %v649_v58, 4  ;;  %v853_v53 = vld [vmem:[%s5276_s19 + $0x10] sm:$0xf] }
  0x47   : > { %v654_v10 = vrot.slane %v652_v59, 5  ;;  %v647_v11 = vsel %vm5287_vm2, %v642_v60, %v646_v61  ;;  %v682_v12 = vshll.u32 %v328_v62, 16  ;;  %v679_v13 = vor.u32 %v678_v0, %v675_v63  ;;  %v851_v54 = vld [vmem:[%s5276_s19 + $0x8] sm:$0x1]  ;;  %v849_v61 = vld [vmem:[%s5276_s19] sm:$0xe] }
  0x48   : > { %v668_v14 = vshll.u32 %v326_v1, 16  ;;  %v706_v15 = vshll.u32 %v331_v5, 16  ;;  %v710_v16 = vshrl.u32 %v331_v5, 16  ;;  %v637_v17 = vsel %vm5287_vm2, %v632_v2, %v5402_v31  ;;  %v332_v31 = vld [vmem:[%s5276_s19 + $0xbc] sm:$0x1] }
  0x49   : > { %v665_v18 = vor.u32 %v664_v4, %v660_v3  ;;  %v697_v19 = vshrl.u32 %v330_v8, 16  ;;  %v686_v21 = vshrl.u32 %v328_v62, 16  ;;  %v623_v22 = vsel %vm5287_vm2, %v618_v6, %v622_v7  ;;  %v856_v63 = vld [vmem:[%s5276_s19 + $0x1c] sm:$0xf]  ;;  %v224_v0 = vld [vmem:[%s5276_s19 + $0x18] sm:$0xf] }
  0x4a   : > { %758 = vrot.lane.b32.xlu1 %v575_v20, %s5224_s20  ;;  %v700_v20 = vshll.u32 %v330_v8, 16  ;;  %v655_v23 = vor.u32 %v654_v10, %v651_v9  ;;  %v684_v26 = vrot.slane %v682_v12, 5  ;;  %v708_v27 = vrot.slane %v706_v15, 5  ;;  %257 = vst.msk [vmem:[#allocation2 + $0x10] sm:$0xf] %vm252_vm5, %v224_v0 }
  0x4b   : > { %756 = vrot.lane.b32.xlu0 %v565_v24, %s5224_s20  ;;  %754 = vrot.lane.b32.xlu2 %v551_v29, %s5224_s20  ;;  %v680_v24 = vrot.slane %v679_v13, 4  ;;  %v712_v28 = vrot.slane %v710_v16, 4  ;;  %v666_v29 = vrot.slane %v665_v18, 4  ;;  %v670_v30 = vrot.slane %v668_v14, 5  ;;  %v222_v2 = vld [vmem:[%s5276_s19 + $0xc] sm:$0xf] }
  0x4c   : > { %v699_v32 = vrot.slane %v697_v19, 4  ;;  %v702_v33 = vrot.slane %v700_v20, 5  ;;  %v656_v34 = vrot.slane %v655_v23, 4  ;;  %v688_v35 = vrot.slane %v686_v21, 4  ;;  %255 = vst.msk [vmem:[#allocation2 + $0x8] sm:$0xf] %vm252_vm5, %v222_v2 }
  0x4d   : > { %v685_v37 = vsel %vm5287_vm2, %v680_v24, %v684_v26  ;;  %v713_v38 = vor.u32 %v712_v28, %v708_v27  ;;  %v716_v39 = vshll.u32 %v332_v31, 16  ;;  %v671_v40 = vsel %vm5287_vm2, %v666_v29, %v670_v30  ;;  %v857_v6 = vld [vmem:[%s5276_s19 + $0x20] sm:$0x1]  ;;  %v855_v9 = vld [vmem:[%s5276_s19 + $0x18] sm:$0xe] }
  0x4e   : > { %v703_v41 = vor.u32 %v702_v33, %v699_v32  ;;  %v661_v42 = vsel %vm5287_vm2, %v656_v34, %v660_v3  ;;  %v689_v43 = vor.u32 %v688_v35, %v684_v26  ;;  %v692_v44 = vshll.u32 %v329_v36, 16  ;;  %v220_v3 = vld [vmem:[%s5276_s19] sm:$0xf]  ;;  %v854_v12 = vld [vmem:[%s5276_s19 + $0x14] sm:$0x1] }
  0x4f   : > { %v714_v45 = vrot.slane %v713_v38, 4  ;;  %v718_v46 = vrot.slane %v716_v39, 5  ;;  %v4489_v58 = vrot.slane %v852_v51, 9  ;;  %v957_v59 = vrot.slane %v853_v53, 5  ;;  %253 = vst.msk [vmem:[#allocation2] sm:$0xf] %vm252_vm5, %v220_v3 }
  0x50   : > { %v704_v47 = vrot.slane %v703_v41, 4  ;;  %v694_v50 = vrot.slane %v692_v44, 5  ;;  %v953_v60 = vrot.slane %v851_v54, 5  ;;  %v4488_v4 = vrot.slane %v849_v61, 9  ;;  %v859_v15 = vld [vmem:[%s5276_s19 + $0x28] sm:$0xf] }
  0x51   : > { %v719_v52 = vsel %vm5287_vm2, %v714_v45, %v718_v46  ;;  %v958_v5 = vsel %vm5462_vm6, %v4489_v58, %v957_v59  ;;  %v964_v7 = vrot.slane %v856_v63, 5  ;;  %v4490_v14 = vrot.slane %v855_v9, 9  ;;  %v225_v16 = vld [vmem:[%s5276_s19 + $0x1c] sm:$0xf]  ;;  %v221_v18 = vld [vmem:[%s5276_s19 + $0x4] sm:$0xf] }
  0x52   : > { %764 = vrot.lane.b32.xlu1 %v613_v48, %s5224_s20  ;;  %v850_v48 = vld [vmem:[%s5276_s19 + $0x4] sm:$0xf]  ;;  %258 = vst.msk [vmem:[#allocation2 + $0x14] sm:$0xf] %vm252_vm5, %v225_v16  ;;  %v959_v19 = vrot.slane %v957_v59, 4  ;;  %v960_v20 = vrot.slane %v854_v12, 5 }
  0x53   : > { %762 = vrot.lane.b32.xlu0 %v599_v49, %s5224_s20  ;;  %760 = vrot.lane.b32.xlu2 %v589_v56, %s5224_s20  ;;  %v690_v49 = vrot.slane %v689_v43, 4  ;;  %v950_v55 = vrot.slane %v850_v48, 5  ;;  %v709_v56 = vsel %vm5287_vm2, %v704_v47, %v708_v27  ;;  %v966_v13 = vrot.slane %v964_v7, 4  ;;  %254 = vst.msk [vmem:[#allocation2 + $0x4] sm:$0xf] %vm252_vm5, %v221_v18 }
  0x54   : > { %v862_v23 = vld [vmem:[%s5276_s19 + $0x34] sm:$0xf]  ;;  %v971_v24 = vrot.slane %v859_v15, 5  ;;  %v965_v26 = vsel %vm5462_vm6, %v4490_v14, %v964_v7  ;;  %v860_v27 = vld [vmem:[%s5276_s19 + $0x2c] sm:$0x1]  ;;  %v961_v28 = vsel %vm5462_vm6, %v959_v19, %v960_v20 }
  0x55   : > { %v695_v57 = vsel %vm5287_vm2, %v690_v49, %v694_v50  ;;  %v952_v62 = vrot.slane %v950_v55, 4  ;;  %v951_v10 = vsel %vm5462_vm6, %v4488_v4, %v950_v55  ;;  %v978_v30 = vrot.slane %v862_v23, 5  ;;  %v858_v31 = vld [vmem:[%s5276_s19 + $0x24] sm:$0xe]  ;;  %v865_v34 = vld [vmem:[%s5276_s19 + $0x40] sm:$0xf] }
  0x56   : > { %v973_v32 = vrot.slane %v971_v24, 4  ;;  %v974_v33 = vrot.slane %v860_v27, 5  ;;  %v228_v35 = vld [vmem:[%s5276_s19 + $0x30] sm:$0xf]  ;;  %v227_v36 = vld [vmem:[%s5276_s19 + $0x28] sm:$0xf] }
  0x57   : > { %v954_v8 = vsel %vm5462_vm6, %v952_v62, %v953_v60  ;;  %261 = vst.msk [vmem:[#allocation2 + $0x20] sm:$0xf] %vm252_vm5, %v228_v35  ;;  %v4491_v38 = vrot.slane %v858_v31, 9  ;;  %v985_v41 = vrot.slane %v865_v34, 5  ;;  %v866_v43 = vld [vmem:[%s5276_s19 + $0x44] sm:$0x1] }
  0x58   : > { %260 = vst.msk [vmem:[#allocation2 + $0x1c] sm:$0xf] %vm252_vm5, %v227_v36  ;;  %v864_v44 = vld [vmem:[%s5276_s19 + $0x3c] sm:$0xe]  ;;  %v863_v46 = vld [vmem:[%s5276_s19 + $0x38] sm:$0x1] }
  0x59   : > { %v972_v45 = vsel %vm5462_vm6, %v4491_v38, %v971_v24  ;;  %v987_v47 = vrot.slane %v985_v41, 4  ;;  %v988_v48 = vrot.slane %v866_v43, 5  ;;  %v4493_v49 = vrot.slane %v864_v44, 9  ;;  %v231_v50 = vld [vmem:[%s5276_s19 + $0x40] sm:$0xf] }
  0x5a   : > { %770 = vrot.lane.b32.xlu1 %v647_v11, %s5224_s20  ;;  %v967_v11 = vrot.slane %v857_v6, 5  ;;  %264 = vst.msk [vmem:[#allocation2 + $0x2c] sm:$0xf] %vm252_vm5, %v231_v50  ;;  %v230_v51 = vld [vmem:[%s5276_s19 + $0x3c] sm:$0xf]  ;;  %v980_v54 = vrot.slane %v978_v30, 4 }
  0x5b   : > { %768 = vrot.lane.b32.xlu0 %v637_v17, %s5224_s20  ;;  %766 = vrot.lane.b32.xlu2 %v623_v22, %s5224_s20  ;;  %v223_v17 = vld [vmem:[%s5276_s19 + $0x10] sm:$0xf]  ;;  %v868_v53 = vld [vmem:[%s5276_s19 + $0x4c] sm:$0xf]  ;;  %v981_v55 = vrot.slane %v863_v46, 5  ;;  %v986_v58 = vsel %vm5462_vm6, %v4493_v49, %v985_v41 }
  0x5c   : > { %256 = vst.msk [vmem:[#allocation2 + $0xc] sm:$0xf] %vm252_vm5, %v223_v17  ;;  %v968_v21 = vsel %vm5462_vm6, %v966_v13, %v967_v11  ;;  %v861_v22 = vld [vmem:[%s5276_s19 + $0x30] sm:$0xe]  ;;  %v870_v59 = vld [vmem:[%s5276_s19 + $0x54] sm:$0xe] }
  0x5d   : > { %v4492_v29 = vrot.slane %v861_v22, 9  ;;  %263 = vst.msk [vmem:[#allocation2 + $0x28] sm:$0xf] %vm252_vm5, %v230_v51  ;;  %v871_v60 = vld [vmem:[%s5276_s19 + $0x58] sm:$0xf]  ;;  %v992_v61 = vrot.slane %v868_v53, 5  ;;  %v982_v63 = vsel %vm5462_vm6, %v980_v54, %v981_v55 }
  0x5e   : > { %v869_v62 = vld [vmem:[%s5276_s19 + $0x50] sm:$0x1]  ;;  %v867_v0 = vld [vmem:[%s5276_s19 + $0x48] sm:$0xe]  ;;  %v4495_v2 = vrot.slane %v870_v59, 9  ;;  %v999_v3 = vrot.slane %v871_v60, 5 }
  0x5f   : > { %v234_v4 = vld [vmem:[%s5276_s19 + $0x54] sm:$0xf]  ;;  %v994_v6 = vrot.slane %v992_v61, 4  ;;  %v995_v7 = vrot.slane %v869_v62, 5  ;;  %v233_v11 = vld [vmem:[%s5276_s19 + $0x4c] sm:$0xf] }
  0x60   : > { %267 = vst.msk [vmem:[#allocation2 + $0x38] sm:$0xf] %vm252_vm5, %v234_v4  ;;  %v232_v13 = vld [vmem:[%s5276_s19 + $0x48] sm:$0xf]  ;;  %v1000_v14 = vsel %vm5462_vm6, %v4495_v2, %v999_v3  ;;  %v873_v18 = vld [vmem:[%s5276_s19 + $0x60] sm:$0xe] }
  0x61   : > { %v996_v16 = vsel %vm5462_vm6, %v994_v6, %v995_v7  ;;  %v875_v17 = vld [vmem:[%s5276_s19 + $0x68] sm:$0x1]  ;;  %266 = vst.msk [vmem:[#allocation2 + $0x34] sm:$0xf] %vm252_vm5, %v233_v11  ;;  %v872_v20 = vld [vmem:[%s5276_s19 + $0x5c] sm:$0x1] }
  0x62   : > { %776 = vrot.lane.b32.xlu1 %v685_v37, %s5224_s20  ;;  %v226_v37 = vld [vmem:[%s5276_s19 + $0x24] sm:$0xf]  ;;  %265 = vst.msk [vmem:[#allocation2 + $0x30] sm:$0xf] %vm252_vm5, %v232_v13  ;;  %v1009_v22 = vrot.slane %v875_v17, 5 }
  0x63   : > { %774 = vrot.lane.b32.xlu0 %v671_v40, %s5224_s20  ;;  %772 = vrot.lane.b32.xlu2 %v661_v42, %s5224_s20  ;;  %259 = vst.msk [vmem:[#allocation2 + $0x18] sm:$0xf] %vm252_vm5, %v226_v37  ;;  %v979_v40 = vsel %vm5462_vm6, %v4492_v29, %v978_v30  ;;  %v975_v42 = vsel %vm5462_vm6, %v973_v32, %v974_v33  ;;  %v237_v23 = vld [vmem:[%s5276_s19 + $0x64] sm:$0xf]  ;;  %v877_v27 = vld [vmem:[%s5276_s19 + $0x70] sm:$0xf] }
  0x64   : > { %270 = vst.msk [vmem:[#allocation2 + $0x44] sm:$0xf] %vm252_vm5, %v237_v23  ;;  %v1001_v29 = vrot.slane %v999_v3, 4  ;;  %v1002_v30 = vrot.slane %v872_v20, 5  ;;  %v236_v31 = vld [vmem:[%s5276_s19 + $0x60] sm:$0xf] }
  0x65   : > { %v235_v33 = vld [vmem:[%s5276_s19 + $0x58] sm:$0xf]  ;;  %v880_v37 = vld [vmem:[%s5276_s19 + $0x7c] sm:$0xf]  ;;  %v1013_v38 = vrot.slane %v877_v27, 5 }
  0x66   : > { %v879_v35 = vld [vmem:[%s5276_s19 + $0x78] sm:$0xe]  ;;  %269 = vst.msk [vmem:[#allocation2 + $0x40] sm:$0xf] %vm252_vm5, %v236_v31  ;;  %v876_v41 = vld [vmem:[%s5276_s19 + $0x6c] sm:$0xe] }
  0x67   : > { %268 = vst.msk [vmem:[#allocation2 + $0x3c] sm:$0xf] %vm252_vm5, %v235_v33  ;;  %v1020_v43 = vrot.slane %v880_v37, 5  ;;  %v240_v44 = vld [vmem:[%s5276_s19 + $0x78] sm:$0xf]  ;;  %v1015_v46 = vrot.slane %v1013_v38, 4 }
  0x68   : > { %273 = vst.msk [vmem:[#allocation2 + $0x50] sm:$0xf] %vm252_vm5, %v240_v44  ;;  %v4497_v50 = vrot.slane %v876_v41, 9  ;;  %v239_v51 = vld [vmem:[%s5276_s19 + $0x70] sm:$0xf] }
  0x69   : > { %v238_v53 = vld [vmem:[%s5276_s19 + $0x6c] sm:$0xf]  ;;  %272 = vst.msk [vmem:[#allocation2 + $0x4c] sm:$0xf] %vm252_vm5, %v239_v51  ;;  %v881_v60 = vld [vmem:[%s5276_s19 + $0x80] sm:$0x1] }
  0x6a   : > { %782 = vrot.lane.b32.xlu1 %v719_v52, %s5224_s20  ;;  %v229_v52 = vld [vmem:[%s5276_s19 + $0x34] sm:$0xf]  ;;  %v1014_v59 = vsel %vm5462_vm6, %v4497_v50, %v1013_v38  ;;  %271 = vst.msk [vmem:[#allocation2 + $0x48] sm:$0xf] %vm252_vm5, %v238_v53  ;;  %v1023_v6 = vrot.slane %v881_v60, 5 }
  0x6b   : > { %780 = vrot.lane.b32.xlu0 %v709_v56, %s5224_s20  ;;  %778 = vrot.lane.b32.xlu2 %v695_v57, %s5224_s20  ;;  %262 = vst.msk [vmem:[#allocation2 + $0x24] sm:$0xf] %vm252_vm5, %v229_v52  ;;  %v989_v57 = vsel %vm5462_vm6, %v987_v47, %v988_v48  ;;  %v883_v48 = vld [vmem:[%s5276_s19 + $0x88] sm:$0xf]  ;;  %v886_v3 = vld [vmem:[%s5276_s19 + $0x94] sm:$0xf] }
  0x6c   : > { %v1027_v55 = vrot.slane %v883_v48, 5  ;;  %v242_v7 = vld [vmem:[%s5276_s19 + $0x84] sm:$0xf]  ;;  %v888_v11 = vld [vmem:[%s5276_s19 + $0x9c] sm:$0xe] }
  0x6d   : > { %v889_v13 = vld [vmem:[%s5276_s19 + $0xa0] sm:$0xf]  ;;  %275 = vst.msk [vmem:[#allocation2 + $0x58] sm:$0xf] %vm252_vm5, %v242_v7  ;;  %v885_v17 = vld [vmem:[%s5276_s19 + $0x90] sm:$0xe] }
  0x6e   : > { %v246_v20 = vld [vmem:[%s5276_s19 + $0x9c] sm:$0xf]  ;;  %v4500_v27 = vrot.slane %v885_v17, 9  ;;  %v890_v37 = vld [vmem:[%s5276_s19 + $0xa4] sm:$0x1] }
  0x6f   : > { %279 = vst.msk [vmem:[#allocation2 + $0x68] sm:$0xf] %vm252_vm5, %v246_v20  ;;  %v896_v53 = vld [vmem:[%s5276_s19 + $0xbc] sm:$0x1] }
  0x70   : > { %v4507_v7 = vld [vmem:[%s5276_s19 + $0x1c] sm:$0xf] }
  0x71   : > { %v4512_v20 = vld [vmem:[%s5276_s19 + $0x3c] sm:$0xf] }
  0x72   : > { %1064 = vrot.lane.b32.xlu1 %v958_v5, %s5225_s21 }
  0x73   : > { %1062 = vrot.lane.b32.xlu0 %v954_v8, %s5225_s21  ;;  %1060 = vrot.lane.b32.xlu2 %v951_v10, %s5225_s21  ;;  %v874_v8 = vld [vmem:[%s5276_s19 + $0x64] sm:$0xf]  ;;  %v4494_v10 = vrot.slane %v867_v0, 9 }
  0x74   : > { %v1006_v15 = vrot.slane %v874_v8, 5 }
  0x75   : > { %v993_v19 = vsel %vm5462_vm6, %v4494_v10, %v992_v61  ;;  %v1029_v61 = vrot.slane %v1027_v55, 4 }
  0x7a   : > { %1070 = vrot.lane.b32.xlu1 %v968_v21, %s5225_s21  ;;  %v1008_v21 = vrot.slane %v1006_v15, 4 }
  0x7b   : > { %1068 = vrot.lane.b32.xlu0 %v965_v26, %s5225_s21  ;;  %1066 = vrot.lane.b32.xlu2 %v961_v28, %s5225_s21  ;;  %v4496_v26 = vrot.slane %v873_v18, 9  ;;  %v4501_v18 = vrot.slane %v888_v11, 9 }
  0x7c   : > { %v1010_v34 = vsel %vm5462_vm6, %v1008_v21, %v1009_v22 }
  0x7d   : > { %v729_v39 = vpop.permute.xlu2 %728  ;;  %v1007_v36 = vsel %vm5462_vm6, %v4496_v26, %v1006_v15  ;;  %v887_v15 = vld [vmem:[%s5276_s19 + $0x98] sm:$0x1] }
  0x7e   : > { %821 = vst.msk [vmem:[#allocation2 + $0x10] sm:$0xf] %vm816_vm7, %v729_v39  ;;  %v878_v39 = vld [vmem:[%s5276_s19 + $0x74] sm:$0x1]  ;;  %v1037_v23 = vrot.slane %v887_v15, 5 }
  0x7f   : > { %v1016_v47 = vrot.slane %v878_v39, 5  ;;  %v4508_v15 = vld [vmem:[%s5276_s19 + $0x24] sm:$0xf] }
  0x82   : > { %1076 = vrot.lane.b32.xlu1 %v979_v40, %s5225_s21  ;;  %v1003_v40 = vsel %vm5462_vm6, %v1001_v29, %v1002_v30  ;;  %v244_v30 = vld [vmem:[%s5276_s19 + $0x90] sm:$0xf] }
  0x83   : > { %1074 = vrot.lane.b32.xlu0 %v975_v42, %s5225_s21  ;;  %1072 = vrot.lane.b32.xlu2 %v972_v45, %s5225_s21  ;;  %v4498_v42 = vrot.slane %v879_v35, 9  ;;  %v891_v35 = vld [vmem:[%s5276_s19 + $0xa8] sm:$0xe]  ;;  %277 = vst.msk [vmem:[#allocation2 + $0x60] sm:$0xf] %vm252_vm5, %v244_v30 }
  0x85   : > { %v731_v56 = vpop.permute.xlu2 %730  ;;  %v1021_v54 = vsel %vm5462_vm6, %v4498_v42, %v1020_v43  ;;  %v4502_v42 = vrot.slane %v891_v35, 9 }
  0x86   : > { %822 = vst.msk [vmem:[#allocation2 + $0x14] sm:$0xf] %vm816_vm7, %v731_v56  ;;  %v1017_v56 = vsel %vm5462_vm6, %v1015_v46, %v1016_v47  ;;  %v1044_v46 = vrot.slane %v890_v37, 5  ;;  %v248_v47 = vld [vmem:[%s5276_s19 + $0xa8] sm:$0xf] }
  0x87   : > { %281 = vst.msk [vmem:[#allocation2 + $0x70] sm:$0xf] %vm252_vm5, %v248_v47 }
  0x8a   : > { %1082 = vrot.lane.b32.xlu1 %v989_v57, %s5225_s21  ;;  %v884_v57 = vld [vmem:[%s5276_s19 + $0x8c] sm:$0x1] }
  0x8b   : > { %1080 = vrot.lane.b32.xlu0 %v986_v58, %s5225_s21  ;;  %1078 = vrot.lane.b32.xlu2 %v982_v63, %s5225_s21  ;;  %v882_v58 = vld [vmem:[%s5276_s19 + $0x84] sm:$0xe]  ;;  %v1030_v62 = vrot.slane %v884_v57, 5  ;;  %v243_v63 = vld [vmem:[%s5276_s19 + $0x88] sm:$0xf] }
  0x8c   : > { %v725_v5 = vpop.permute.xlu1 %724  ;;  %v4499_v2 = vrot.slane %v882_v58, 9  ;;  %276 = vst.msk [vmem:[#allocation2 + $0x5c] sm:$0xf] %vm252_vm5, %v243_v63  ;;  %v1058_v58 = vrot.slane %v896_v53, 5  ;;  %v250_v63 = vld [vmem:[%s5276_s19 + $0xb4] sm:$0xf] }
  0x8d   : > { %819 = vst.msk [vmem:[#allocation2 + $0x8] sm:$0xf] %vm816_vm7, %v725_v5  ;;  %v721_v9 = vpop.permute.xlu0 %720  ;;  %v737_v12 = vpop.permute.xlu2 %736  ;;  %v1022_v5 = vrot.slane %v1020_v43, 4  ;;  %v1031_v10 = vsel %vm5462_vm6, %v1029_v61, %v1030_v62  ;;  %v895_v43 = vld [vmem:[%s5276_s19 + $0xb8] sm:$0xf] }
  0x8e   : > { %817 = vst.msk [vmem:[#allocation2] sm:$0xf] %vm816_vm7, %v721_v9  ;;  %v241_v9 = vld [vmem:[%s5276_s19 + $0x7c] sm:$0xf]  ;;  %v251_v61 = vld [vmem:[%s5276_s19 + $0xb8] sm:$0xf] }
  0x8f   : > { %825 = vst.msk [vmem:[#allocation2 + $0x20] sm:$0xf] %vm816_vm7, %v737_v12  ;;  %v1028_v12 = vsel %vm5462_vm6, %v4499_v2, %v1027_v55  ;;  %v894_v55 = vld [vmem:[%s5276_s19 + $0xb4] sm:$0xe]  ;;  %v4537_v53 = vld [vmem:[%s5276_s19 + $0x10] sm:$0xf] }
  0x90   : > { %274 = vst.msk [vmem:[#allocation2 + $0x54] sm:$0xf] %vm252_vm5, %v241_v9  ;;  %v4503_v60 = vrot.slane %v894_v55, 9  ;;  %v4505_v9 = vld [vmem:[%s5276_s19 + $0x10] sm:$0xf] }
  0x91   : > { %284 = vst.msk [vmem:[#allocation2 + $0x7c] sm:$0xf] %vm252_vm5, %v251_v61  ;;  %v4530_v61 = vld [vmem:[%s5276_s19 + $0xa8] sm:$0xf] }
  0x92   : > { %1088 = vrot.lane.b32.xlu1 %v1000_v14, %s5225_s21  ;;  %v1034_v14 = vrot.slane %v886_v3, 5  ;;  %283 = vst.msk [vmem:[#allocation2 + $0x78] sm:$0xf] %vm252_vm5, %v250_v63 }
  0x93   : > { %1086 = vrot.lane.b32.xlu0 %v996_v16, %s5225_s21  ;;  %1084 = vrot.lane.b32.xlu2 %v993_v19, %s5225_s21  ;;  %v1024_v16 = vsel %vm5462_vm6, %v1022_v5, %v1023_v6  ;;  %v1041_v19 = vrot.slane %v889_v13, 5  ;;  %v4510_v13 = vld [vmem:[%s5276_s19 + $0x30] sm:$0xf] }
  0x94   : > { %v727_v24 = vpop.permute.xlu1 %726  ;;  %v1036_v22 = vrot.slane %v1034_v14, 4 }
  0x95   : > { %820 = vst.msk [vmem:[#allocation2 + $0xc] sm:$0xf] %vm816_vm7, %v727_v24  ;;  %v723_v28 = vpop.permute.xlu0 %722  ;;  %v743_v32 = vpop.permute.xlu2 %742  ;;  %v892_v24 = vld [vmem:[%s5276_s19 + $0xac] sm:$0xf]  ;;  %v1042_v31 = vsel %vm5462_vm6, %v4501_v18, %v1041_v19 }
  0x96   : > { %818 = vst.msk [vmem:[#allocation2 + $0x4] sm:$0xf] %vm816_vm7, %v723_v28  ;;  %v245_v28 = vld [vmem:[%s5276_s19 + $0x94] sm:$0xf]  ;;  %v1038_v33 = vsel %vm5462_vm6, %v1036_v22, %v1037_v23 }
  0x97   : > { %828 = vst.msk [vmem:[#allocation2 + $0x2c] sm:$0xf] %vm816_vm7, %v743_v32  ;;  %v1048_v32 = vrot.slane %v892_v24, 5 }
  0x98   : > { %278 = vst.msk [vmem:[#allocation2 + $0x64] sm:$0xf] %vm252_vm5, %v245_v28  ;;  %v4514_v28 = vld [vmem:[%s5276_s19 + $0x48] sm:$0xf] }
  0x99   : > { %v1050_v38 = vrot.slane %v1048_v32, 4  ;;  %v1049_v51 = vsel %vm5462_vm6, %v4502_v42, %v1048_v32  ;;  %v4519_v32 = vld [vmem:[%s5276_s19 + $0x64] sm:$0xf] }
  0x9a   : > { %1094 = vrot.lane.b32.xlu1 %v1010_v34, %s5225_s21  ;;  %v893_v34 = vld [vmem:[%s5276_s19 + $0xb0] sm:$0x1] }
  0x9b   : > { %1092 = vrot.lane.b32.xlu0 %v1007_v36, %s5225_s21  ;;  %1090 = vrot.lane.b32.xlu2 %v1003_v40, %s5225_s21  ;;  %v1035_v36 = vsel %vm5462_vm6, %v4500_v27, %v1034_v14  ;;  %v1051_v39 = vrot.slane %v893_v34, 5  ;;  %v249_v40 = vld [vmem:[%s5276_s19 + $0xac] sm:$0xf]  ;;  %v4509_v14 = vld [vmem:[%s5276_s19 + $0x28] sm:$0xf] }
  0x9c   : > { %v735_v45 = vpop.permute.xlu1 %734  ;;  %282 = vst.msk [vmem:[#allocation2 + $0x74] sm:$0xf] %vm252_vm5, %v249_v40  ;;  %v4515_v27 = vld [vmem:[%s5276_s19 + $0x4c] sm:$0xf]  ;;  %v4517_v34 = vld [vmem:[%s5276_s19 + $0x58] sm:$0xf] }
  0x9d   : > { %824 = vst.msk [vmem:[#allocation2 + $0x1c] sm:$0xf] %vm816_vm7, %v735_v45  ;;  %v733_v49 = vpop.permute.xlu0 %732  ;;  %v749_v52 = vpop.permute.xlu2 %748  ;;  %v1043_v45 = vrot.slane %v1041_v19, 4  ;;  %v1052_v50 = vsel %vm5462_vm6, %v1050_v38, %v1051_v39  ;;  %v4513_v19 = vld [vmem:[%s5276_s19 + $0x40] sm:$0xf] }
  0x9e   : > { %823 = vst.msk [vmem:[#allocation2 + $0x18] sm:$0xf] %vm816_vm7, %v733_v49  ;;  %v247_v49 = vld [vmem:[%s5276_s19 + $0xa0] sm:$0xf]  ;;  %v4522_v38 = vld [vmem:[%s5276_s19 + $0x78] sm:$0xf] }
  0x9f   : > { %831 = vst.msk [vmem:[#allocation2 + $0x38] sm:$0xf] %vm816_vm7, %v749_v52  ;;  %v1055_v52 = vrot.slane %v895_v43, 5  ;;  %v4521_v39 = vld [vmem:[%s5276_s19 + $0x70] sm:$0xf] }
  0xa0   : > { %280 = vst.msk [vmem:[#allocation2 + $0x6c] sm:$0xf] %vm252_vm5, %v247_v49  ;;  %v4520_v40 = vld [vmem:[%s5276_s19 + $0x6c] sm:$0xf] }
  0xa1   : > { %v1057_v57 = vrot.slane %v1055_v52, 4  ;;  %v1056_v3 = vsel %vm5462_vm6, %v4503_v60, %v1055_v52  ;;  %v4526_v52 = vld [vmem:[%s5276_s19 + $0x90] sm:$0xf]  ;;  %v4531_v60 = vld [vmem:[%s5276_s19 + $0xac] sm:$0xf] }
  0xa2   : > { %1100 = vrot.lane.b32.xlu1 %v1021_v54, %s5225_s21  ;;  %v1045_v54 = vsel %vm5462_vm6, %v1043_v45, %v1044_v46  ;;  %v4524_v45 = vld [vmem:[%s5276_s19 + $0x84] sm:$0xf]  ;;  %v4523_v46 = vld [vmem:[%s5276_s19 + $0x7c] sm:$0xf] }
  0xa3   : > { %1098 = vrot.lane.b32.xlu0 %v1017_v56, %s5225_s21  ;;  %1096 = vrot.lane.b32.xlu2 %v1014_v59, %s5225_s21  ;;  %v1059_v2 = vsel %vm5462_vm6, %v1057_v57, %v1058_v58  ;;  %v1444_v58 = vshll.u32 %v4537_v53, 16 }
  0xa4   : > { %v741_v0 = vpop.permute.xlu1 %740 }
  0xa5   : > { %827 = vst.msk [vmem:[#allocation2 + $0x28] sm:$0xf] %vm816_vm7, %v741_v0  ;;  %v739_v4 = vpop.permute.xlu0 %738  ;;  %v755_v8 = vpop.permute.xlu2 %754  ;;  %v4504_v0 = vld [vmem:[%s5276_s19 + $0xc] sm:$0xf] }
  0xa6   : > { %826 = vst.msk [vmem:[#allocation2 + $0x24] sm:$0xf] %vm816_vm7, %v739_v4 }
  0xa7   : > { %834 = vst.msk [vmem:[#allocation2 + $0x44] sm:$0xf] %vm816_vm7, %v755_v8  ;;  %v4506_v8 = vld [vmem:[%s5276_s19 + $0x18] sm:$0xf] }
  0xaa   : > { %1106 = vrot.lane.b32.xlu1 %v1031_v10, %s5225_s21 }
  0xab   : > { %1104 = vrot.lane.b32.xlu0 %v1028_v12, %s5225_s21  ;;  %1102 = vrot.lane.b32.xlu2 %v1024_v16, %s5225_s21 }
  0xac   : > { %v747_v21 = vpop.permute.xlu1 %746 }
  0xad   : > { %830 = vst.msk [vmem:[#allocation2 + $0x34] sm:$0xf] %vm816_vm7, %v747_v21  ;;  %v745_v26 = vpop.permute.xlu0 %744  ;;  %v761_v29 = vpop.permute.xlu2 %760  ;;  %v4511_v21 = vld [vmem:[%s5276_s19 + $0x34] sm:$0xf] }
  0xae   : > { %829 = vst.msk [vmem:[#allocation2 + $0x30] sm:$0xf] %vm816_vm7, %v745_v26  ;;  %v4516_v26 = vld [vmem:[%s5276_s19 + $0x54] sm:$0xf] }
  0xaf   : > { %837 = vst.msk [vmem:[#allocation2 + $0x50] sm:$0xf] %vm816_vm7, %v761_v29 }
  0xb2   : > { %1112 = vrot.lane.b32.xlu1 %v1042_v31, %s5225_s21 }
  0xb3   : > { %1110 = vrot.lane.b32.xlu0 %v1038_v33, %s5225_s21  ;;  %1108 = vrot.lane.b32.xlu2 %v1035_v36, %s5225_s21  ;;  %v4518_v33 = vld [vmem:[%s5276_s19 + $0x60] sm:$0xf] }
  0xb4   : > { %v753_v41 = vpop.permute.xlu1 %752 }
  0xb5   : > { %833 = vst.msk [vmem:[#allocation2 + $0x40] sm:$0xf] %vm816_vm7, %v753_v41  ;;  %v751_v44 = vpop.permute.xlu0 %750  ;;  %v767_v48 = vpop.permute.xlu2 %766 }
  0xb6   : > { %832 = vst.msk [vmem:[#allocation2 + $0x3c] sm:$0xf] %vm816_vm7, %v751_v44  ;;  %v4525_v44 = vld [vmem:[%s5276_s19 + $0x88] sm:$0xf] }
  0xb7   : > { %840 = vst.msk [vmem:[#allocation2 + $0x5c] sm:$0xf] %vm816_vm7, %v767_v48 }
  0xba   : > { %1118 = vrot.lane.b32.xlu1 %v1052_v50, %s5225_s21  ;;  %v4528_v50 = vld [vmem:[%s5276_s19 + $0x9c] sm:$0xf] }
  0xbb   : > { %1116 = vrot.lane.b32.xlu0 %v1049_v51, %s5225_s21  ;;  %1114 = vrot.lane.b32.xlu2 %v1045_v54, %s5225_s21  ;;  %v4527_v51 = vld [vmem:[%s5276_s19 + $0x94] sm:$0xf] }
  0xbc   : > { %v759_v56 = vpop.permute.xlu1 %758 }
  0xbd   : > { %836 = vst.msk [vmem:[#allocation2 + $0x4c] sm:$0xf] %vm816_vm7, %v759_v56  ;;  %v757_v59 = vpop.permute.xlu0 %756  ;;  %v773_v62 = vpop.permute.xlu2 %772  ;;  %v4536_v56 = vld [vmem:[%s5276_s19 + $0xc] sm:$0xf] }
  0xbe   : > { %835 = vst.msk [vmem:[#allocation2 + $0x48] sm:$0xf] %vm816_vm7, %v757_v59  ;;  %v1448_v59 = vshrl.u32 %v4537_v53, 16  ;;  %v1438_v63 = vshll.u32 %v4536_v56, 16  ;;  %v4535_v53 = vld [vmem:[%s5276_s19 + $0xc4] sm:$0xf] }
  0xbf   : > { %843 = vst.msk [vmem:[#allocation2 + $0x68] sm:$0xf] %vm816_vm7, %v773_v62  ;;  %v1435_v62 = vshrl.u32 %v4536_v56, 16 }
  0xc2   : > { %1257 = vrot.lane.b32.xlu1 %v4504_v0, %s5226_s22  ;;  %v4529_v0 = vld [vmem:[%s5276_s19 + $0xa0] sm:$0xf] }
  0xc3   : > { %1122 = vrot.lane.b32.xlu0 %v1059_v2, %s5225_s21  ;;  %1120 = vrot.lane.b32.xlu2 %v1056_v3, %s5225_s21  ;;  %v5774_v2 = vrot.slane %v1444_v58, 5  ;;  %v1450_v3 = vrot.slane %v1448_v59, 4 }
  0xc4   : > { %v765_v4 = vpop.permute.xlu1 %764 }
  0xc5   : > { %839 = vst.msk [vmem:[#allocation2 + $0x58] sm:$0xf] %vm816_vm7, %v765_v4  ;;  %v763_v5 = vpop.permute.xlu0 %762  ;;  %v779_v6 = vpop.permute.xlu2 %778  ;;  %v4538_v4 = vld [vmem:[%s5276_s19 + $0x14] sm:$0x1] }
  0xc6   : > { %838 = vst.msk [vmem:[#allocation2 + $0x54] sm:$0xf] %vm816_vm7, %v763_v5 }
  0xc7   : > { %846 = vst.msk [vmem:[#allocation2 + $0x74] sm:$0xf] %vm816_vm7, %v779_v6  ;;  %v1437_v6 = vrot.slane %v1435_v62, 4  ;;  %v4551_v62 = vld [vmem:[%s5276_s19 + $0x48] sm:$0xf] }
  0xca   : > { %1263 = vrot.lane.b32.xlu1 %v4507_v7, %s5226_s22  ;;  %v1440_v7 = vrot.slane %v1438_v63, 5 }
  0xcb   : > { %1261 = vrot.lane.b32.xlu0 %v4506_v8, %s5226_s22  ;;  %1259 = vrot.lane.b32.xlu2 %v4505_v9, %s5226_s22  ;;  %v4542_v8 = vld [vmem:[%s5276_s19 + $0x24] sm:$0xf] }
  0xcc   : > { %v771_v10 = vpop.permute.xlu1 %770 }
  0xcd   : > { %842 = vst.msk [vmem:[#allocation2 + $0x64] sm:$0xf] %vm816_vm7, %v771_v10  ;;  %v769_v11 = vpop.permute.xlu0 %768  ;;  %v1061_v12 = vpop.permute.xlu2 %1060  ;;  %v4540_v10 = vld [vmem:[%s5276_s19 + $0x1c] sm:$0xf] }
  0xce   : > { %841 = vst.msk [vmem:[#allocation2 + $0x60] sm:$0xf] %vm816_vm7, %v769_v11  ;;  %v1451_v11 = vor.u32 %v1450_v3, %v5774_v2  ;;  %v4549_v3 = vld [vmem:[%s5276_s19 + $0x40] sm:$0xf] }
  0xcf   : > { %1157 = vst.msk [vmem:[#allocation2] sm:$0xf] %vm1156_vm8, %v1061_v12  ;;  %v1454_v12 = vshll.u32 %v4538_v4, 16 }
  0xd2   : > { %1269 = vrot.lane.b32.xlu1 %v4510_v13, %s5226_s22 }
  0xd3   : > { %1267 = vrot.lane.b32.xlu0 %v4509_v14, %s5226_s22  ;;  %1265 = vrot.lane.b32.xlu2 %v4508_v15, %s5226_s22  ;;  %v4539_v14 = vld [vmem:[%s5276_s19 + $0x18] sm:$0xf]  ;;  %v4534_v15 = vld [vmem:[%s5276_s19 + $0xc0] sm:$0xf] }
  0xd4   : > { %v777_v16 = vpop.permute.xlu1 %776 }
  0xd5   : > { %845 = vst.msk [vmem:[#allocation2 + $0x70] sm:$0xf] %vm816_vm7, %v777_v16  ;;  %v775_v17 = vpop.permute.xlu0 %774  ;;  %v1067_v18 = vpop.permute.xlu2 %1066  ;;  %v1483_v16 = vshrl.u32 %v4542_v8, 16 }
  0xd6   : > { %844 = vst.msk [vmem:[#allocation2 + $0x6c] sm:$0xf] %vm816_vm7, %v775_v17  ;;  %v1486_v17 = vshll.u32 %v4542_v8, 16 }
  0xd7   : > { %1160 = vst.msk [vmem:[#allocation2 + $0xc] sm:$0xf] %vm1156_vm8, %v1067_v18  ;;  %v4533_v18 = vld [vmem:[%s5276_s19 + $0xb8] sm:$0xf] }
  0xda   : > { %1275 = vrot.lane.b32.xlu1 %v4513_v19, %s5226_s22  ;;  %v1441_v19 = vor.u32 %v1440_v7, %v1437_v6  ;;  %v4548_v7 = vld [vmem:[%s5276_s19 + $0x3c] sm:$0xf] }
  0xdb   : > { %1273 = vrot.lane.b32.xlu0 %v4512_v20, %s5226_s22  ;;  %1271 = vrot.lane.b32.xlu2 %v4511_v21, %s5226_s22  ;;  %v1468_v20 = vshll.u32 %v4540_v10, 16  ;;  %v1472_v21 = vshrl.u32 %v4540_v10, 16 }
  0xdc   : > { %v783_v22 = vpop.permute.xlu1 %782 }
  0xdd   : > { %848 = vst.msk [vmem:[#allocation2 + $0x7c] sm:$0xf] %vm816_vm7, %v783_v22  ;;  %v781_v23 = vpop.permute.xlu0 %780  ;;  %v1073_v24 = vpop.permute.xlu2 %1072  ;;  %v4532_v22 = vld [vmem:[%s5276_s19 + $0xb4] sm:$0xf] }
  0xde   : > { %847 = vst.msk [vmem:[#allocation2 + $0x78] sm:$0xf] %vm816_vm7, %v781_v23  ;;  %v1459_v23 = vshrl.u32 %v4539_v14, 16 }
  0xdf   : > { %1163 = vst.msk [vmem:[#allocation2 + $0x18] sm:$0xf] %vm1156_vm8, %v1073_v24  ;;  %v1462_v24 = vshll.u32 %v4539_v14, 16 }
  0xe2   : > { %1281 = vrot.lane.b32.xlu1 %v4516_v26, %s5226_s22  ;;  %v1452_v26 = vrot.slane %v1451_v11, 4 }
  0xe3   : > { %1279 = vrot.lane.b32.xlu0 %v4515_v27, %s5226_s22  ;;  %1277 = vrot.lane.b32.xlu2 %v4514_v28, %s5226_s22  ;;  %v1456_v27 = vrot.slane %v1454_v12, 5  ;;  %v1485_v28 = vrot.slane %v1483_v16, 4  ;;  %v1555_v12 = vshrl.u32 %v4551_v62, 16  ;;  %v1540_v16 = vshll.u32 %v4549_v3, 16 }
  0xe4   : > { %v1065_v29 = vpop.permute.xlu1 %1064 }
  0xe5   : > { %1159 = vst.msk [vmem:[#allocation2 + $0x8] sm:$0xf] %vm1156_vm8, %v1065_v29  ;;  %v1063_v30 = vpop.permute.xlu0 %1062  ;;  %v1079_v31 = vpop.permute.xlu2 %1078  ;;  %v1488_v29 = vrot.slane %v1486_v17, 5  ;;  %v1544_v17 = vshrl.u32 %v4549_v3, 16 }
  0xe6   : > { %1158 = vst.msk [vmem:[#allocation2 + $0x4] sm:$0xf] %vm1156_vm8, %v1063_v30  ;;  %v4546_v30 = vld [vmem:[%s5276_s19 + $0x34] sm:$0xf] }
  0xe7   : > { %1166 = vst.msk [vmem:[#allocation2 + $0x24] sm:$0xf] %vm1156_vm8, %v1079_v31  ;;  %v4545_v31 = vld [vmem:[%s5276_s19 + $0x30] sm:$0xf] }
  0xea   : > { %1287 = vrot.lane.b32.xlu1 %v4519_v32, %s5226_s22 }
  0xeb   : > { %1285 = vrot.lane.b32.xlu0 %v4518_v33, %s5226_s22  ;;  %1283 = vrot.lane.b32.xlu2 %v4517_v34, %s5226_s22  ;;  %v1442_v33 = vrot.slane %v1441_v19, 4  ;;  %v4543_v34 = vld [vmem:[%s5276_s19 + $0x28] sm:$0xf]  ;;  %v4555_v19 = vld [vmem:[%s5276_s19 + $0x58] sm:$0xf] }
  0xec   : > { %v1071_v35 = vpop.permute.xlu1 %1070 }
  0xed   : > { %1162 = vst.msk [vmem:[#allocation2 + $0x14] sm:$0xf] %vm1156_vm8, %v1071_v35  ;;  %v1069_v36 = vpop.permute.xlu0 %1068  ;;  %v1085_v37 = vpop.permute.xlu2 %1084  ;;  %v5795_v35 = vrot.slane %v1468_v20, 5  ;;  %v1531_v20 = vshrl.u32 %v4548_v7, 16 }
  0xee   : > { %1161 = vst.msk [vmem:[#allocation2 + $0x10] sm:$0xf] %vm1156_vm8, %v1069_v36  ;;  %v1474_v36 = vrot.slane %v1472_v21, 4  ;;  %v1534_v21 = vshll.u32 %v4548_v7, 16  ;;  %v4558_v7 = vld [vmem:[%s5276_s19 + $0x64] sm:$0xf] }
  0xef   : > { %1169 = vst.msk [vmem:[#allocation2 + $0x30] sm:$0xf] %vm1156_vm8, %v1085_v37 }
  0xf2   : > { %1293 = vrot.lane.b32.xlu1 %v4522_v38, %s5226_s22  ;;  %v4541_v38 = vld [vmem:[%s5276_s19 + $0x20] sm:$0x1] }
  0xf3   : > { %1291 = vrot.lane.b32.xlu0 %v4521_v39, %s5226_s22  ;;  %1289 = vrot.lane.b32.xlu2 %v4520_v40, %s5226_s22  ;;  %v1461_v39 = vrot.slane %v1459_v23, 4  ;;  %v1464_v40 = vrot.slane %v1462_v24, 5 }
  0xf4   : > { %v1077_v41 = vpop.permute.xlu1 %1076 }
  0xf5   : > { %1165 = vst.msk [vmem:[#allocation2 + $0x20] sm:$0xf] %vm1156_vm8, %v1077_v41  ;;  %v1075_v42 = vpop.permute.xlu0 %1074  ;;  %v1091_v43 = vpop.permute.xlu2 %1090 }
  0xf6   : > { %1164 = vst.msk [vmem:[#allocation2 + $0x1c] sm:$0xf] %vm1156_vm8, %v1075_v42  ;;  %v1516_v42 = vshll.u32 %v4546_v30, 16 }
  0xf7   : > { %1172 = vst.msk [vmem:[#allocation2 + $0x3c] sm:$0xf] %vm1156_vm8, %v1091_v43  ;;  %v1520_v43 = vshrl.u32 %v4546_v30, 16  ;;  %v1557_v30 = vrot.slane %v1555_v12, 4 }
  0xf9   : > { %v1522_v56 = vrot.slane %v1520_v43, 4 }
  0xfa   : > { %1299 = vrot.lane.b32.xlu1 %v4525_v44, %s5226_s22  ;;  %v1507_v44 = vshrl.u32 %v4545_v31, 16 }
  0xfb   : > { %1297 = vrot.lane.b32.xlu0 %v4524_v45, %s5226_s22  ;;  %1295 = vrot.lane.b32.xlu2 %v4523_v46, %s5226_s22  ;;  %v1510_v45 = vshll.u32 %v4545_v31, 16  ;;  %v1457_v46 = vsel %vm5287_vm2, %v1452_v26, %v1456_v27 }
  0xfc   : > { %v1083_v47 = vpop.permute.xlu1 %1082 }
  0xfd   : > { %1168 = vst.msk [vmem:[#allocation2 + $0x2c] sm:$0xf] %vm1156_vm8, %v1083_v47  ;;  %v1081_v48 = vpop.permute.xlu0 %1080  ;;  %v1097_v49 = vpop.permute.xlu2 %1096  ;;  %v1489_v47 = vor.u32 %v1488_v29, %v1485_v28  ;;  %v1512_v58 = vrot.slane %v1510_v45, 5  ;;  %v4552_v29 = vld [vmem:[%s5276_s19 + $0x4c] sm:$0xf] }
  0xfe   : > { %1167 = vst.msk [vmem:[#allocation2 + $0x28] sm:$0xf] %vm1156_vm8, %v1081_v48  ;;  %v1492_v48 = vshll.u32 %v4543_v34, 16 }
  0xff   : > { %1175 = vst.msk [vmem:[#allocation2 + $0x48] sm:$0xf] %vm1156_vm8, %v1097_v49  ;;  %v1447_v49 = vsel %vm5287_vm2, %v1442_v33, %v5774_v2  ;;  %v1490_v59 = vrot.slane %v1489_v47, 4  ;;  %v5834_v33 = vrot.slane %v1540_v16, 5 }
 0x102   : > { %1305 = vrot.lane.b32.xlu1 %v4528_v50, %s5226_s22  ;;  %v1475_v50 = vor.u32 %v1474_v36, %v5795_v35  ;;  %v1588_v36 = vshll.u32 %v4555_v19, 16 }
 0x103   : > { %1303 = vrot.lane.b32.xlu0 %v4527_v51, %s5226_s22  ;;  %1301 = vrot.lane.b32.xlu2 %v4526_v52, %s5226_s22  ;;  %v1478_v51 = vshll.u32 %v4541_v38, 16  ;;  %v1496_v52 = vshrl.u32 %v4543_v34, 16  ;;  %v1546_v34 = vrot.slane %v1544_v17, 4  ;;  %v4554_v38 = vld [vmem:[%s5276_s19 + $0x54] sm:$0xf]  ;;  %v1612_v17 = vshll.u32 %v4558_v7, 16 }
 0x104   : > { %v1089_v54 = vpop.permute.xlu1 %1088 }
 0x105   : > { %1171 = vst.msk [vmem:[#allocation2 + $0x38] sm:$0xf] %vm1156_vm8, %v1089_v54  ;;  %v1087_v55 = vpop.permute.xlu0 %1086  ;;  %v1103_v57 = vpop.permute.xlu2 %1102  ;;  %v1465_v54 = vor.u32 %v1464_v40, %v1461_v39  ;;  %v1480_v2 = vrot.slane %v1478_v51, 5  ;;  %v1498_v6 = vrot.slane %v1496_v52, 4  ;;  %v1533_v39 = vrot.slane %v1531_v20, 4 }
 0x106   : > { %1170 = vst.msk [vmem:[#allocation2 + $0x34] sm:$0xf] %vm1156_vm8, %v1087_v55  ;;  %v5809_v55 = vrot.slane %v1516_v42, 5  ;;  %v1536_v40 = vrot.slane %v1534_v21, 5  ;;  %v1579_v51 = vshrl.u32 %v4554_v38, 16  ;;  %v5847_v52 = vrot.slane %v1588_v36, 5 }
 0x107   : > { %1178 = vst.msk [vmem:[#allocation2 + $0x54] sm:$0xf] %vm1156_vm8, %v1103_v57  ;;  %v1509_v57 = vrot.slane %v1507_v44, 4 }
 0x108   : > { %v1523_v8 = vor.u32 %v1522_v56, %v5809_v55  ;;  %v1537_v56 = vor.u32 %v1536_v40, %v1533_v39 }
 0x109   : > { %v1513_v10 = vor.u32 %v1512_v58, %v1509_v57  ;;  %v1568_v57 = vshrl.u32 %v4552_v29, 16 }
 0x10a   : > { %1311 = vrot.lane.b32.xlu1 %v4531_v60, %s5226_s22  ;;  %v1494_v60 = vrot.slane %v1492_v48, 5  ;;  %v1524_v26 = vrot.slane %v1523_v8, 4 }
 0x10b   : > { %1309 = vrot.lane.b32.xlu0 %v4530_v61, %s5226_s22  ;;  %1307 = vrot.lane.b32.xlu2 %v4529_v0, %s5226_s22  ;;  %v4547_v61 = vld [vmem:[%s5276_s19 + $0x38] sm:$0x1]  ;;  %v1476_v0 = vrot.slane %v1475_v50, 4  ;;  %v1514_v28 = vrot.slane %v1513_v10, 4 }
 0x10c   : > { %v1095_v5 = vpop.permute.xlu1 %1094  ;;  %v1495_v14 = vsel %vm5287_vm2, %v1490_v59, %v1494_v60  ;;  %v1499_v23 = vor.u32 %v1498_v6, %v1494_v60  ;;  %v4560_v60 = vld [vmem:[%s5276_s19 + $0x6c] sm:$0xf]  ;;  %v1538_v6 = vrot.slane %v1537_v56, 4 }
 0x10d   : > { %1174 = vst.msk [vmem:[#allocation2 + $0x44] sm:$0xf] %vm1156_vm8, %v1095_v5  ;;  %v1093_v9 = vpop.permute.xlu0 %1092  ;;  %v1109_v13 = vpop.permute.xlu2 %1108  ;;  %v1466_v5 = vrot.slane %v1465_v54, 4  ;;  %v1519_v45 = vsel %vm5287_vm2, %v1514_v28, %v5809_v55  ;;  %v1582_v54 = vshll.u32 %v4554_v38, 16  ;;  %v4556_v55 = vld [vmem:[%s5276_s19 + $0x5c] sm:$0x1] }
 0x10e   : > { %1173 = vst.msk [vmem:[#allocation2 + $0x40] sm:$0xf] %vm1156_vm8, %v1093_v9  ;;  %v1526_v9 = vshll.u32 %v4547_v61, 16  ;;  %v1500_v42 = vrot.slane %v1499_v23, 4  ;;  %v1630_v10 = vshll.u32 %v4560_v60, 16 }
 0x10f   : > { %1181 = vst.msk [vmem:[#allocation2 + $0x60] sm:$0xf] %vm1156_vm8, %v1109_v13  ;;  %v4544_v13 = vld [vmem:[%s5276_s19 + $0x2c] sm:$0x1]  ;;  %v4559_v38 = vld [vmem:[%s5276_s19 + $0x68] sm:$0x1] }
 0x110   : > { %v1502_v24 = vshll.u32 %v4544_v13, 16  ;;  %v1528_v27 = vrot.slane %v1526_v9, 5  ;;  %v1627_v9 = vshrl.u32 %v4560_v60, 16  ;;  %v4553_v13 = vld [vmem:[%s5276_s19 + $0x50] sm:$0x1] }
 0x112   : > { %1317 = vrot.lane.b32.xlu1 %v4534_v15, %s5226_s22  ;;  %v1558_v15 = vshll.u32 %v4551_v62, 16  ;;  %v1504_v43 = vrot.slane %v1502_v24, 5  ;;  %v1529_v44 = vsel %vm5287_vm2, %v1524_v26, %v1528_v27  ;;  %v1574_v24 = vshll.u32 %v4553_v13, 16 }
 0x113   : > { %1315 = vrot.lane.b32.xlu0 %v4533_v18, %s5226_s22  ;;  %1313 = vrot.lane.b32.xlu2 %v4532_v22, %s5226_s22  ;;  %v1481_v18 = vsel %vm5287_vm2, %v1476_v0, %v1480_v2  ;;  %v1471_v22 = vsel %vm5287_vm2, %v1466_v5, %v5795_v35  ;;  %v1592_v35 = vshrl.u32 %v4555_v19, 16  ;;  %v1581_v0 = vrot.slane %v1579_v51, 4 }
 0x114   : > { %v1101_v32 = vpop.permute.xlu1 %1100  ;;  %v1560_v31 = vrot.slane %v1558_v15, 5  ;;  %v1505_v58 = vsel %vm5287_vm2, %v1500_v42, %v1504_v43  ;;  %v1584_v5 = vrot.slane %v1582_v54, 5  ;;  %v1629_v28 = vrot.slane %v1627_v9, 4  ;;  %v4566_v9 = vld [vmem:[%s5276_s19 + $0x84] sm:$0xf] }
 0x115   : > { %1177 = vst.msk [vmem:[#allocation2 + $0x50] sm:$0xf] %vm1156_vm8, %v1101_v32  ;;  %v1099_v37 = vpop.permute.xlu0 %1098  ;;  %v1115_v41 = vpop.permute.xlu2 %1114  ;;  %v4550_v32 = vld [vmem:[%s5276_s19 + $0x44] sm:$0x1] }
 0x116   : > { %1176 = vst.msk [vmem:[#allocation2 + $0x4c] sm:$0xf] %vm1156_vm8, %v1099_v37  ;;  %v1561_v48 = vor.u32 %v1560_v31, %v1557_v30  ;;  %v1550_v50 = vshll.u32 %v4550_v32, 16  ;;  %v1585_v21 = vor.u32 %v1584_v5, %v1581_v0  ;;  %v5872_v30 = vrot.slane %v1612_v17, 5  ;;  %v4564_v32 = vld [vmem:[%s5276_s19 + $0x7c] sm:$0xf] }
 0x117   : > { %1184 = vst.msk [vmem:[#allocation2 + $0x6c] sm:$0xf] %vm1156_vm8, %v1115_v41  ;;  %v4567_v5 = vld [vmem:[%s5276_s19 + $0x88] sm:$0xf] }
 0x118   : > { %v1562_v61 = vrot.slane %v1561_v48, 4 }
 0x11a   : > { %1820 = vrot.lane.b32.xlu1 %v1457_v46, %s5227_s23  ;;  %v1564_v46 = vshll.u32 %v4552_v29, 16  ;;  %v1632_v29 = vrot.slane %v1630_v10, 5 }
 0x11b   : > { %1818 = vrot.lane.b32.xlu0 %v1447_v49, %s5227_s23  ;;  %1319 = vrot.lane.b32.xlu2 %v4535_v53, %s5226_s22  ;;  %v1547_v49 = vor.u32 %v1546_v34, %v5834_v33  ;;  %v1594_v53 = vrot.slane %v1592_v35, 4  ;;  %v4563_v34 = vld [vmem:[%s5276_s19 + $0x78] sm:$0xf]  ;;  %v4561_v35 = vld [vmem:[%s5276_s19 + $0x70] sm:$0xf] }
 0x11c   : > { %v1107_v63 = vpop.permute.xlu1 %1106  ;;  %v1566_v59 = vrot.slane %v1564_v46, 5  ;;  %v1664_v46 = vshrl.u32 %v4564_v32, 16  ;;  %v1654_v48 = vshll.u32 %v4563_v34, 16  ;;  %v1640_v56 = vshrl.u32 %v4561_v35, 16 }
 0x11d   : > { %1180 = vst.msk [vmem:[#allocation2 + $0x5c] sm:$0xf] %vm1156_vm8, %v1107_v63  ;;  %v1105_v4 = vpop.permute.xlu0 %1104  ;;  %v1121_v11 = vpop.permute.xlu2 %1120  ;;  %v1548_v62 = vrot.slane %v1547_v49, 4  ;;  %v1552_v63 = vrot.slane %v1550_v50, 5  ;;  %v1595_v3 = vor.u32 %v1594_v53, %v5847_v52  ;;  %v1633_v49 = vor.u32 %v1632_v29, %v1629_v28 }
 0x11e   : > { %1179 = vst.msk [vmem:[#allocation2 + $0x58] sm:$0xf] %vm1156_vm8, %v1105_v4  ;;  %v1598_v4 = vshll.u32 %v4556_v55, 16  ;;  %v1567_v15 = vsel %vm5287_vm2, %v1562_v61, %v1566_v59  ;;  %v1636_v50 = vshll.u32 %v4561_v35, 16  ;;  %v1622_v53 = vshll.u32 %v4559_v38, 16 }
 0x11f   : > { %1187 = vst.msk [vmem:[#allocation2 + $0x78] sm:$0xf] %vm1156_vm8, %v1121_v11  ;;  %v1570_v11 = vrot.slane %v1568_v57, 4  ;;  %v1553_v16 = vsel %vm5287_vm2, %v1548_v62, %v1552_v63  ;;  %v1596_v19 = vrot.slane %v1595_v3, 4  ;;  %v1656_v61 = vrot.slane %v1654_v48, 5 }
 0x120   : > { %v1600_v20 = vrot.slane %v1598_v4, 5  ;;  %v1634_v62 = vrot.slane %v1633_v49, 4  ;;  %v1638_v63 = vrot.slane %v1636_v50, 5  ;;  %v1624_v0 = vrot.slane %v1622_v53, 5  ;;  %v4569_v4 = vld [vmem:[%s5276_s19 + $0x90] sm:$0xf] }
 0x121   : > { %v1571_v23 = vor.u32 %v1570_v11, %v1566_v59  ;;  %v1666_v59 = vrot.slane %v1664_v46, 4  ;;  %v1699_v17 = vshrl.u32 %v4569_v4, 16 }
 0x122   : > { %1826 = vrot.lane.b32.xlu1 %v1495_v14, %s5227_s23  ;;  %v4557_v14 = vld [vmem:[%s5276_s19 + $0x60] sm:$0xf] }
 0x123   : > { %1824 = vrot.lane.b32.xlu0 %v1481_v18, %s5227_s23  ;;  %1822 = vrot.lane.b32.xlu2 %v1471_v22, %s5227_s23  ;;  %v1616_v18 = vshrl.u32 %v4558_v7, 16  ;;  %v1543_v22 = vsel %vm5287_vm2, %v1538_v6, %v5834_v33  ;;  %v1603_v26 = vshrl.u32 %v4557_v14, 16  ;;  %v1606_v27 = vshll.u32 %v4557_v14, 16  ;;  %v4562_v14 = vld [vmem:[%s5276_s19 + $0x74] sm:$0x1] }
 0x124   : > { %v1113_v37 = vpop.permute.xlu1 %1112  ;;  %v1601_v33 = vsel %vm5287_vm2, %v1596_v19, %v1600_v20  ;;  %v1572_v40 = vrot.slane %v1571_v23, 4  ;;  %v1684_v19 = vshll.u32 %v4567_v5, 16  ;;  %v1688_v20 = vshrl.u32 %v4567_v5, 16 }
 0x125   : > { %1183 = vst.msk [vmem:[#allocation2 + $0x68] sm:$0xf] %vm1156_vm8, %v1113_v37  ;;  %v1111_v41 = vpop.permute.xlu0 %1110  ;;  %v1260_v47 = vpop.permute.xlu2 %1259  ;;  %v1618_v31 = vrot.slane %v1616_v18, 4  ;;  %v1586_v37 = vrot.slane %v1585_v21, 4  ;;  %v1605_v42 = vrot.slane %v1603_v26, 4  ;;  %v1608_v43 = vrot.slane %v1606_v27, 5 }
 0x126   : > { %1182 = vst.msk [vmem:[#allocation2 + $0x64] sm:$0xf] %vm1156_vm8, %v1111_v41  ;;  %v1576_v41 = vrot.slane %v1574_v24, 5  ;;  %v1702_v18 = vshll.u32 %v4569_v4, 16  ;;  %v1675_v21 = vshrl.u32 %v4566_v9, 16  ;;  %v1646_v26 = vshll.u32 %v4562_v14, 16 }
 0x127   : > { %1355 = vst.msk [vmem:[#allocation2 + $0x4] sm:$0xf] %vm1353_vm9, %v1260_v47  ;;  %v1651_v47 = vshrl.u32 %v4563_v34, 16  ;;  %v1619_v51 = vor.u32 %v1618_v31, %v5872_v30  ;;  %v1591_v54 = vsel %vm5287_vm2, %v1586_v37, %v5847_v52  ;;  %v1701_v31 = vrot.slane %v1699_v17, 4  ;;  %v4573_v34 = vld [vmem:[%s5276_s19 + $0xa0] sm:$0xf] }
 0x128   : > { %v1577_v57 = vsel %vm5287_vm2, %v1572_v40, %v1576_v41  ;;  %v4570_v37 = vld [vmem:[%s5276_s19 + $0x94] sm:$0xf]  ;;  %v5917_v35 = vrot.slane %v1684_v19, 5  ;;  %v1677_v38 = vrot.slane %v1675_v21, 4  ;;  %v4568_v41 = vld [vmem:[%s5276_s19 + $0x8c] sm:$0x1] }
 0x129   : > { %v1653_v60 = vrot.slane %v1651_v47, 4  ;;  %v1620_v52 = vrot.slane %v1619_v51, 4  ;;  %v1736_v46 = vshrl.u32 %v4573_v34, 16  ;;  %v1708_v51 = vshll.u32 %v4570_v37, 16  ;;  %v4571_v14 = vld [vmem:[%s5276_s19 + $0x98] sm:$0x1] }
 0x12a   : > { %1832 = vrot.lane.b32.xlu1 %v1529_v44, %s5227_s23 }
 0x12b   : > { %1830 = vrot.lane.b32.xlu0 %v1519_v45, %s5227_s23  ;;  %1828 = vrot.lane.b32.xlu2 %v1505_v58, %s5227_s23  ;;  %v1660_v45 = vshll.u32 %v4564_v32, 16  ;;  %v1609_v58 = vor.u32 %v1608_v43, %v1605_v42  ;;  %v1704_v32 = vrot.slane %v1702_v18, 5  ;;  %v1648_v43 = vrot.slane %v1646_v26, 5 }
 0x12c   : > { %v1119_v2 = vpop.permute.xlu1 %1118 }
 0x12d   : > { %1186 = vst.msk [vmem:[#allocation2 + $0x74] sm:$0xf] %vm1156_vm8, %v1119_v2  ;;  %v1117_v8 = vpop.permute.xlu0 %1116  ;;  %v1266_v12 = vpop.permute.xlu2 %1265  ;;  %v5891_v55 = vrot.slane %v1660_v45, 5  ;;  %v4565_v2 = vld [vmem:[%s5276_s19 + $0x80] sm:$0x1]  ;;  %v1610_v7 = vrot.slane %v1609_v58, 4  ;;  %v1705_v50 = vor.u32 %v1704_v32, %v1701_v31 }
 0x12e   : > { %1185 = vst.msk [vmem:[#allocation2 + $0x70] sm:$0xf] %vm1156_vm8, %v1117_v8  ;;  %v1642_v8 = vrot.slane %v1640_v56, 4  ;;  %v1670_v11 = vshll.u32 %v4565_v2, 16  ;;  %v1732_v45 = vshll.u32 %v4573_v34, 16  ;;  %v1694_v56 = vshll.u32 %v4568_v41, 16 }
 0x12f   : > { %1358 = vst.msk [vmem:[#allocation2 + $0x10] sm:$0xf] %vm1353_vm9, %v1266_v12  ;;  %v1667_v10 = vor.u32 %v1666_v59, %v5891_v55  ;;  %v1657_v12 = vor.u32 %v1656_v61, %v1653_v60  ;;  %v1615_v23 = vsel %vm5287_vm2, %v1610_v7, %v5872_v30  ;;  %v1690_v30 = vrot.slane %v1688_v20, 4  ;;  %v4574_v60 = vld [vmem:[%s5276_s19 + $0xa4] sm:$0x1] }
 0x130   : > { %v1643_v24 = vor.u32 %v1642_v8, %v1638_v63  ;;  %v1672_v28 = vrot.slane %v1670_v11, 5  ;;  %v1712_v58 = vshrl.u32 %v4570_v37, 16  ;;  %v5933_v61 = vrot.slane %v1732_v45, 5  ;;  %v4579_v32 = vld [vmem:[%s5276_s19 + $0xb8] sm:$0xf] }
 0x131   : > { %v1668_v27 = vrot.slane %v1667_v10, 4  ;;  %v1658_v29 = vrot.slane %v1657_v12, 4  ;;  %v1696_v4 = vrot.slane %v1694_v56, 5  ;;  %v1742_v8 = vshll.u32 %v4574_v60, 16 }
 0x132   : > { %1838 = vrot.lane.b32.xlu1 %v1567_v15, %s5227_s23  ;;  %v1639_v15 = vsel %vm5287_vm2, %v1634_v62, %v1638_v63  ;;  %v1644_v42 = vrot.slane %v1643_v24, 4  ;;  %v1738_v62 = vrot.slane %v1736_v46, 4  ;;  %v1714_v10 = vrot.slane %v1712_v58, 4 }
 0x133   : > { %1836 = vrot.lane.b32.xlu0 %v1553_v16, %s5227_s23  ;;  %1834 = vrot.lane.b32.xlu2 %v1543_v22, %s5227_s23  ;;  %v1625_v16 = vsel %vm5287_vm2, %v1620_v52, %v1624_v0  ;;  %v1678_v22 = vshll.u32 %v4566_v9, 16  ;;  %v1673_v49 = vsel %vm5287_vm2, %v1668_v27, %v1672_v28  ;;  %v1663_v53 = vsel %vm5287_vm2, %v1658_v29, %v5891_v55  ;;  %v4576_v9 = vld [vmem:[%s5276_s19 + $0xac] sm:$0xf] }
 0x134   : > { %v1258_v36 = vpop.permute.xlu1 %1257  ;;  %v1649_v59 = vsel %vm5287_vm2, %v1644_v42, %v1648_v43  ;;  %v1706_v55 = vrot.slane %v1705_v50, 4  ;;  %v1710_v0 = vrot.slane %v1708_v51, 5  ;;  %v1739_v11 = vor.u32 %v1738_v62, %v5933_v61 }
 0x135   : > { %1354 = vst.msk [vmem:[#allocation2] sm:$0xf] %vm1353_vm9, %v1258_v36  ;;  %v1123_v39 = vpop.permute.xlu0 %1122  ;;  %v1272_v44 = vpop.permute.xlu2 %1271  ;;  %v4572_v36 = vld [vmem:[%s5276_s19 + $0x9c] sm:$0xf]  ;;  %v1756_v21 = vshll.u32 %v4576_v9, 16  ;;  %v1718_v24 = vshll.u32 %v4571_v14, 16 }
 0x136   : > { %1188 = vst.msk [vmem:[#allocation2 + $0x7c] sm:$0xf] %vm1156_vm8, %v1123_v39  ;;  %v1680_v39 = vrot.slane %v1678_v22, 5  ;;  %v1723_v47 = vshrl.u32 %v4572_v36, 16  ;;  %v1726_v48 = vshll.u32 %v4572_v36, 16  ;;  %v1760_v22 = vshrl.u32 %v4576_v9, 16 }
 0x137   : > { %1361 = vst.msk [vmem:[#allocation2 + $0x1c] sm:$0xf] %vm1353_vm9, %v1272_v44  ;;  %v1740_v28 = vrot.slane %v1739_v11, 4  ;;  %v1744_v29 = vrot.slane %v1742_v8, 5  ;;  %v1720_v42 = vrot.slane %v1718_v24, 5  ;;  %v1784_v58 = vshrl.u32 %v4579_v32, 16 }
 0x138   : > { %v1725_v63 = vrot.slane %v1723_v47, 4  ;;  %v1728_v52 = vrot.slane %v1726_v48, 5  ;;  %v4585_v24 = vld [vmem:[%s5276_s19 + $0x10] sm:$0xf] }
 0x139   : > { %v1745_v45 = vsel %vm5287_vm2, %v1740_v28, %v1744_v29  ;;  %v1786_v8 = vrot.slane %v1784_v58, 4 }
 0x13a   : > { %1844 = vrot.lane.b32.xlu1 %v1601_v33, %s5227_s23  ;;  %v1729_v12 = vor.u32 %v1728_v52, %v1725_v63 }
 0x13b   : > { %1842 = vrot.lane.b32.xlu0 %v1591_v54, %s5227_s23  ;;  %1840 = vrot.lane.b32.xlu2 %v1577_v57, %s5227_s23  ;;  %v1691_v54 = vor.u32 %v1690_v30, %v5917_v35  ;;  %v1681_v57 = vor.u32 %v1680_v39, %v1677_v38  ;;  %v1762_v30 = vrot.slane %v1760_v22, 4  ;;  %v4582_v38 = vld [vmem:[%s5276_s19 + $0xc4] sm:$0xf]  ;;  %v4581_v39 = vld [vmem:[%s5276_s19 + $0xc0] sm:$0xf] }
 0x13c   : > { %v1264_v3 = vpop.permute.xlu1 %1263  ;;  %v1730_v31 = vrot.slane %v1729_v12, 4  ;;  %v1804_v50 = vshll.u32 %v4582_v38, 16  ;;  %v1808_v51 = vshrl.u32 %v4582_v38, 16  ;;  %v1795_v56 = vshrl.u32 %v4581_v39, 16 }
 0x13d   : > { %1357 = vst.msk [vmem:[#allocation2 + $0xc] sm:$0xf] %vm1353_vm9, %v1264_v3  ;;  %v1262_v6 = vpop.permute.xlu0 %1261  ;;  %v1278_v13 = vpop.permute.xlu2 %1277  ;;  %v1692_v3 = vrot.slane %v1691_v54, 4  ;;  %v1682_v5 = vrot.slane %v1681_v57, 4  ;;  %v1798_v57 = vshll.u32 %v4581_v39, 16 }
 0x13e   : > { %1356 = vst.msk [vmem:[#allocation2 + $0x8] sm:$0xf] %vm1353_vm9, %v1262_v6  ;;  %v4578_v6 = vld [vmem:[%s5276_s19 + $0xb4] sm:$0xf]  ;;  %v1735_v46 = vsel %vm5287_vm2, %v1730_v31, %v5933_v61  ;;  %v1806_v63 = vrot.slane %v1804_v50, 5  ;;  %v1810_v52 = vrot.slane %v1808_v51, 4 }
 0x13f   : > { %1364 = vst.msk [vmem:[#allocation2 + $0x28] sm:$0xf] %vm1353_vm9, %v1278_v13  ;;  %v1771_v17 = vshrl.u32 %v4578_v6, 16  ;;  %v1774_v18 = vshll.u32 %v4578_v6, 16  ;;  %v1697_v19 = vsel %vm5287_vm2, %v1692_v3, %v1696_v4  ;;  %v1687_v20 = vsel %vm5287_vm2, %v1682_v5, %v5917_v35  ;;  %v4583_v3 = vld [vmem:[%s5276_s19 + $0xc8] sm:$0x1] }
 0x140   : > { %v1758_v35 = vrot.slane %v1756_v21, 5  ;;  %v1797_v4 = vrot.slane %v1795_v56, 4  ;;  %v1800_v5 = vrot.slane %v1798_v57, 5  ;;  %v1811_v12 = vor.u32 %v1810_v52, %v1806_v63  ;;  %v4590_v50 = vld [vmem:[%s5276_s19 + $0x24] sm:$0xe] }
 0x141   : > { %v1773_v34 = vrot.slane %v1771_v17, 4  ;;  %v1776_v36 = vrot.slane %v1774_v18, 5  ;;  %v4634_v58 = vrot.slane %v4590_v50, 9 }
 0x142   : > { %1850 = vrot.lane.b32.xlu1 %v1639_v15, %s5227_s23  ;;  %v4575_v15 = vld [vmem:[%s5276_s19 + $0xa8] sm:$0xf] }
 0x143   : > { %1848 = vrot.lane.b32.xlu0 %v1625_v16, %s5227_s23  ;;  %1846 = vrot.lane.b32.xlu2 %v1615_v23, %s5227_s23  ;;  %v1711_v16 = vsel %vm5287_vm2, %v1706_v55, %v1710_v0  ;;  %v1715_v23 = vor.u32 %v1714_v10, %v1710_v0  ;;  %v1747_v26 = vshrl.u32 %v4575_v15, 16  ;;  %v1750_v27 = vshll.u32 %v4575_v15, 16  ;;  %v4580_v10 = vld [vmem:[%s5276_s19 + $0xbc] sm:$0x1] }
 0x144   : > { %v1270_v33 = vpop.permute.xlu1 %1269  ;;  %v1777_v48 = vor.u32 %v1776_v36, %v1773_v34  ;;  %v1801_v15 = vor.u32 %v1800_v5, %v1797_v4  ;;  %v1790_v18 = vshll.u32 %v4580_v10, 16  ;;  %v4588_v34 = vld [vmem:[%s5276_s19 + $0x1c] sm:$0xf]  ;;  %v2045_v36 = vrot.slane %v4585_v24, 5  ;;  %v4595_v4 = vld [vmem:[%s5276_s19 + $0x38] sm:$0x1] }
 0x145   : > { %1360 = vst.msk [vmem:[#allocation2 + $0x18] sm:$0xf] %vm1353_vm9, %v1270_v33  ;;  %v1268_v40 = vpop.permute.xlu0 %1267  ;;  %v1284_v44 = vpop.permute.xlu2 %1283  ;;  %v4577_v33 = vld [vmem:[%s5276_s19 + $0xb0] sm:$0x1]  ;;  %v1716_v41 = vrot.slane %v1715_v23, 4  ;;  %v1749_v43 = vrot.slane %v1747_v26, 4 }
 0x146   : > { %1359 = vst.msk [vmem:[#allocation2 + $0x14] sm:$0xf] %vm1353_vm9, %v1268_v40  ;;  %v1766_v54 = vshll.u32 %v4577_v33, 16  ;;  %v1778_v61 = vrot.slane %v1777_v48, 4  ;;  %v1802_v22 = vrot.slane %v1801_v15, 4  ;;  %v2052_v38 = vrot.slane %v4588_v34, 5 }
 0x147   : > { %1367 = vst.msk [vmem:[#allocation2 + $0x34] sm:$0xf] %vm1353_vm9, %v1284_v44  ;;  %v1752_v44 = vrot.slane %v1750_v27, 5  ;;  %v1792_v27 = vrot.slane %v1790_v18, 5  ;;  %v4586_v33 = vld [vmem:[%s5276_s19 + $0x14] sm:$0x1] }
 0x148   : > { %v1807_v31 = vsel %vm5287_vm2, %v1802_v22, %v1806_v63  ;;  %v4598_v22 = vld [vmem:[%s5276_s19 + $0x44] sm:$0x1] }
 0x149   : > { %v1753_v60 = vor.u32 %v1752_v44, %v1749_v43 }
 0x14a   : > { %1856 = vrot.lane.b32.xlu1 %v1673_v49, %s5227_s23  ;;  %v1780_v49 = vshll.u32 %v4579_v32, 16  ;;  %v4587_v32 = vld [vmem:[%s5276_s19 + $0x18] sm:$0xe] }
 0x14b   : > { %1854 = vrot.lane.b32.xlu0 %v1663_v53, %s5227_s23  ;;  %1852 = vrot.lane.b32.xlu2 %v1649_v59, %s5227_s23  ;;  %v1763_v53 = vor.u32 %v1762_v30, %v1758_v35  ;;  %v1721_v59 = vsel %vm5287_vm2, %v1716_v41, %v1720_v42  ;;  %v4633_v30 = vrot.slane %v4587_v32, 9  ;;  %v2048_v41 = vrot.slane %v4586_v33, 5  ;;  %v4591_v42 = vld [vmem:[%s5276_s19 + $0x28] sm:$0xf] }
 0x14c   : > { %v1276_v2 = vpop.permute.xlu1 %1275  ;;  %v1782_v62 = vrot.slane %v1780_v49, 5  ;;  %v4592_v49 = vld [vmem:[%s5276_s19 + $0x2c] sm:$0x1]  ;;  %v2076_v32 = vrot.slane %v4598_v22, 5 }
 0x14d   : > { %1363 = vst.msk [vmem:[#allocation2 + $0x24] sm:$0xf] %vm1353_vm9, %v1276_v2  ;;  %v1274_v7 = vpop.permute.xlu0 %1273  ;;  %v1290_v13 = vpop.permute.xlu2 %1289  ;;  %v1764_v0 = vrot.slane %v1763_v53, 4  ;;  %v1768_v2 = vrot.slane %v1766_v54, 5  ;;  %v4589_v53 = vld [vmem:[%s5276_s19 + $0x20] sm:$0x1] }
 0x14e   : > { %1362 = vst.msk [vmem:[#allocation2 + $0x20] sm:$0xf] %vm1353_vm9, %v1274_v7  ;;  %v1754_v7 = vrot.slane %v1753_v60, 4  ;;  %v1783_v11 = vsel %vm5287_vm2, %v1778_v61, %v1782_v62  ;;  %v1787_v17 = vor.u32 %v1786_v8, %v1782_v62  ;;  %v2062_v56 = vrot.slane %v4592_v49, 5  ;;  %v4594_v60 = vld [vmem:[%s5276_s19 + $0x34] sm:$0xf] }
 0x14f   : > { %1370 = vst.msk [vmem:[#allocation2 + $0x40] sm:$0xf] %vm1353_vm9, %v1290_v13  ;;  %v1814_v13 = vshll.u32 %v4583_v3, 16  ;;  %v1769_v14 = vsel %vm5287_vm2, %v1764_v0, %v1768_v2  ;;  %v2054_v61 = vrot.slane %v2052_v38, 4  ;;  %v2055_v62 = vrot.slane %v4589_v53, 5 }
 0x150   : > { %v1788_v26 = vrot.slane %v1787_v17, 4  ;;  %v4596_v0 = vld [vmem:[%s5276_s19 + $0x3c] sm:$0xe]  ;;  %v4597_v2 = vld [vmem:[%s5276_s19 + $0x40] sm:$0xf]  ;;  %v2066_v3 = vrot.slane %v4594_v60, 5 }
 0x151   : > { %v2056_v5 = vsel %vm5462_vm6, %v2054_v61, %v2055_v62  ;;  %v2073_v8 = vrot.slane %v4597_v2, 5 }
 0x152   : > { %1862 = vrot.lane.b32.xlu1 %v1711_v16, %s5227_s23  ;;  %v1759_v16 = vsel %vm5287_vm2, %v1754_v7, %v1758_v35  ;;  %v4584_v35 = vld [vmem:[%s5276_s19 + $0xc] sm:$0xe]  ;;  %v4636_v7 = vrot.slane %v4596_v0, 9  ;;  %v2068_v10 = vrot.slane %v2066_v3, 4 }
 0x153   : > { %1860 = vrot.lane.b32.xlu0 %v1697_v19, %s5227_s23  ;;  %1858 = vrot.lane.b32.xlu2 %v1687_v20, %s5227_s23  ;;  %v1812_v19 = vrot.slane %v1811_v12, 4  ;;  %v1816_v20 = vrot.slane %v1814_v13, 5  ;;  %v4632_v44 = vrot.slane %v4584_v35, 9  ;;  %v4600_v12 = vld [vmem:[%s5276_s19 + $0x4c] sm:$0xf] }
 0x154   : > { %v1282_v37 = vpop.permute.xlu1 %1281  ;;  %v2080_v17 = vrot.slane %v4600_v12, 5  ;;  %v4606_v35 = vld [vmem:[%s5276_s19 + $0x64] sm:$0xf] }
 0x155   : > { %1366 = vst.msk [vmem:[#allocation2 + $0x30] sm:$0xf] %vm1353_vm9, %v1282_v37  ;;  %v1280_v40 = vpop.permute.xlu0 %1279  ;;  %v1296_v47 = vpop.permute.xlu2 %1295  ;;  %v1817_v29 = vsel %vm5287_vm2, %v1812_v19, %v1816_v20  ;;  %v1793_v37 = vsel %vm5287_vm2, %v1788_v26, %v1792_v27  ;;  %v2046_v51 = vsel %vm5462_vm6, %v4632_v44, %v2045_v36  ;;  %v4601_v19 = vld [vmem:[%s5276_s19 + $0x50] sm:$0x1]  ;;  %v4599_v20 = vld [vmem:[%s5276_s19 + $0x48] sm:$0xe] }
 0x156   : > { %1365 = vst.msk [vmem:[#allocation2 + $0x2c] sm:$0xf] %vm1353_vm9, %v1280_v40  ;;  %v2047_v40 = vrot.slane %v2045_v36, 4  ;;  %v2083_v24 = vrot.slane %v4601_v19, 5  ;;  %v4637_v27 = vrot.slane %v4599_v20, 9 }
 0x157   : > { %1373 = vst.msk [vmem:[#allocation2 + $0x4c] sm:$0xf] %vm1353_vm9, %v1296_v47  ;;  %v2059_v47 = vrot.slane %v4591_v42, 5  ;;  %v2094_v42 = vrot.slane %v4606_v35, 5 }
 0x158   : > { %v2049_v48 = vsel %vm5462_vm6, %v2047_v40, %v2048_v41  ;;  %v2081_v33 = vsel %vm5462_vm6, %v4637_v27, %v2080_v17  ;;  %v4602_v40 = vld [vmem:[%s5276_s19 + $0x54] sm:$0xe]  ;;  %v4616_v27 = vld [vmem:[%s5276_s19 + $0x8c] sm:$0x1] }
 0x159   : > { %v2061_v54 = vrot.slane %v2059_v47, 4 }
 0x15a   : > { %1868 = vrot.lane.b32.xlu1 %v1745_v45, %s5227_s23 }
 0x15b   : > { %1866 = vrot.lane.b32.xlu0 %v1735_v46, %s5227_s23  ;;  %1864 = vrot.lane.b32.xlu2 %v1721_v59, %s5227_s23  ;;  %v2053_v46 = vsel %vm5462_vm6, %v4633_v30, %v2052_v38  ;;  %v2063_v52 = vsel %vm5462_vm6, %v2061_v54, %v2062_v56  ;;  %v4604_v38 = vld [vmem:[%s5276_s19 + $0x5c] sm:$0x1]  ;;  %v4610_v54 = vld [vmem:[%s5276_s19 + $0x74] sm:$0x1] }
 0x15c   : > { %v1288_v55 = vpop.permute.xlu1 %1287  ;;  %v4608_v56 = vld [vmem:[%s5276_s19 + $0x6c] sm:$0xe]  ;;  %v2104_v60 = vrot.slane %v4610_v54, 5 }
 0x15d   : > { %1369 = vst.msk [vmem:[#allocation2 + $0x3c] sm:$0xf] %vm1353_vm9, %v1288_v55  ;;  %v1286_v6 = vpop.permute.xlu0 %1285  ;;  %v1302_v9 = vpop.permute.xlu2 %1301  ;;  %v2060_v55 = vsel %vm5462_vm6, %v4634_v58, %v2059_v47  ;;  %v4607_v58 = vld [vmem:[%s5276_s19 + $0x68] sm:$0x1]  ;;  %v4640_v62 = vrot.slane %v4608_v56, 9 }
 0x15e   : > { %1368 = vst.msk [vmem:[#allocation2 + $0x38] sm:$0xf] %vm1353_vm9, %v1286_v6  ;;  %v4593_v6 = vld [vmem:[%s5276_s19 + $0x30] sm:$0xe]  ;;  %v2097_v0 = vrot.slane %v4607_v58, 5 }
 0x15f   : > { %1376 = vst.msk [vmem:[#allocation2 + $0x58] sm:$0xf] %vm1353_vm9, %v1302_v9 }
 0x162   : > { %1874 = vrot.lane.b32.xlu1 %v1783_v11, %s5227_s23  ;;  %v2069_v11 = vrot.slane %v4595_v4, 5 }
 0x163   : > { %1872 = vrot.lane.b32.xlu0 %v1769_v14, %s5227_s23  ;;  %1870 = vrot.lane.b32.xlu2 %v1759_v16, %s5227_s23  ;;  %v4635_v14 = vrot.slane %v4593_v6, 9  ;;  %v2074_v16 = vsel %vm5462_vm6, %v4636_v7, %v2073_v8  ;;  %v4615_v6 = vld [vmem:[%s5276_s19 + $0x88] sm:$0xf] }
 0x164   : > { %v1294_v21 = vpop.permute.xlu1 %1293  ;;  %v2070_v18 = vsel %vm5462_vm6, %v2068_v10, %v2069_v11  ;;  %v4611_v10 = vld [vmem:[%s5276_s19 + $0x78] sm:$0xe]  ;;  %v2115_v12 = vrot.slane %v4615_v6, 5 }
 0x165   : > { %1372 = vst.msk [vmem:[#allocation2 + $0x48] sm:$0xf] %vm1353_vm9, %v1294_v21  ;;  %v1292_v23 = vpop.permute.xlu0 %1291  ;;  %v1308_v28 = vpop.permute.xlu2 %1307  ;;  %v2067_v21 = vsel %vm5462_vm6, %v4635_v14, %v2066_v3 }
 0x166   : > { %1371 = vst.msk [vmem:[#allocation2 + $0x44] sm:$0xf] %vm1353_vm9, %v1292_v23  ;;  %v2082_v23 = vrot.slane %v2080_v17, 4 }
 0x167   : > { %1379 = vst.msk [vmem:[#allocation2 + $0x64] sm:$0xf] %vm1353_vm9, %v1308_v28 }
 0x168   : > { %v2084_v36 = vsel %vm5462_vm6, %v2082_v23, %v2083_v24  ;;  %v4619_v23 = vld [vmem:[%s5276_s19 + $0x98] sm:$0x1]  ;;  %v4617_v24 = vld [vmem:[%s5276_s19 + $0x90] sm:$0xe] }
 0x16a   : > { %1880 = vrot.lane.b32.xlu1 %v1817_v29, %s5227_s23  ;;  %v4603_v29 = vld [vmem:[%s5276_s19 + $0x58] sm:$0xf] }
 0x16b   : > { %1878 = vrot.lane.b32.xlu0 %v1807_v31, %s5227_s23  ;;  %1876 = vrot.lane.b32.xlu2 %v1793_v37, %s5227_s23  ;;  %v2075_v31 = vrot.slane %v2073_v8, 4  ;;  %v4605_v37 = vld [vmem:[%s5276_s19 + $0x60] sm:$0xe]  ;;  %v2087_v30 = vrot.slane %v4603_v29, 5  ;;  %v4613_v8 = vld [vmem:[%s5276_s19 + $0x80] sm:$0x1] }
 0x16c   : > { %v1300_v39 = vpop.permute.xlu1 %1299  ;;  %v4639_v41 = vrot.slane %v4605_v37, 9  ;;  %v2125_v29 = vrot.slane %v4619_v23, 5  ;;  %v2118_v37 = vrot.slane %v4616_v27, 5  ;;  %v4704_v23 = vld [vmem:[%s5276_s19 + $0x78] sm:$0xf] }
 0x16d   : > { %1375 = vst.msk [vmem:[#allocation2 + $0x54] sm:$0xf] %vm1353_vm9, %v1300_v39  ;;  %v1298_v43 = vpop.permute.xlu0 %1297  ;;  %v1314_v45 = vpop.permute.xlu2 %1313  ;;  %v2077_v39 = vsel %vm5462_vm6, %v2075_v31, %v2076_v32  ;;  %v2089_v44 = vrot.slane %v2087_v30, 4  ;;  %v4643_v32 = vrot.slane %v4617_v24, 9  ;;  %v4651_v27 = vld [vmem:[%s5276_s19 + $0x28] sm:$0xf] }
 0x16e   : > { %1374 = vst.msk [vmem:[#allocation2 + $0x50] sm:$0xf] %vm1353_vm9, %v1298_v43  ;;  %v2095_v50 = vsel %vm5462_vm6, %v4639_v41, %v2094_v42 }
 0x16f   : > { %1382 = vst.msk [vmem:[#allocation2 + $0x70] sm:$0xf] %vm1353_vm9, %v1314_v45  ;;  %v2090_v45 = vrot.slane %v4604_v38, 5 }
 0x171   : > { %v2091_v53 = vsel %vm5462_vm6, %v2089_v44, %v2090_v45  ;;  %v4620_v44 = vld [vmem:[%s5276_s19 + $0x9c] sm:$0xe] }
 0x172   : > { %2159 = vrot.lane.b32.xlu1 %v2053_v46, %s5228_s24  ;;  %v4609_v46 = vld [vmem:[%s5276_s19 + $0x70] sm:$0xf] }
 0x173   : > { %2157 = vrot.lane.b32.xlu0 %v2049_v48, %s5228_s24  ;;  %2155 = vrot.lane.b32.xlu2 %v2046_v51, %s5228_s24  ;;  %v4638_v48 = vrot.slane %v4602_v40, 9  ;;  %v2101_v51 = vrot.slane %v4609_v46, 5  ;;  %v4624_v40 = vld [vmem:[%s5276_s19 + $0xac] sm:$0xf] }
 0x174   : > { %v1306_v57 = vpop.permute.xlu1 %1305  ;;  %v2136_v46 = vrot.slane %v4624_v40, 5 }
 0x175   : > { %1378 = vst.msk [vmem:[#allocation2 + $0x60] sm:$0xf] %vm1353_vm9, %v1306_v57  ;;  %v1304_v59 = vpop.permute.xlu0 %1303  ;;  %v1320_v63 = vpop.permute.xlu2 %1319  ;;  %v2088_v57 = vsel %vm5462_vm6, %v4638_v48, %v2087_v30  ;;  %v2102_v4 = vsel %vm5462_vm6, %v4640_v62, %v2101_v51  ;;  %v4625_v62 = vld [vmem:[%s5276_s19 + $0xb0] sm:$0x1] }
 0x176   : > { %1377 = vst.msk [vmem:[#allocation2 + $0x5c] sm:$0xf] %vm1353_vm9, %v1304_v59  ;;  %v2103_v59 = vrot.slane %v2101_v51, 4 }
 0x177   : > { %1385 = vst.msk [vmem:[#allocation2 + $0x7c] sm:$0xf] %vm1353_vm9, %v1320_v63 }
 0x178   : > { %v2105_v3 = vsel %vm5462_vm6, %v2103_v59, %v2104_v60  ;;  %v4628_v59 = vld [vmem:[%s5276_s19 + $0xbc] sm:$0x1]  ;;  %v4626_v60 = vld [vmem:[%s5276_s19 + $0xb4] sm:$0xe] }
 0x17a   : > { %2165 = vrot.lane.b32.xlu1 %v2063_v52, %s5228_s24  ;;  %v4612_v52 = vld [vmem:[%s5276_s19 + $0x7c] sm:$0xf] }
 0x17b   : > { %2163 = vrot.lane.b32.xlu0 %v2060_v55, %s5228_s24  ;;  %2161 = vrot.lane.b32.xlu2 %v2056_v5, %s5228_s24  ;;  %v2096_v55 = vrot.slane %v2094_v42, 4  ;;  %v4614_v5 = vld [vmem:[%s5276_s19 + $0x84] sm:$0xe]  ;;  %v2108_v7 = vrot.slane %v4612_v52, 5  ;;  %v4622_v42 = vld [vmem:[%s5276_s19 + $0xa4] sm:$0x1] }
 0x17c   : > { %v1312_v9 = vpop.permute.xlu1 %1311  ;;  %v4642_v11 = vrot.slane %v4614_v5, 9  ;;  %v2146_v52 = vrot.slane %v4628_v59, 5  ;;  %v2139_v5 = vrot.slane %v4625_v62, 5 }
 0x17d   : > { %1381 = vst.msk [vmem:[#allocation2 + $0x6c] sm:$0xf] %vm1353_vm9, %v1312_v9  ;;  %v1310_v13 = vpop.permute.xlu0 %1309  ;;  %v1823_v15 = vpop.permute.xlu2 %1822  ;;  %v2098_v9 = vsel %vm5462_vm6, %v2096_v55, %v2097_v0  ;;  %v2110_v14 = vrot.slane %v2108_v7, 4  ;;  %v4646_v0 = vrot.slane %v4626_v60, 9 }
 0x17e   : > { %1380 = vst.msk [vmem:[#allocation2 + $0x68] sm:$0xf] %vm1353_vm9, %v1310_v13  ;;  %v2116_v20 = vsel %vm5462_vm6, %v4642_v11, %v2115_v12 }
 0x17f   : > { %1917 = vst.msk [vmem:[#allocation2 + $0x8] sm:$0xf] %vm1914_vm10, %v1823_v15  ;;  %v2111_v15 = vrot.slane %v4613_v8, 5 }
 0x181   : > { %v2112_v22 = vsel %vm5462_vm6, %v2110_v14, %v2111_v15 }
 0x182   : > { %2171 = vrot.lane.b32.xlu1 %v2074_v16, %s5228_s24  ;;  %v4618_v16 = vld [vmem:[%s5276_s19 + $0x94] sm:$0xf] }
 0x183   : > { %2169 = vrot.lane.b32.xlu0 %v2070_v18, %s5228_s24  ;;  %2167 = vrot.lane.b32.xlu2 %v2067_v21, %s5228_s24  ;;  %v4641_v18 = vrot.slane %v4611_v10, 9  ;;  %v2122_v21 = vrot.slane %v4618_v16, 5  ;;  %v4631_v10 = vld [vmem:[%s5276_s19 + $0xc8] sm:$0x1] }
 0x184   : > { %v1318_v26 = vpop.permute.xlu1 %1317  ;;  %v2153_v15 = vrot.slane %v4631_v10, 5 }
 0x185   : > { %1384 = vst.msk [vmem:[#allocation2 + $0x78] sm:$0xf] %vm1353_vm9, %v1318_v26  ;;  %v1316_v28 = vpop.permute.xlu0 %1315  ;;  %v1829_v34 = vpop.permute.xlu2 %1828  ;;  %v2109_v26 = vsel %vm5462_vm6, %v4641_v18, %v2108_v7  ;;  %v2123_v38 = vsel %vm5462_vm6, %v4643_v32, %v2122_v21  ;;  %v4649_v32 = vld [vmem:[%s5276_s19 + $0x1c] sm:$0xf] }
 0x186   : > { %1383 = vst.msk [vmem:[#allocation2 + $0x74] sm:$0xf] %vm1353_vm9, %v1316_v28  ;;  %v2124_v28 = vrot.slane %v2122_v21, 4 }
 0x187   : > { %1920 = vst.msk [vmem:[#allocation2 + $0x14] sm:$0xf] %vm1914_vm10, %v1829_v34 }
 0x188   : > { %v2126_v30 = vsel %vm5462_vm6, %v2124_v28, %v2125_v29  ;;  %v2722_v28 = vshrl.u32 %v4704_v23, 16  ;;  %v2725_v29 = vshll.u32 %v4704_v23, 16  ;;  %v4752_v23 = vld [vmem:[%s5276_s19 + $0x78] sm:$0xe] }
 0x18a   : > { %2177 = vrot.lane.b32.xlu1 %v2084_v36, %s5228_s24  ;;  %v4621_v36 = vld [vmem:[%s5276_s19 + $0xa0] sm:$0xf] }
 0x18b   : > { %2175 = vrot.lane.b32.xlu0 %v2081_v33, %s5228_s24  ;;  %2173 = vrot.lane.b32.xlu2 %v2077_v39, %s5228_s24  ;;  %v2117_v33 = vrot.slane %v2115_v12, 4  ;;  %v4623_v39 = vld [vmem:[%s5276_s19 + $0xa8] sm:$0xe]  ;;  %v2129_v41 = vrot.slane %v4621_v36, 5  ;;  %v4629_v12 = vld [vmem:[%s5276_s19 + $0xc0] sm:$0xe] }
 0x18c   : > { %v1821_v43 = vpop.permute.xlu1 %1820  ;;  %v4645_v45 = vrot.slane %v4623_v39, 9  ;;  %v2727_v36 = vrot.slane %v2725_v29, 5  ;;  %v4665_v39 = vld [vmem:[%s5276_s19 + $0x7c] sm:$0xf] }
 0x18d   : > { %1916 = vst.msk [vmem:[#allocation2 + $0x4] sm:$0xf] %vm1914_vm10, %v1821_v43  ;;  %v1819_v47 = vpop.permute.xlu0 %1818  ;;  %v1835_v49 = vpop.permute.xlu2 %1834  ;;  %v2119_v43 = vsel %vm5462_vm6, %v2117_v33, %v2118_v37  ;;  %v2131_v48 = vrot.slane %v2129_v41, 4  ;;  %v4705_v37 = vld [vmem:[%s5276_s19 + $0x7c] sm:$0xf] }
 0x18e   : > { %1915 = vst.msk [vmem:[#allocation2] sm:$0xf] %vm1914_vm10, %v1819_v47  ;;  %v2137_v56 = vsel %vm5462_vm6, %v4645_v45, %v2136_v46  ;;  %v4664_v45 = vld [vmem:[%s5276_s19 + $0x78] sm:$0xf] }
 0x18f   : > { %1923 = vst.msk [vmem:[#allocation2 + $0x20] sm:$0xf] %vm1914_vm10, %v1835_v49  ;;  %v2132_v49 = vrot.slane %v4622_v42, 5  ;;  %v2731_v42 = vshll.u32 %v4705_v37, 16 }
 0x191   : > { %v2133_v58 = vsel %vm5462_vm6, %v2131_v48, %v2132_v49  ;;  %v2735_v48 = vshrl.u32 %v4705_v37, 16  ;;  %v4652_v49 = vld [vmem:[%s5276_s19 + $0x30] sm:$0xf]  ;;  %v4680_v37 = vld [vmem:[%s5276_s19 + $0x18] sm:$0xf] }
 0x192   : > { %2183 = vrot.lane.b32.xlu1 %v2095_v50, %s5228_s24  ;;  %v4627_v50 = vld [vmem:[%s5276_s19 + $0xb8] sm:$0xf] }
 0x193   : > { %2181 = vrot.lane.b32.xlu0 %v2091_v53, %s5228_s24  ;;  %2179 = vrot.lane.b32.xlu2 %v2088_v57, %s5228_s24  ;;  %v4644_v53 = vrot.slane %v4620_v44, 9  ;;  %v2143_v57 = vrot.slane %v4627_v50, 5 }
 0x194   : > { %v1827_v61 = vpop.permute.xlu1 %1826 }
 0x195   : > { %1919 = vst.msk [vmem:[#allocation2 + $0x10] sm:$0xf] %vm1914_vm10, %v1827_v61  ;;  %v1825_v63 = vpop.permute.xlu0 %1824  ;;  %v1841_v2 = vpop.permute.xlu2 %1840  ;;  %v2130_v61 = vsel %vm5462_vm6, %v4644_v53, %v2129_v41  ;;  %v2144_v8 = vsel %vm5462_vm6, %v4646_v0, %v2143_v57 }
 0x196   : > { %1918 = vst.msk [vmem:[#allocation2 + $0xc] sm:$0xf] %vm1914_vm10, %v1825_v63  ;;  %v2145_v63 = vrot.slane %v2143_v57, 4  ;;  %v4718_v57 = vld [vmem:[%s5276_s19 + $0xb0] sm:$0x1] }
 0x197   : > { %1926 = vst.msk [vmem:[#allocation2 + $0x2c] sm:$0xf] %vm1914_vm10, %v1841_v2  ;;  %v2837_v0 = vshll.u32 %v4718_v57, 16 }
 0x198   : > { %v2147_v7 = vsel %vm5462_vm6, %v2145_v63, %v2146_v52  ;;  %v4706_v63 = vld [vmem:[%s5276_s19 + $0x80] sm:$0x1] }
 0x19a   : > { %2189 = vrot.lane.b32.xlu1 %v2105_v3, %s5228_s24  ;;  %v4630_v3 = vld [vmem:[%s5276_s19 + $0xc4] sm:$0xf] }
 0x19b   : > { %2187 = vrot.lane.b32.xlu0 %v2102_v4, %s5228_s24  ;;  %2185 = vrot.lane.b32.xlu2 %v2098_v9, %s5228_s24  ;;  %v2138_v4 = vrot.slane %v2136_v46, 4  ;;  %v2150_v9 = vrot.slane %v4630_v3, 5 }
 0x19c   : > { %v1833_v13 = vpop.permute.xlu1 %1832 }
 0x19d   : > { %1922 = vst.msk [vmem:[#allocation2 + $0x1c] sm:$0xf] %vm1914_vm10, %v1833_v13  ;;  %v1831_v17 = vpop.permute.xlu0 %1830  ;;  %v1847_v19 = vpop.permute.xlu2 %1846  ;;  %v2140_v11 = vsel %vm5462_vm6, %v2138_v4, %v2139_v5  ;;  %v2152_v14 = vrot.slane %v2150_v9, 4  ;;  %v4672_v4 = vld [vmem:[%s5276_s19 + $0xa8] sm:$0xf] }
 0x19e   : > { %1921 = vst.msk [vmem:[#allocation2 + $0x18] sm:$0xf] %vm1914_vm10, %v1831_v17  ;;  %v4647_v17 = vrot.slane %v4629_v12, 9  ;;  %v4753_v12 = vld [vmem:[%s5276_s19 + $0x7c] sm:$0xf] }
 0x19f   : > { %1929 = vst.msk [vmem:[#allocation2 + $0x38] sm:$0xf] %vm1914_vm10, %v1847_v19  ;;  %v4648_v19 = vld [vmem:[%s5276_s19 + $0x18] sm:$0xf] }
 0x1a0   : > { %v2151_v21 = vsel %vm5462_vm6, %v4647_v17, %v2150_v9 }
 0x1a2   : > { %2195 = vrot.lane.b32.xlu1 %v2116_v20, %s5228_s24  ;;  %v2154_v20 = vsel %vm5462_vm6, %v2152_v14, %v2153_v15 }
 0x1a3   : > { %2193 = vrot.lane.b32.xlu0 %v2112_v22, %s5228_s24  ;;  %2191 = vrot.lane.b32.xlu2 %v2109_v26, %s5228_s24 }
 0x1a4   : > { %v1839_v31 = vpop.permute.xlu1 %1838 }
 0x1a5   : > { %1925 = vst.msk [vmem:[#allocation2 + $0x28] sm:$0xf] %vm1914_vm10, %v1839_v31  ;;  %v1837_v34 = vpop.permute.xlu0 %1836  ;;  %v1853_v35 = vpop.permute.xlu2 %1852  ;;  %v4650_v31 = vld [vmem:[%s5276_s19 + $0x24] sm:$0xf] }
 0x1a6   : > { %1924 = vst.msk [vmem:[#allocation2 + $0x24] sm:$0xf] %vm1914_vm10, %v1837_v34  ;;  %v2724_v34 = vrot.slane %v2722_v28, 4 }
 0x1a7   : > { %1932 = vst.msk [vmem:[#allocation2 + $0x44] sm:$0xf] %vm1914_vm10, %v1853_v35  ;;  %v4717_v35 = vld [vmem:[%s5276_s19 + $0xac] sm:$0xf] }
 0x1a8   : > { %v2728_v41 = vor.u32 %v2727_v36, %v2724_v34  ;;  %v2831_v44 = vshrl.u32 %v4717_v35, 16  ;;  %v4784_v34 = vrot.slane %v4752_v23, 9  ;;  %v4681_v36 = vld [vmem:[%s5276_s19 + $0x1c] sm:$0xf] }
 0x1aa   : > { %2201 = vrot.lane.b32.xlu1 %v2126_v30, %s5228_s24  ;;  %v2729_v50 = vrot.slane %v2728_v41, 4  ;;  %v2543_v41 = vshrl.u32 %v4681_v36, 16 }
 0x1ab   : > { %2199 = vrot.lane.b32.xlu0 %v2123_v38, %s5228_s24  ;;  %2197 = vrot.lane.b32.xlu2 %v2119_v43, %s5228_s24  ;;  %v4716_v38 = vld [vmem:[%s5276_s19 + $0xa8] sm:$0xf]  ;;  %v2827_v43 = vshll.u32 %v4717_v35, 16 }
 0x1ac   : > { %v1845_v47 = vpop.permute.xlu1 %1844  ;;  %v2818_v46 = vshrl.u32 %v4716_v38, 16 }
 0x1ad   : > { %1928 = vst.msk [vmem:[#allocation2 + $0x34] sm:$0xf] %vm1914_vm10, %v1845_v47  ;;  %v1843_v51 = vpop.permute.xlu0 %1842  ;;  %v1859_v54 = vpop.permute.xlu2 %1858  ;;  %v2821_v47 = vshll.u32 %v4716_v38, 16  ;;  %v2829_v53 = vrot.slane %v2827_v43, 5  ;;  %v2530_v43 = vshrl.u32 %v4680_v37, 16 }
 0x1ae   : > { %1927 = vst.msk [vmem:[#allocation2 + $0x30] sm:$0xf] %vm1914_vm10, %v1843_v51  ;;  %v2733_v51 = vrot.slane %v2731_v42, 5 }
 0x1af   : > { %1935 = vst.msk [vmem:[#allocation2 + $0x50] sm:$0xf] %vm1914_vm10, %v1859_v54  ;;  %v2833_v54 = vrot.slane %v2831_v44, 4  ;;  %v2823_v59 = vrot.slane %v2821_v47, 5  ;;  %v2533_v44 = vshll.u32 %v4680_v37, 16 }
 0x1b0   : > { %v2734_v52 = vsel %vm5287_vm2, %v2729_v50, %v2733_v51  ;;  %v4682_v50 = vld [vmem:[%s5276_s19 + $0x20] sm:$0x1] }
 0x1b2   : > { %2207 = vrot.lane.b32.xlu1 %v2137_v56, %s5228_s24 }
 0x1b3   : > { %2205 = vrot.lane.b32.xlu0 %v2133_v58, %s5228_s24  ;;  %2203 = vrot.lane.b32.xlu2 %v2130_v61, %s5228_s24  ;;  %v2820_v58 = vrot.slane %v2818_v46, 4  ;;  %v2737_v61 = vrot.slane %v2735_v48, 4 }
 0x1b4   : > { %v1851_v55 = vpop.permute.xlu1 %1850 }
 0x1b5   : > { %1931 = vst.msk [vmem:[#allocation2 + $0x40] sm:$0xf] %vm1914_vm10, %v1851_v55  ;;  %v1849_v2 = vpop.permute.xlu0 %1848  ;;  %v1865_v6 = vpop.permute.xlu2 %1864  ;;  %v2834_v55 = vor.u32 %v2833_v54, %v2829_v53  ;;  %v2824_v3 = vor.u32 %v2823_v59, %v2820_v58  ;;  %v2738_v5 = vor.u32 %v2737_v61, %v2733_v51  ;;  %v2532_v58 = vrot.slane %v2530_v43, 4  ;;  %v4657_v61 = vld [vmem:[%s5276_s19 + $0x4c] sm:$0xf] }
 0x1b6   : > { %1930 = vst.msk [vmem:[#allocation2 + $0x3c] sm:$0xf] %vm1914_vm10, %v1849_v2  ;;  %v4673_v2 = vld [vmem:[%s5276_s19 + $0xac] sm:$0xf]  ;;  %v2535_v59 = vrot.slane %v2533_v44, 5 }
 0x1b7   : > { %1938 = vst.msk [vmem:[#allocation2 + $0x5c] sm:$0xf] %vm1914_vm10, %v1865_v6  ;;  %v2741_v6 = vshll.u32 %v4706_v63, 16  ;;  %v2825_v10 = vrot.slane %v2824_v3, 4  ;;  %v4719_v43 = vld [vmem:[%s5276_s19 + $0xb4] sm:$0xf] }
 0x1b9   : > { %v2743_v14 = vrot.slane %v2741_v6, 5  ;;  %v2830_v17 = vsel %vm5287_vm2, %v2825_v10, %v2829_v53  ;;  %v2545_v53 = vrot.slane %v2543_v41, 4  ;;  %v4729_v10 = vld [vmem:[%s5276_s19 + $0x1c] sm:$0xf] }
 0x1ba   : > { %2213 = vrot.lane.b32.xlu1 %v2147_v7, %s5228_s24  ;;  %v2835_v7 = vrot.slane %v2834_v55, 4 }
 0x1bb   : > { %2211 = vrot.lane.b32.xlu0 %v2144_v8, %s5228_s24  ;;  %2209 = vrot.lane.b32.xlu2 %v2140_v11, %s5228_s24  ;;  %v2839_v8 = vrot.slane %v2837_v0, 5  ;;  %v2549_v0 = vshll.u32 %v4682_v50, 16  ;;  %v2842_v50 = vshrl.u32 %v4719_v43, 16 }
 0x1bc   : > { %v1857_v13 = vpop.permute.xlu1 %1856 }
 0x1bd   : > { %1934 = vst.msk [vmem:[#allocation2 + $0x4c] sm:$0xf] %vm1914_vm10, %v1857_v13  ;;  %v1855_v16 = vpop.permute.xlu0 %1854  ;;  %v1871_v18 = vpop.permute.xlu2 %1870  ;;  %v2739_v13 = vrot.slane %v2738_v5, 4 }
 0x1be   : > { %1933 = vst.msk [vmem:[#allocation2 + $0x48] sm:$0xf] %vm1914_vm10, %v1855_v16  ;;  %v2840_v16 = vsel %vm5287_vm2, %v2835_v7, %v2839_v8 }
 0x1bf   : > { %1941 = vst.msk [vmem:[#allocation2 + $0x68] sm:$0xf] %vm1914_vm10, %v1871_v18  ;;  %v4764_v18 = vld [vmem:[%s5276_s19 + $0xa8] sm:$0xe] }
 0x1c2   : > { %2352 = vrot.lane.b32.xlu1 %v4648_v19, %s5229_s25  ;;  %v4765_v19 = vld [vmem:[%s5276_s19 + $0xac] sm:$0xf] }
 0x1c3   : > { %2217 = vrot.lane.b32.xlu0 %v2154_v20, %s5228_s24  ;;  %2215 = vrot.lane.b32.xlu2 %v2151_v21, %s5228_s24  ;;  %v3196_v20 = vrot.slane %v4753_v12, 5  ;;  %v4754_v21 = vld [vmem:[%s5276_s19 + $0x80] sm:$0x1] }
 0x1c4   : > { %v1863_v22 = vpop.permute.xlu1 %1862  ;;  %v3199_v29 = vrot.slane %v4754_v21, 5 }
 0x1c5   : > { %1937 = vst.msk [vmem:[#allocation2 + $0x58] sm:$0xf] %vm1914_vm10, %v1863_v22  ;;  %v1861_v24 = vpop.permute.xlu0 %1860  ;;  %v1877_v26 = vpop.permute.xlu2 %1876  ;;  %v2744_v22 = vsel %vm5287_vm2, %v2739_v13, %v2743_v14  ;;  %v3198_v28 = vrot.slane %v3196_v20, 4  ;;  %v3197_v42 = vsel %vm5462_vm6, %v4784_v34, %v3196_v20  ;;  %v4728_v20 = vld [vmem:[%s5276_s19 + $0x18] sm:$0xe] }
 0x1c6   : > { %1936 = vst.msk [vmem:[#allocation2 + $0x54] sm:$0xf] %vm1914_vm10, %v1861_v24  ;;  %v4788_v24 = vrot.slane %v4764_v18, 9 }
 0x1c7   : > { %1944 = vst.msk [vmem:[#allocation2 + $0x74] sm:$0xf] %vm1914_vm10, %v1877_v26  ;;  %v3224_v26 = vrot.slane %v4765_v19, 5  ;;  %v4730_v19 = vld [vmem:[%s5276_s19 + $0x20] sm:$0x1] }
 0x1c9   : > { %v3225_v35 = vsel %vm5462_vm6, %v4788_v24, %v3224_v26 }
 0x1ca   : > { %2358 = vrot.lane.b32.xlu1 %v4651_v27, %s5229_s25 }
 0x1cb   : > { %2356 = vrot.lane.b32.xlu0 %v4650_v31, %s5229_s25  ;;  %2354 = vrot.lane.b32.xlu2 %v4649_v32, %s5229_s25  ;;  %v4692_v31 = vld [vmem:[%s5276_s19 + $0x48] sm:$0xf] }
 0x1cc   : > { %v1869_v33 = vpop.permute.xlu1 %1868  ;;  %v2629_v38 = vshll.u32 %v4692_v31, 16 }
 0x1cd   : > { %1940 = vst.msk [vmem:[#allocation2 + $0x64] sm:$0xf] %vm1914_vm10, %v1869_v33  ;;  %v1867_v30 = vpop.permute.xlu0 %1866  ;;  %v2156_v40 = vpop.permute.xlu2 %2155 }
 0x1ce   : > { %1939 = vst.msk [vmem:[#allocation2 + $0x60] sm:$0xf] %vm1914_vm10, %v1867_v30  ;;  %v2626_v30 = vshrl.u32 %v4692_v31, 16  ;;  %v2631_v47 = vrot.slane %v2629_v38, 5  ;;  %v4741_v31 = vld [vmem:[%s5276_s19 + $0x4c] sm:$0xf] }
 0x1cf   : > { %2252 = vst.msk [vmem:[#allocation2] sm:$0xf] %vm2251_vm11, %v2156_v40  ;;  %v2539_v40 = vshll.u32 %v4681_v36, 16 }
 0x1d0   : > { %v2628_v46 = vrot.slane %v2626_v30, 4  ;;  %v4742_v30 = vld [vmem:[%s5276_s19 + $0x50] sm:$0x1] }
 0x1d1   : > { %v2541_v51 = vrot.slane %v2539_v40, 5 }
 0x1d2   : > { %2386 = vrot.lane.b32.xlu1 %v4665_v39, %s5229_s25  ;;  %v3200_v39 = vsel %vm5462_vm6, %v3198_v28, %v3199_v29  ;;  %v4776_v28 = vrot.slane %v4728_v20, 9  ;;  %v4756_v20 = vld [vmem:[%s5276_s19 + $0x88] sm:$0xf] }
 0x1d3   : > { %2384 = vrot.lane.b32.xlu0 %v4664_v45, %s5229_s25  ;;  %2360 = vrot.lane.b32.xlu2 %v4652_v49, %s5229_s25  ;;  %v4766_v45 = vld [vmem:[%s5276_s19 + $0xb0] sm:$0x1]  ;;  %v4693_v49 = vld [vmem:[%s5276_s19 + $0x4c] sm:$0xf]  ;;  %v2546_v55 = vor.u32 %v2545_v53, %v2541_v51 }
 0x1d4   : > { %v1875_v56 = vpop.permute.xlu1 %1874  ;;  %v3227_v57 = vrot.slane %v4766_v45, 5  ;;  %v2635_v63 = vshll.u32 %v4693_v49, 16 }
 0x1d5   : > { %1943 = vst.msk [vmem:[#allocation2 + $0x70] sm:$0xf] %vm1914_vm10, %v1875_v56  ;;  %v1873_v60 = vpop.permute.xlu0 %1872  ;;  %v2162_v62 = vpop.permute.xlu2 %2161  ;;  %v3226_v56 = vrot.slane %v3224_v26, 4  ;;  %v2547_v8 = vrot.slane %v2546_v55, 4  ;;  %v3143_v26 = vrot.slane %v4730_v19, 5 }
 0x1d6   : > { %1942 = vst.msk [vmem:[#allocation2 + $0x6c] sm:$0xf] %vm1914_vm10, %v1873_v60  ;;  %v2637_v6 = vrot.slane %v2635_v63, 5  ;;  %v4720_v63 = vld [vmem:[%s5276_s19 + $0xb8] sm:$0xf] }
 0x1d7   : > { %2255 = vst.msk [vmem:[#allocation2 + $0xc] sm:$0xf] %vm2251_vm11, %v2162_v62  ;;  %v2632_v62 = vor.u32 %v2631_v47, %v2628_v46  ;;  %v3228_v3 = vsel %vm5462_vm6, %v3226_v56, %v3227_v57  ;;  %v4708_v46 = vld [vmem:[%s5276_s19 + $0x88] sm:$0xf] }
 0x1d8   : > { %v2759_v56 = vshrl.u32 %v4708_v46, 16 }
 0x1d9   : > { %v2633_v5 = vrot.slane %v2632_v62, 4 }
 0x1da   : > { %2945 = vrot.lane.b32.xlu1 %v2734_v52, %s5230_s26  ;;  %v4656_v52 = vld [vmem:[%s5276_s19 + $0x48] sm:$0xf]  ;;  %v2761_v55 = vrot.slane %v2759_v56, 4 }
 0x1db   : > { %2402 = vrot.lane.b32.xlu0 %v4673_v2, %s5229_s25  ;;  %2400 = vrot.lane.b32.xlu2 %v4672_v4, %s5229_s25  ;;  %v2639_v2 = vshrl.u32 %v4693_v49, 16  ;;  %v2536_v4 = vor.u32 %v2535_v59, %v2532_v58  ;;  %v4666_v49 = vld [vmem:[%s5276_s19 + $0x84] sm:$0xf] }
 0x1dc   : > { %v1881_v9 = vpop.permute.xlu1 %1880 }
 0x1dd   : > { %1946 = vst.msk [vmem:[#allocation2 + $0x7c] sm:$0xf] %vm1914_vm10, %v1881_v9  ;;  %v1879_v11 = vpop.permute.xlu0 %1878  ;;  %v2168_v15 = vpop.permute.xlu2 %2167  ;;  %v2551_v9 = vrot.slane %v2549_v0, 5  ;;  %v2537_v12 = vrot.slane %v2536_v4, 4  ;;  %v2641_v13 = vrot.slane %v2639_v2, 4 }
 0x1de   : > { %1945 = vst.msk [vmem:[#allocation2 + $0x78] sm:$0xf] %vm1914_vm10, %v1879_v11  ;;  %v4709_v2 = vld [vmem:[%s5276_s19 + $0x8c] sm:$0x1] }
 0x1df   : > { %2258 = vst.msk [vmem:[#allocation2 + $0x18] sm:$0xf] %vm2251_vm11, %v2168_v15  ;;  %v4694_v15 = vld [vmem:[%s5276_s19 + $0x50] sm:$0x1]  ;;  %v2552_v18 = vsel %vm5287_vm2, %v2547_v8, %v2551_v9  ;;  %v2542_v21 = vsel %vm5287_vm2, %v2537_v12, %v2541_v51  ;;  %v2845_v51 = vshll.u32 %v4719_v43, 16  ;;  %v2851_v8 = vshll.u32 %v4720_v63, 16 }
 0x1e0   : > { %v2645_v23 = vshll.u32 %v4694_v15, 16  ;;  %v4674_v9 = vld [vmem:[%s5276_s19 + $0xb4] sm:$0xf]  ;;  %v2855_v12 = vshrl.u32 %v4720_v63, 16  ;;  %v4685_v63 = vld [vmem:[%s5276_s19 + $0x2c] sm:$0x1] }
 0x1e2   : > { %2963 = vrot.lane.b32.xlu1 %v2840_v16, %s5230_s26  ;;  %v2638_v16 = vsel %vm5287_vm2, %v2633_v5, %v2637_v6  ;;  %v2647_v34 = vrot.slane %v2645_v23, 5  ;;  %v2857_v23 = vrot.slane %v2855_v12, 4 }
 0x1e3   : > { %2961 = vrot.lane.b32.xlu0 %v2830_v17, %s5230_s26  ;;  %2947 = vrot.lane.b32.xlu2 %v2744_v22, %s5230_s26  ;;  %v3140_v17 = vrot.slane %v4729_v10, 5  ;;  %v2642_v22 = vor.u32 %v2641_v13, %v2637_v6  ;;  %v4675_v6 = vld [vmem:[%s5276_s19 + $0xb8] sm:$0xf]  ;;  %v4667_v13 = vld [vmem:[%s5276_s19 + $0x88] sm:$0xf] }
 0x1e4   : > { %v2160_v27 = vpop.permute.xlu1 %2159 }
 0x1e5   : > { %2254 = vst.msk [vmem:[#allocation2 + $0x8] sm:$0xf] %vm2251_vm11, %v2160_v27  ;;  %v2158_v32 = vpop.permute.xlu0 %2157  ;;  %v2174_v33 = vpop.permute.xlu2 %2173  ;;  %v3142_v24 = vrot.slane %v3140_v17, 4  ;;  %v3141_v37 = vsel %vm5462_vm6, %v4776_v28, %v3140_v17  ;;  %v3203_v28 = vrot.slane %v4756_v20, 5 }
 0x1e6   : > { %2253 = vst.msk [vmem:[#allocation2 + $0x4] sm:$0xf] %vm2251_vm11, %v2158_v32  ;;  %v2643_v32 = vrot.slane %v2642_v22, 4 }
 0x1e7   : > { %2261 = vst.msk [vmem:[#allocation2 + $0x24] sm:$0xf] %vm2251_vm11, %v2174_v33  ;;  %v3144_v33 = vsel %vm5462_vm6, %v3142_v24, %v3143_v26  ;;  %v4721_v26 = vld [vmem:[%s5276_s19 + $0xbc] sm:$0x1] }
 0x1e8   : > { %v2648_v38 = vsel %vm5287_vm2, %v2643_v32, %v2647_v34  ;;  %v4755_v32 = vld [vmem:[%s5276_s19 + $0x84] sm:$0xe] }
 0x1ea   : > { %3298 = vrot.lane.b32.xlu1 %v3225_v35, %s5231_s27  ;;  %v3168_v35 = vrot.slane %v4741_v31, 5  ;;  %v4757_v31 = vld [vmem:[%s5276_s19 + $0x8c] sm:$0x1] }
 0x1eb   : > { %3284 = vrot.lane.b32.xlu0 %v3200_v39, %s5231_s27  ;;  %3282 = vrot.lane.b32.xlu2 %v3197_v42, %s5231_s27  ;;  %v4740_v39 = vld [vmem:[%s5276_s19 + $0x48] sm:$0xe]  ;;  %v3171_v42 = vrot.slane %v4742_v30, 5 }
 0x1ec   : > { %v2166_v48 = vpop.permute.xlu1 %2165  ;;  %v3170_v41 = vrot.slane %v3168_v35, 4  ;;  %v4780_v45 = vrot.slane %v4740_v39, 9  ;;  %v4768_v39 = vld [vmem:[%s5276_s19 + $0xb8] sm:$0xf] }
 0x1ed   : > { %2257 = vst.msk [vmem:[#allocation2 + $0x14] sm:$0xf] %vm2251_vm11, %v2166_v48  ;;  %v2164_v54 = vpop.permute.xlu0 %2163  ;;  %v2180_v60 = vpop.permute.xlu2 %2179  ;;  %v4707_v48 = vld [vmem:[%s5276_s19 + $0x84] sm:$0xf] }
 0x1ee   : > { %2256 = vst.msk [vmem:[#allocation2 + $0x10] sm:$0xf] %vm2251_vm11, %v2164_v54  ;;  %v3172_v53 = vsel %vm5462_vm6, %v3170_v41, %v3171_v42  ;;  %v2755_v54 = vshll.u32 %v4708_v46, 16  ;;  %v3169_v57 = vsel %vm5462_vm6, %v4780_v45, %v3168_v35  ;;  %v2746_v58 = vshrl.u32 %v4707_v48, 16 }
 0x1ef   : > { %2264 = vst.msk [vmem:[#allocation2 + $0x30] sm:$0xf] %vm2251_vm11, %v2180_v60  ;;  %v2749_v59 = vshll.u32 %v4707_v48, 16  ;;  %v2844_v60 = vrot.slane %v2842_v50, 4  ;;  %v3206_v35 = vrot.slane %v4757_v31, 5 }
 0x1f0   : > { %v4731_v31 = vld [vmem:[%s5276_s19 + $0x24] sm:$0xe] }
 0x1f1   : > { %v2751_v4 = vrot.slane %v2749_v59, 5 }
 0x1f2   : > { %2370 = vrot.lane.b32.xlu1 %v4657_v61, %s5229_s25  ;;  %v2847_v61 = vrot.slane %v2845_v51, 5 }
 0x1f3   : > { %2368 = vrot.lane.b32.xlu0 %v4656_v52, %s5229_s25  ;;  %3300 = vrot.lane.b32.xlu2 %v3228_v3, %s5231_s27  ;;  %v2757_v52 = vrot.slane %v2755_v54, 5  ;;  %v2748_v3 = vrot.slane %v2746_v58, 4  ;;  %v4769_v54 = vld [vmem:[%s5276_s19 + $0xbc] sm:$0x1] }
 0x1f4   : > { %v2172_v7 = vpop.permute.xlu1 %2171 }
 0x1f5   : > { %2260 = vst.msk [vmem:[#allocation2 + $0x20] sm:$0xf] %vm2251_vm11, %v2172_v7  ;;  %v2170_v11 = vpop.permute.xlu0 %2169  ;;  %v2186_v14 = vpop.permute.xlu2 %2185  ;;  %v2848_v7 = vor.u32 %v2847_v61, %v2844_v60  ;;  %v2762_v10 = vor.u32 %v2761_v55, %v2757_v52 }
 0x1f6   : > { %2259 = vst.msk [vmem:[#allocation2 + $0x1c] sm:$0xf] %vm2251_vm11, %v2170_v11  ;;  %v2765_v11 = vshll.u32 %v4709_v2, 16 }
 0x1f7   : > { %2267 = vst.msk [vmem:[#allocation2 + $0x3c] sm:$0xf] %vm2251_vm11, %v2186_v14  ;;  %v2752_v14 = vor.u32 %v2751_v4, %v2748_v3  ;;  %v2849_v15 = vrot.slane %v2848_v7, 4  ;;  %v4696_v3 = vld [vmem:[%s5276_s19 + $0x58] sm:$0xf] }
 0x1f8   : > { %v2767_v19 = vrot.slane %v2765_v11, 5  ;;  %v2659_v11 = vshll.u32 %v4696_v3, 16  ;;  %v2663_v12 = vshrl.u32 %v4696_v3, 16  ;;  %v4932_v3 = vld [vmem:[%s7173_s1 + $0x8] sm:$0xff] }
 0x1f9   : > { %v2753_v22 = vrot.slane %v2752_v14, 4 }
 0x1fa   : > { %2929 = vrot.lane.b32.xlu1 %v2638_v16, %s5230_s26  ;;  %v2853_v16 = vrot.slane %v2851_v8, 5  ;;  %v2573_v8 = vshll.u32 %v4685_v63, 16  ;;  %v2661_v20 = vrot.slane %v2659_v11, 5  ;;  %v4931_v11 = vld [vmem:[%s7173_s1] sm:$0xff] }
 0x1fb   : > { %2915 = vrot.lane.b32.xlu0 %v2552_v18, %s5230_s26  ;;  %2913 = vrot.lane.b32.xlu2 %v2542_v21, %s5230_s26  ;;  %v2763_v18 = vrot.slane %v2762_v10, 4  ;;  %v2758_v34 = vsel %vm5287_vm2, %v2753_v22, %v2757_v52 }
 0x1fc   : > { %v2178_v27 = vpop.permute.xlu1 %2177 }
 0x1fd   : > { %2263 = vst.msk [vmem:[#allocation2 + $0x2c] sm:$0xf] %vm2251_vm11, %v2178_v27  ;;  %v2176_v29 = vpop.permute.xlu0 %2175  ;;  %v2192_v36 = vpop.permute.xlu2 %2191  ;;  %v2854_v27 = vsel %vm5287_vm2, %v2849_v15, %v2853_v16 }
 0x1fe   : > { %2262 = vst.msk [vmem:[#allocation2 + $0x28] sm:$0xf] %vm2251_vm11, %v2176_v29  ;;  %v2768_v29 = vsel %vm5287_vm2, %v2763_v18, %v2767_v19 }
 0x1ff   : > { %2270 = vst.msk [vmem:[#allocation2 + $0x48] sm:$0xf] %vm2251_vm11, %v2192_v36  ;;  %v2858_v36 = vor.u32 %v2857_v23, %v2853_v16  ;;  %v4697_v23 = vld [vmem:[%s5276_s19 + $0x5c] sm:$0x1] }
 0x201   : > { %v2859_v42 = vrot.slane %v2858_v36, 4  ;;  %v2669_v36 = vshll.u32 %v4697_v23, 16 }
 0x202   : > { %3252 = vrot.lane.b32.xlu1 %v3144_v33, %s5231_s27  ;;  %v2861_v33 = vshll.u32 %v4721_v26, 16 }
 0x203   : > { %3250 = vrot.lane.b32.xlu0 %v3141_v37, %s5231_s27  ;;  %2931 = vrot.lane.b32.xlu2 %v2648_v38, %s5230_s26  ;;  %v3205_v37 = vrot.slane %v3203_v28, 4  ;;  %v4785_v38 = vrot.slane %v4755_v32, 9  ;;  %v4732_v32 = vld [vmem:[%s5276_s19 + $0x28] sm:$0xf] }
 0x204   : > { %v2184_v40 = vpop.permute.xlu1 %2183  ;;  %v2863_v43 = vrot.slane %v2861_v33, 5  ;;  %v4659_v33 = vld [vmem:[%s5276_s19 + $0x58] sm:$0xf] }
 0x205   : > { %2266 = vst.msk [vmem:[#allocation2 + $0x38] sm:$0xf] %vm2251_vm11, %v2184_v40  ;;  %v2182_v44 = vpop.permute.xlu0 %2181  ;;  %v2198_v47 = vpop.permute.xlu2 %2197  ;;  %v4684_v40 = vld [vmem:[%s5276_s19 + $0x28] sm:$0xf]  ;;  %v3207_v46 = vsel %vm5462_vm6, %v3205_v37, %v3206_v35  ;;  %v3204_v50 = vsel %vm5462_vm6, %v4785_v38, %v3203_v28  ;;  %v4777_v35 = vrot.slane %v4731_v31, 9 }
 0x206   : > { %2265 = vst.msk [vmem:[#allocation2 + $0x34] sm:$0xf] %vm2251_vm11, %v2182_v44  ;;  %v4683_v44 = vld [vmem:[%s5276_s19 + $0x24] sm:$0xf]  ;;  %v2563_v48 = vshll.u32 %v4684_v40, 16  ;;  %v2864_v56 = vsel %vm5287_vm2, %v2859_v42, %v2863_v43 }
 0x207   : > { %2273 = vst.msk [vmem:[#allocation2 + $0x54] sm:$0xf] %vm2251_vm11, %v2198_v47  ;;  %v3231_v47 = vrot.slane %v4768_v39, 5  ;;  %v2554_v51 = vshrl.u32 %v4683_v44, 16  ;;  %v4668_v31 = vld [vmem:[%s5276_s19 + $0x90] sm:$0xf] }
 0x208   : > { %v2565_v59 = vrot.slane %v2563_v48, 5  ;;  %v4745_v48 = vld [vmem:[%s5276_s19 + $0x5c] sm:$0x1] }
 0x209   : > { %v3233_v58 = vrot.slane %v3231_v47, 4  ;;  %v2556_v52 = vrot.slane %v2554_v51, 4 }
 0x20a   : > { %2388 = vrot.lane.b32.xlu1 %v4666_v49, %s5229_s25  ;;  %v2567_v49 = vshrl.u32 %v4684_v40, 16  ;;  %v2671_v40 = vrot.slane %v2669_v36, 5 }
 0x20b   : > { %3268 = vrot.lane.b32.xlu0 %v3172_v53, %s5231_s27  ;;  %3266 = vrot.lane.b32.xlu2 %v3169_v57, %s5231_s27  ;;  %v2557_v53 = vshll.u32 %v4683_v44, 16  ;;  %v4767_v57 = vld [vmem:[%s5276_s19 + $0xb4] sm:$0xe] }
 0x20c   : > { %v2190_v62 = vpop.permute.xlu1 %2189  ;;  %v2569_v60 = vrot.slane %v2567_v49, 4  ;;  %v4789_v2 = vrot.slane %v4767_v57, 9  ;;  %v3420_v49 = vld [vmem:[%s7173_s1 + $0x10] sm:$0x3]  ;;  %v3178_v57 = vrot.slane %v4745_v48, 5 }
 0x20d   : > { %2269 = vst.msk [vmem:[#allocation2 + $0x44] sm:$0xf] %vm2251_vm11, %v2190_v62  ;;  %v2188_v0 = vpop.permute.xlu0 %2187  ;;  %v2204_v5 = vpop.permute.xlu2 %2203  ;;  %v3234_v62 = vrot.slane %v4769_v54, 5  ;;  %v2559_v55 = vrot.slane %v2557_v53, 5  ;;  %v3515_v53 = vunpack.c.l.b16 %v3420_v49  ;;  %v4733_v54 = vld [vmem:[%s5276_s19 + $0x2c] sm:$0x1] }
 0x20e   : > { %2268 = vst.msk [vmem:[#allocation2 + $0x40] sm:$0xf] %vm2251_vm11, %v2188_v0  ;;  %v2570_v7 = vor.u32 %v2569_v60, %v2565_v59 }
 0x20f   : > { %2276 = vst.msk [vmem:[#allocation2 + $0x60] sm:$0xf] %vm2251_vm11, %v2204_v5  ;;  %v4695_v5 = vld [vmem:[%s5276_s19 + $0x54] sm:$0xf]  ;;  %v2560_v10 = vor.u32 %v2559_v55, %v2556_v52  ;;  %v3150_v55 = vrot.slane %v4733_v54, 5 }
 0x210   : > { %v2650_v14 = vshrl.u32 %v4695_v5, 16  ;;  %v2653_v15 = vshll.u32 %v4695_v5, 16  ;;  %v2571_v16 = vrot.slane %v2570_v7, 4 }
 0x211   : > { %v2561_v19 = vrot.slane %v2560_v10, 4 }
 0x212   : > { %2406 = vrot.lane.b32.xlu1 %v4675_v6, %s5229_s25  ;;  %v4658_v6 = vld [vmem:[%s5276_s19 + $0x54] sm:$0xf]  ;;  %v2655_v26 = vrot.slane %v2653_v15, 5  ;;  %v4712_v15 = vld [vmem:[%s5276_s19 + $0x98] sm:$0x1] }
 0x213   : > { %2404 = vrot.lane.b32.xlu0 %v4674_v9, %s5229_s25  ;;  %2390 = vrot.lane.b32.xlu2 %v4667_v13, %s5229_s25  ;;  %v3235_v9 = vsel %vm5462_vm6, %v3233_v58, %v3234_v62  ;;  %v3232_v13 = vsel %vm5462_vm6, %v4789_v2, %v3231_v47  ;;  %v3518_v58 = vpack.c.b16 %v3515_v53, %v3515_v53  ;;  %v4710_v62 = vld [vmem:[%s5276_s19 + $0x90] sm:$0xf] }
 0x214   : > { %v2196_v17 = vpop.permute.xlu1 %2195 }
 0x215   : > { %2272 = vst.msk [vmem:[#allocation2 + $0x50] sm:$0xf] %vm2251_vm11, %v2196_v17  ;;  %v2194_v21 = vpop.permute.xlu0 %2193  ;;  %v2210_v24 = vpop.permute.xlu2 %2209  ;;  %v2575_v17 = vrot.slane %v2573_v8, 5  ;;  %v2770_v8 = vshrl.u32 %v4710_v62, 16 }
 0x216   : > { %2271 = vst.msk [vmem:[#allocation2 + $0x4c] sm:$0xf] %vm2251_vm11, %v2194_v21  ;;  %v2665_v21 = vrot.slane %v2663_v12, 4 }
 0x217   : > { %2279 = vst.msk [vmem:[#allocation2 + $0x6c] sm:$0xf] %vm2251_vm11, %v2210_v24  ;;  %v2652_v24 = vrot.slane %v2650_v14, 4  ;;  %v2576_v28 = vsel %vm5287_vm2, %v2571_v16, %v2575_v17  ;;  %v2772_v16 = vrot.slane %v2770_v8, 4 }
 0x219   : > { %v2656_v37 = vor.u32 %v2655_v26, %v2652_v24  ;;  %v2789_v24 = vshll.u32 %v4712_v15, 16  ;;  %v4669_v26 = vld [vmem:[%s5276_s19 + $0x94] sm:$0xf] }
 0x21a   : > { %2965 = vrot.lane.b32.xlu1 %v2854_v27, %s5230_s26 }
 0x21b   : > { %2951 = vrot.lane.b32.xlu0 %v2768_v29, %s5230_s26  ;;  %2949 = vrot.lane.b32.xlu2 %v2758_v34, %s5230_s26  ;;  %v2566_v29 = vsel %vm5287_vm2, %v2561_v19, %v2565_v59  ;;  %v2666_v34 = vor.u32 %v2665_v21, %v2661_v20  ;;  %v2657_v43 = vrot.slane %v2656_v37, 4  ;;  %v4723_v19 = vld [vmem:[%s5276_s19 + $0xc4] sm:$0xf]  ;;  %v4722_v21 = vld [vmem:[%s5276_s19 + $0xc0] sm:$0xf] }
 0x21c   : > { %v2202_v30 = vpop.permute.xlu1 %2201 }
 0x21d   : > { %2275 = vst.msk [vmem:[#allocation2 + $0x5c] sm:$0xf] %vm2251_vm11, %v2202_v30  ;;  %v2200_v41 = vpop.permute.xlu0 %2199  ;;  %v2216_v45 = vpop.permute.xlu2 %2215  ;;  %v3147_v30 = vrot.slane %v4732_v32, 5  ;;  %v2667_v39 = vrot.slane %v2666_v34, 4  ;;  %v2662_v51 = vsel %vm5287_vm2, %v2657_v43, %v2661_v20  ;;  %v2866_v32 = vshrl.u32 %v4722_v21, 16 }
 0x21e   : > { %2274 = vst.msk [vmem:[#allocation2 + $0x58] sm:$0xf] %vm2251_vm11, %v2200_v41  ;;  %v4744_v41 = vld [vmem:[%s5276_s19 + $0x58] sm:$0xf]  ;;  %v2869_v34 = vshll.u32 %v4722_v21, 16 }
 0x21f   : > { %2282 = vst.msk [vmem:[#allocation2 + $0x78] sm:$0xf] %vm2251_vm11, %v2216_v45  ;;  %v3148_v45 = vsel %vm5462_vm6, %v4777_v35, %v3147_v30  ;;  %v2672_v47 = vsel %vm5287_vm2, %v2667_v39, %v2671_v40  ;;  %v3149_v52 = vrot.slane %v3147_v30, 4  ;;  %v4724_v40 = vld [vmem:[%s5276_s19 + $0xc8] sm:$0x1] }
 0x220   : > { %v2885_v49 = vshll.u32 %v4724_v40, 16 }
 0x221   : > { %v3151_v10 = vsel %vm5462_vm6, %v3149_v52, %v3150_v55 }
 0x222   : > { %3288 = vrot.lane.b32.xlu1 %v3207_v46, %s5231_s27  ;;  %v3175_v46 = vrot.slane %v4744_v41, 5  ;;  %v2868_v41 = vrot.slane %v2866_v32, 4  ;;  %v4699_v32 = vld [vmem:[%s5276_s19 + $0x64] sm:$0xf] }
 0x223   : > { %3286 = vrot.lane.b32.xlu0 %v3204_v50, %s5231_s27  ;;  %2967 = vrot.lane.b32.xlu2 %v2864_v56, %s5230_s26  ;;  %v4743_v50 = vld [vmem:[%s5276_s19 + $0x54] sm:$0xe] }
 0x224   : > { %v2208_v61 = vpop.permute.xlu1 %2207  ;;  %v3177_v56 = vrot.slane %v3175_v46, 4  ;;  %v4781_v60 = vrot.slane %v4743_v50, 9  ;;  %v4677_v50 = vld [vmem:[%s5276_s19 + $0xc4] sm:$0xf] }
 0x225   : > { %2278 = vst.msk [vmem:[#allocation2 + $0x68] sm:$0xf] %vm2251_vm11, %v2208_v61  ;;  %v2206_v0 = vpop.permute.xlu0 %2205  ;;  %v2355_v4 = vpop.permute.xlu2 %2354  ;;  %v4711_v61 = vld [vmem:[%s5276_s19 + $0x94] sm:$0xf] }
 0x226   : > { %2277 = vst.msk [vmem:[#allocation2 + $0x64] sm:$0xf] %vm2251_vm11, %v2206_v0  ;;  %v3572_v0 = vsel %vm3570_vm13, %v3518_v58, 0  ;;  %v2779_v5 = vshll.u32 %v4711_v61, 16  ;;  %v3176_v7 = vsel %vm5462_vm6, %v4781_v60, %v3175_v46  ;;  %v4758_v46 = vld [vmem:[%s5276_s19 + $0x90] sm:$0xe] }
 0x227   : > { %2450 = vst.msk [vmem:[#allocation2 + $0x4] sm:$0xf] %vm2448_vm12, %v2355_v4  ;;  %5029 = vmatpush.bf16.msra.mxu2 %v3572_v0  ;;  %5030 = vmatpush.bf16.msra.mxu3 %v3572_v0  ;;  %v3179_v4 = vsel %vm5462_vm6, %v3177_v56, %v3178_v57  ;;  %v4786_v53 = vrot.slane %v4758_v46, 9  ;;  %v2887_v58 = vrot.slane %v2885_v49, 5  ;;  %v4653_v46 = vld [vmem:[%s5276_s19 + $0x34] sm:$0xf] }
 0x228   : > { %3579 = vmatpush.bf16.msra.mxu0 %v3572_v0  ;;  %5028 = vmatpush.bf16.msra.mxu1 %v3572_v0  ;;  %v2781_v12 = vrot.slane %v2779_v5, 5  ;;  %v4772_v0 = vld [vmem:[%s5276_s19 + $0xc8] sm:$0x1] }
 0x22a   : > { %2372 = vrot.lane.b32.xlu1 %v4658_v6, %s5229_s25  ;;  %v2783_v6 = vshrl.u32 %v4711_v61, 16 }
 0x22b   : > { %3304 = vrot.lane.b32.xlu0 %v3235_v9, %s5231_s27  ;;  %3302 = vrot.lane.b32.xlu2 %v3232_v13, %s5231_s27  ;;  %v2773_v9 = vshll.u32 %v4710_v62, 16 }
 0x22c   : > { %v2214_v18 = vpop.permute.xlu1 %2213  ;;  %5032 = vmatpush.bf16.msra.mxu2 %v4932_v3  ;;  %v2785_v13 = vrot.slane %v2783_v6, 4  ;;  %5033 = vmatpush.bf16.msra.mxu3 %v4932_v3  ;;  %v3241_v6 = vrot.slane %v4772_v0, 5 }
 0x22d   : > { %2281 = vst.msk [vmem:[#allocation2 + $0x74] sm:$0xf] %vm2251_vm11, %v2214_v18  ;;  %v2212_v22 = vpop.permute.xlu0 %2211  ;;  %v2361_v27 = vpop.permute.xlu2 %2360  ;;  %v2775_v17 = vrot.slane %v2773_v9, 5  ;;  %3580 = vmatpush.bf16.msra.mxu0 %v4932_v3  ;;  %5031 = vmatpush.bf16.msra.mxu1 %v4932_v3  ;;  %v4698_v9 = vld [vmem:[%s5276_s19 + $0x60] sm:$0xf] }
 0x22e   : > { %2280 = vst.msk [vmem:[#allocation2 + $0x70] sm:$0xf] %vm2251_vm11, %v2212_v22  ;;  %v4676_v22 = vld [vmem:[%s5276_s19 + $0xc0] sm:$0xf]  ;;  %v2786_v23 = vor.u32 %v2785_v13, %v2781_v12 }
 0x22f   : > { %2453 = vst.msk [vmem:[#allocation2 + $0x10] sm:$0xf] %vm2448_vm12, %v2361_v27  ;;  %v2776_v27 = vor.u32 %v2775_v17, %v2772_v16  ;;  %v2674_v16 = vshrl.u32 %v4698_v9, 16  ;;  %v2677_v17 = vshll.u32 %v4698_v9, 16  ;;  %v4747_v9 = vld [vmem:[%s5276_s19 + $0x64] sm:$0xf] }
 0x230   : > { %5035 = vmatpush.bf16.msra.mxu2 %v4931_v11  ;;  %5036 = vmatpush.bf16.msra.mxu3 %v4931_v11  ;;  %v2787_v36 = vrot.slane %v2786_v23, 4 }
 0x231   : > { %3581 = vmatpush.bf16.msra.mxu0 %v4931_v11  ;;  %5034 = vmatpush.bf16.msra.mxu1 %v4931_v11  ;;  %v2777_v35 = vrot.slane %v2776_v27, 4  ;;  %v2679_v27 = vrot.slane %v2677_v17, 5 }
 0x232   : > { %2919 = vrot.lane.b32.xlu1 %v2576_v28, %s5230_s26  ;;  %v2875_v28 = vshll.u32 %v4723_v19, 16 }
 0x233   : > { %2917 = vrot.lane.b32.xlu0 %v2566_v29, %s5230_s26  ;;  %2374 = vrot.lane.b32.xlu2 %v4659_v33, %s5229_s25  ;;  %v2879_v29 = vshrl.u32 %v4723_v19, 16  ;;  %v2791_v33 = vrot.slane %v2789_v24, 5 }
 0x234   : > { %v2353_v38 = vpop.permute.xlu1 %2352  ;;  %v2877_v30 = vrot.slane %v2875_v28, 5 }
 0x235   : > { %2449 = vst.msk [vmem:[#allocation2] sm:$0xf] %vm2448_vm12, %v2353_v38  ;;  %v2218_v42 = vpop.permute.xlu0 %2217  ;;  %v2401_v44 = vpop.permute.xlu2 %2400  ;;  %v2881_v38 = vrot.slane %v2879_v29, 4 }
 0x236   : > { %2283 = vst.msk [vmem:[#allocation2 + $0x7c] sm:$0xf] %vm2251_vm11, %v2218_v42  ;;  %v2871_v42 = vrot.slane %v2869_v34, 5  ;;  %v4688_v34 = vld [vmem:[%s5276_s19 + $0x38] sm:$0x1] }
 0x237   : > { %2473 = vst.msk [vmem:[#allocation2 + $0x60] sm:$0xf] %vm2448_vm12, %v2401_v44  ;;  %v2792_v44 = vsel %vm5287_vm2, %v2787_v36, %v2791_v33  ;;  %v2882_v48 = vor.u32 %v2881_v38, %v2877_v30 }
 0x239   : > { %v2883_v57 = vrot.slane %v2882_v48, 4 }
 0x23a   : > { %3254 = vrot.lane.b32.xlu1 %v3148_v45, %s5231_s27  ;;  %v2782_v45 = vsel %vm5287_vm2, %v2777_v35, %v2781_v12 }
 0x23b   : > { %2935 = vrot.lane.b32.xlu0 %v2672_v47, %s5230_s26  ;;  %2933 = vrot.lane.b32.xlu2 %v2662_v51, %s5230_s26  ;;  %v4759_v47 = vld [vmem:[%s5276_s19 + $0x94] sm:$0xf]  ;;  %v2872_v51 = vor.u32 %v2871_v42, %v2868_v41  ;;  %v2888_v55 = vsel %vm5287_vm2, %v2883_v57, %v2887_v58  ;;  %v2683_v41 = vshll.u32 %v4699_v32, 16  ;;  %v4660_v42 = vld [vmem:[%s5276_s19 + $0x60] sm:$0xf] }
 0x23c   : > { %v2359_v59 = vpop.permute.xlu1 %2358  ;;  %v3210_v54 = vrot.slane %v4759_v47, 5 }
 0x23d   : > { %2452 = vst.msk [vmem:[#allocation2 + $0xc] sm:$0xf] %vm2448_vm12, %v2359_v59  ;;  %v2357_v63 = vpop.permute.xlu0 %2356  ;;  %v2948_v2 = vpop.permute.xlu2 %2947  ;;  %v4771_v59 = vld [vmem:[%s5276_s19 + $0xc4] sm:$0xf]  ;;  %v2873_v61 = vrot.slane %v2872_v51, 4  ;;  %v2685_v49 = vrot.slane %v2683_v41, 5 }
 0x23e   : > { %2451 = vst.msk [vmem:[#allocation2 + $0x8] sm:$0xf] %vm2448_vm12, %v2357_v63  ;;  %v3211_v63 = vsel %vm5462_vm6, %v4786_v53, %v3210_v54  ;;  %v3238_v52 = vrot.slane %v4771_v59, 5  ;;  %v3212_v12 = vrot.slane %v3210_v54, 4  ;;  %v4735_v54 = vld [vmem:[%s5276_s19 + $0x34] sm:$0xf] }
 0x23f   : > { %v2878_v3 = vsel %vm5287_vm2, %v2873_v61, %v2877_v30 }
 0x240   : > { %v3240_v5 = vrot.slane %v3238_v52, 4 }
 0x242   : > { %3272 = vrot.lane.b32.xlu1 %v3179_v4, %s5231_s27  ;;  %v4760_v4 = vld [vmem:[%s5276_s19 + $0x98] sm:$0x1]  ;;  %v3242_v15 = vsel %vm5462_vm6, %v3240_v5, %v3241_v6 }
 0x243   : > { %3270 = vrot.lane.b32.xlu0 %v3176_v7, %s5231_s27  ;;  %3256 = vrot.lane.b32.xlu2 %v3151_v10, %s5231_s27  ;;  %v4687_v10 = vld [vmem:[%s5276_s19 + $0x34] sm:$0xf]  ;;  %v3213_v13 = vrot.slane %v4760_v4, 5 }
 0x244   : > { %v2387_v14 = vpop.permute.xlu1 %2386 }
 0x245   : > { %2466 = vst.msk [vmem:[#allocation2 + $0x44] sm:$0xf] %vm2448_vm12, %v2387_v14  ;;  %v2385_v18 = vpop.permute.xlu0 %2384  ;;  %v3283_v20 = vpop.permute.xlu2 %3282  ;;  %v3214_v21 = vsel %vm5462_vm6, %v3212_v12, %v3213_v13 }
 0x246   : > { %2465 = vst.msk [vmem:[#allocation2 + $0x40] sm:$0xf] %vm2448_vm12, %v2385_v18  ;;  %v2587_v18 = vshll.u32 %v4687_v10, 16 }
 0x247   : > { %3027 = vst.msk [vmem:[#allocation2 + $0x44] sm:$0xf] %vm3009_vm14, %v2948_v2  ;;  %v4770_v2 = vld [vmem:[%s5276_s19 + $0xc0] sm:$0xe] }
 0x248   : > { %v4790_v8 = vrot.slane %v4770_v2, 9  ;;  %v2589_v28 = vrot.slane %v2587_v18, 5  ;;  %v4746_v18 = vld [vmem:[%s5276_s19 + $0x60] sm:$0xe] }
 0x24a   : > { %2408 = vrot.lane.b32.xlu1 %v4676_v22, %s5229_s25  ;;  %v3239_v19 = vsel %vm5462_vm6, %v4790_v8, %v3238_v52  ;;  %v4686_v22 = vld [vmem:[%s5276_s19 + $0x30] sm:$0xf]  ;;  %v4736_v52 = vld [vmem:[%s5276_s19 + $0x38] sm:$0x1] }
 0x24b   : > { %2394 = vrot.lane.b32.xlu0 %v4669_v26, %s5229_s25  ;;  %2392 = vrot.lane.b32.xlu2 %v4668_v31, %s5229_s25  ;;  %v2578_v23 = vshrl.u32 %v4686_v22, 16  ;;  %v2581_v24 = vshll.u32 %v4686_v22, 16  ;;  %v2676_v26 = vrot.slane %v2674_v16, 4  ;;  %v3157_v5 = vrot.slane %v4736_v52, 5  ;;  %v4748_v16 = vld [vmem:[%s5276_s19 + $0x68] sm:$0x1] }
 0x24c   : > { %v2946_v37 = vpop.permute.xlu1 %2945  ;;  %v4725_v22 = vld [vmem:[%s5276_s19 + $0xcc] sm:$0xf] }
 0x24d   : > { %3026 = vst.msk [vmem:[#allocation2 + $0x40] sm:$0xf] %vm3009_vm14, %v2946_v37  ;;  %v2403_v39 = vpop.permute.xlu0 %2402  ;;  %v3301_v43 = vpop.permute.xlu2 %3300  ;;  %v2580_v35 = vrot.slane %v2578_v23, 4  ;;  %v2583_v30 = vrot.slane %v2581_v24, 5  ;;  %v2680_v40 = vor.u32 %v2679_v27, %v2676_v26  ;;  %v4714_v26 = vld [vmem:[%s5276_s19 + $0xa0] sm:$0xf] }
 0x24e   : > { %2474 = vst.msk [vmem:[#allocation2 + $0x64] sm:$0xf] %vm2448_vm12, %v2403_v39  ;;  %v4661_v39 = vld [vmem:[%s5276_s19 + $0x64] sm:$0xf]  ;;  %v4782_v27 = vrot.slane %v4746_v18, 9 }
 0x24f   : > { %3363 = vst.msk [vmem:[#allocation2 + $0x40] sm:$0xf] %vm3346_vm15, %v3283_v20  ;;  %v2591_v20 = vshrl.u32 %v4687_v10, 16  ;;  %v2584_v47 = vor.u32 %v2583_v30, %v2580_v35  ;;  %v2681_v48 = vrot.slane %v2680_v40, 4  ;;  %v4713_v35 = vld [vmem:[%s5276_s19 + $0x9c] sm:$0xf] }
 0x250   : > { %v2794_v30 = vshrl.u32 %v4713_v35, 16 }
 0x251   : > { %v2593_v36 = vrot.slane %v2591_v20, 4  ;;  %v2585_v57 = vrot.slane %v2584_v47, 4  ;;  %v2686_v61 = vsel %vm5287_vm2, %v2681_v48, %v2685_v49 }
 0x252   : > { %2955 = vrot.lane.b32.xlu1 %v2792_v44, %s5230_s26  ;;  %v2597_v44 = vshll.u32 %v4688_v34, 16  ;;  %v2796_v48 = vrot.slane %v2794_v30, 4 }
 0x253   : > { %2953 = vrot.lane.b32.xlu0 %v2782_v45, %s5230_s26  ;;  %2410 = vrot.lane.b32.xlu2 %v4677_v50, %s5229_s25  ;;  %v2687_v45 = vshrl.u32 %v4699_v32, 16  ;;  %v2590_v0 = vsel %vm5287_vm2, %v2585_v57, %v2589_v28  ;;  %v2893_v32 = vshll.u32 %v4725_v22, 16 }
 0x254   : > { %v2964_v56 = vpop.permute.xlu1 %2963  ;;  %v2599_v53 = vrot.slane %v2597_v44, 5 }
 0x255   : > { %3035 = vst.msk [vmem:[#allocation2 + $0x64] sm:$0xf] %vm3009_vm14, %v2964_v56  ;;  %v2962_v60 = vpop.permute.xlu0 %2961  ;;  %v2914_v62 = vpop.permute.xlu2 %2913  ;;  %v2689_v58 = vrot.slane %v2687_v45, 4  ;;  %v2895_v40 = vrot.slane %v2893_v32, 5  ;;  %v4773_v32 = vld [vmem:[%s5276_s19 + $0xcc] sm:$0xe] }
 0x256   : > { %3034 = vst.msk [vmem:[#allocation2 + $0x60] sm:$0xf] %vm3009_vm14, %v2962_v60  ;;  %v4700_v60 = vld [vmem:[%s5276_s19 + $0x68] sm:$0x1] }
 0x257   : > { %3372 = vst.msk [vmem:[#allocation2 + $0x64] sm:$0xf] %vm3346_vm15, %v3301_v43  ;;  %v2594_v43 = vor.u32 %v2593_v36, %v2589_v28  ;;  %v2690_v2 = vor.u32 %v2689_v58, %v2685_v49  ;;  %v2803_v36 = vshll.u32 %v4714_v26, 16 }
 0x258   : > { %3010 = vst.msk [vmem:[#allocation2] sm:$0xf] %vm3009_vm14, %v2914_v62  ;;  %v3154_v62 = vrot.slane %v4735_v54, 5 }
 0x259   : > { %v2595_v51 = vrot.slane %v2594_v43, 4  ;;  %v2691_v10 = vrot.slane %v2690_v2, 4  ;;  %v4715_v43 = vld [vmem:[%s5276_s19 + $0xa4] sm:$0x1]  ;;  %v2805_v44 = vrot.slane %v2803_v36, 5 }
 0x25a   : > { %3290 = vrot.lane.b32.xlu1 %v3211_v63, %s5231_s27  ;;  %v3156_v4 = vrot.slane %v3154_v62, 4  ;;  %v2813_v58 = vshll.u32 %v4715_v43, 16  ;;  %v4762_v2 = vld [vmem:[%s5276_s19 + $0xa0] sm:$0xf] }
 0x25b   : > { %2971 = vrot.lane.b32.xlu0 %v2888_v55, %s5230_s26  ;;  %2969 = vrot.lane.b32.xlu2 %v2878_v3, %s5230_s26  ;;  %v2600_v63 = vsel %vm5287_vm2, %v2595_v51, %v2599_v53  ;;  %v4734_v55 = vld [vmem:[%s5276_s19 + $0x30] sm:$0xe]  ;;  %v2693_v3 = vshll.u32 %v4700_v60, 16  ;;  %v4671_v60 = vld [vmem:[%s5276_s19 + $0xa0] sm:$0xf] }
 0x25c   : > { %v3299_v7 = vpop.permute.xlu1 %3298  ;;  %v3158_v13 = vsel %vm5462_vm6, %v3156_v4, %v3157_v5  ;;  %v4679_v51 = vld [vmem:[%s5276_s19 + $0xd0] sm:$0xf] }
 0x25d   : > { %3371 = vst.msk [vmem:[#allocation2 + $0x60] sm:$0xf] %vm3346_vm15, %v3299_v7  ;;  %v3285_v11 = vpop.permute.xlu0 %3284  ;;  %v2932_v14 = vpop.permute.xlu2 %2931  ;;  %v4778_v7 = vrot.slane %v4734_v55, 9 }
 0x25e   : > { %3364 = vst.msk [vmem:[#allocation2 + $0x44] sm:$0xf] %vm3346_vm15, %v3285_v11  ;;  %v2695_v11 = vrot.slane %v2693_v3, 5 }
 0x260   : > { %v2696_v17 = vsel %vm5287_vm2, %v2691_v10, %v2695_v11  ;;  %v4763_v11 = vld [vmem:[%s5276_s19 + $0xa4] sm:$0x1] }
 0x262   : > { %3308 = vrot.lane.b32.xlu1 %v3242_v15, %s5231_s27  ;;  %v3182_v15 = vrot.slane %v4747_v9, 5  ;;  %v3217_v9 = vrot.slane %v4762_v2, 5 }
 0x263   : > { %3306 = vrot.lane.b32.xlu0 %v3239_v19, %s5231_s27  ;;  %3292 = vrot.lane.b32.xlu2 %v3214_v21, %s5231_s27  ;;  %v3185_v21 = vrot.slane %v4748_v16, 5 }
 0x264   : > { %v2371_v29 = vpop.permute.xlu1 %2370  ;;  %v4927_v31 = vld [vmem:[#allocation2 + $0x60] sm:$0xff]  ;;  %v3184_v20 = vrot.slane %v3182_v15, 4  ;;  %v3219_v16 = vrot.slane %v3217_v9, 4 }
 0x265   : > { %2458 = vst.msk [vmem:[#allocation2 + $0x24] sm:$0xf] %vm2448_vm12, %v2371_v29  ;;  %v2369_v33 = vpop.permute.xlu0 %2368  ;;  %v4923_v37 = vld [vmem:[#allocation2 + $0x40] sm:$0xff]  ;;  %4876 = vmatmul.msk.bf16.vlgmr.msra.gmra.mxu3 %vm3521_vm0, %v4927_v31  ;;  %v3267_v38 = vpop.permute.xlu2 %3266  ;;  %v4670_v29 = vld [vmem:[%s5276_s19 + $0x9c] sm:$0xf]  ;;  %v2890_v31 = vshrl.u32 %v4725_v22, 16 }
 0x266   : > { %2457 = vst.msk [vmem:[#allocation2 + $0x20] sm:$0xf] %vm2448_vm12, %v2369_v33  ;;  %4872 = vmatmul.msk.bf16.vlgmr.msra.gmra.mxu2 %vm3521_vm0, %v4923_v37  ;;  %v3186_v34 = vsel %vm5462_vm6, %v3184_v20, %v3185_v21  ;;  %v2807_v33 = vshrl.u32 %v4714_v26, 16  ;;  %v3183_v37 = vsel %vm5462_vm6, %v4782_v27, %v3182_v15  ;;  %v4774_v21 = vld [vmem:[%s5276_s19 + $0xd0] sm:$0xf] }
 0x267   : > { %3019 = vst.msk [vmem:[#allocation2 + $0x24] sm:$0xf] %vm3009_vm14, %v2932_v14  ;;  %v3155_v14 = vsel %vm5462_vm6, %v4778_v7, %v3154_v62  ;;  %v4727_v7 = vld [vmem:[%s5276_s19 + $0xd4] sm:$0x1] }
 0x268   : > { %v2809_v45 = vrot.slane %v2807_v33, 4  ;;  %v2909_v15 = vshll.u32 %v4727_v7, 16  ;;  %v4655_v7 = vld [vmem:[%s5276_s19 + $0x40] sm:$0xf] }
 0x26a   : > { %2378 = vrot.lane.b32.xlu1 %v4661_v39, %s5229_s25  ;;  %v2892_v39 = vrot.slane %v2890_v31, 4  ;;  %v2810_v57 = vor.u32 %v2809_v45, %v2805_v44 }
 0x26b   : > { %2376 = vrot.lane.b32.xlu0 %v4660_v42, %s5229_s25  ;;  %2362 = vrot.lane.b32.xlu2 %v4653_v46, %s5229_s25  ;;  %v4726_v42 = vld [vmem:[%s5276_s19 + $0xd0] sm:$0xf] }
 0x26c   : > { %v2930_v50 = vpop.permute.xlu1 %2929  ;;  %v2896_v53 = vor.u32 %v2895_v40, %v2892_v39  ;;  %v2899_v54 = vshll.u32 %v4726_v42, 16  ;;  %v2811_v55 = vrot.slane %v2810_v57, 4  ;;  %v4791_v39 = vrot.slane %v4773_v32, 9  ;;  %v4691_v57 = vld [vmem:[%s5276_s19 + $0x44] sm:$0x1] }
 0x26d   : > { %3018 = vst.msk [vmem:[#allocation2 + $0x20] sm:$0xf] %vm3009_vm14, %v2930_v50  ;;  %v2916_v56 = vpop.permute.xlu0 %2915  ;;  %v2391_v59 = vpop.permute.xlu2 %2390 }
 0x26e   : > { %3011 = vst.msk [vmem:[#allocation2 + $0x4] sm:$0xf] %vm3009_vm14, %v2916_v56  ;;  %v4678_v56 = vld [vmem:[%s5276_s19 + $0xcc] sm:$0xf]  ;;  %v2897_v62 = vrot.slane %v2896_v53, 4 }
 0x26f   : > { %3355 = vst.msk [vmem:[#allocation2 + $0x20] sm:$0xf] %vm3346_vm15, %v3267_v38  ;;  %v2797_v38 = vshll.u32 %v4713_v35, 16 }
 0x270   : > { %2468 = vst.msk [vmem:[#allocation2 + $0x4c] sm:$0xf] %vm2448_vm12, %v2391_v59  ;;  %v2903_v59 = vshrl.u32 %v4726_v42, 16 }
 0x271   : > { %v2799_v49 = vrot.slane %v2797_v38, 5  ;;  %v4690_v38 = vld [vmem:[%s5276_s19 + $0x40] sm:$0xf] }
 0x272   : > { %2937 = vrot.lane.b32.xlu1 %v2686_v61, %s5230_s26  ;;  %v2905_v5 = vrot.slane %v2903_v59, 4  ;;  %v2611_v45 = vshll.u32 %v4690_v38, 16 }
 0x273   : > { %2923 = vrot.lane.b32.xlu0 %v2600_v63, %s5230_s26  ;;  %2921 = vrot.lane.b32.xlu2 %v2590_v0, %s5230_s26  ;;  %v2800_v61 = vor.u32 %v2799_v49, %v2796_v48  ;;  %v2901_v63 = vrot.slane %v2899_v54, 5  ;;  %v2815_v0 = vrot.slane %v2813_v58, 5  ;;  %v4689_v48 = vld [vmem:[%s5276_s19 + $0x3c] sm:$0xf] }
 0x274   : > { %v3253_v6 = vpop.permute.xlu1 %3252  ;;  %v2602_v49 = vshrl.u32 %v4689_v48, 16  ;;  %v2613_v58 = vrot.slane %v2611_v45, 5 }
 0x275   : > { %3348 = vst.msk [vmem:[#allocation2 + $0x4] sm:$0xf] %vm3346_vm15, %v3253_v6  ;;  %v3251_v8 = vpop.permute.xlu0 %3250  ;;  %v2950_v12 = vpop.permute.xlu2 %2949  ;;  %v2801_v4 = vrot.slane %v2800_v61, 4  ;;  %v2816_v10 = vsel %vm5287_vm2, %v2811_v55, %v2815_v0  ;;  %v4663_v55 = vld [vmem:[%s5276_s19 + $0x70] sm:$0xf] }
 0x276   : > { %3347 = vst.msk [vmem:[#allocation2] sm:$0xf] %vm3346_vm15, %v3251_v8  ;;  %v2902_v8 = vsel %vm5287_vm2, %v2897_v62, %v2901_v63  ;;  %v2604_v62 = vrot.slane %v2602_v49, 4 }
 0x27a   : > { %3260 = vrot.lane.b32.xlu1 %v3158_v13, %s5231_s27  ;;  %v2806_v13 = vsel %vm5287_vm2, %v2801_v4, %v2805_v44 }
 0x27b   : > { %3258 = vrot.lane.b32.xlu0 %v3155_v14, %s5231_s27  ;;  %2939 = vrot.lane.b32.xlu2 %v2696_v17, %s5230_s26  ;;  %v2906_v14 = vor.u32 %v2905_v5, %v2901_v63  ;;  %v3220_v17 = vrot.slane %v4763_v11, 5  ;;  %v2621_v5 = vshll.u32 %v4691_v57, 16 }
 0x27c   : > { %v2389_v19 = vpop.permute.xlu1 %2388 }
 0x27d   : > { %2467 = vst.msk [vmem:[#allocation2 + $0x48] sm:$0xf] %vm2448_vm12, %v2389_v19  ;;  %v3269_v23 = vpop.permute.xlu0 %3268  ;;  %v4915_v24 = vld [vmem:[#allocation2] sm:$0xff]  ;;  %v2968_v28 = vpop.permute.xlu2 %2967  ;;  %v2907_v22 = vrot.slane %v2906_v14, 4  ;;  %v3221_v26 = vsel %vm5462_vm6, %v3219_v16, %v3220_v17 }
 0x27e   : > { %3356 = vst.msk [vmem:[#allocation2 + $0x24] sm:$0xf] %vm3346_vm15, %v3269_v23  ;;  %4864 = vmatmul.msk.bf16.vlgmr.msra.gmra.mxu0 %vm3521_vm0, %v4915_v24  ;;  %v2911_v23 = vrot.slane %v2909_v15, 5  ;;  %v4738_v14 = vld [vmem:[%s5276_s19 + $0x40] sm:$0xf] }
 0x27f   : > { %3028 = vst.msk [vmem:[#allocation2 + $0x48] sm:$0xf] %vm3009_vm14, %v2950_v12  ;;  %v4761_v12 = vld [vmem:[%s5276_s19 + $0x9c] sm:$0xe] }
 0x280   : > { %v4787_v19 = vrot.slane %v4761_v12, 9  ;;  %v2912_v31 = vsel %vm5287_vm2, %v2907_v22, %v2911_v23  ;;  %v4739_v23 = vld [vmem:[%s5276_s19 + $0x44] sm:$0x1] }
 0x282   : > { %2396 = vrot.lane.b32.xlu1 %v4670_v29, %s5229_s25  ;;  %v3218_v27 = vsel %vm5462_vm6, %v4787_v19, %v3217_v9  ;;  %v4775_v29 = vld [vmem:[%s5276_s19 + $0xd4] sm:$0x1] }
 0x283   : > { %3276 = vrot.lane.b32.xlu0 %v3186_v34, %s5231_s27  ;;  %3274 = vrot.lane.b32.xlu2 %v3183_v37, %s5231_s27  ;;  %v3248_v33 = vrot.slane %v4775_v29, 5  ;;  %v4701_v37 = vld [vmem:[%s5276_s19 + $0x6c] sm:$0xf]  ;;  %v4703_v19 = vld [vmem:[%s5276_s19 + $0x74] sm:$0x1] }
 0x284   : > { %v2407_v41 = vpop.permute.xlu1 %2406  ;;  %v2698_v42 = vshrl.u32 %v4701_v37, 16  ;;  %v2701_v43 = vshll.u32 %v4701_v37, 16  ;;  %v4750_v37 = vld [vmem:[%s5276_s19 + $0x70] sm:$0xf] }
 0x285   : > { %2476 = vst.msk [vmem:[#allocation2 + $0x6c] sm:$0xf] %vm2448_vm12, %v2407_v41  ;;  %v2405_v46 = vpop.permute.xlu0 %2404  ;;  %v4919_v47 = vld [vmem:[#allocation2 + $0x20] sm:$0xff]  ;;  %v3303_v50 = vpop.permute.xlu2 %3302  ;;  %v4654_v41 = vld [vmem:[%s5276_s19 + $0x3c] sm:$0xf] }
 0x286   : > { %2475 = vst.msk [vmem:[#allocation2 + $0x68] sm:$0xf] %vm2448_vm12, %v2405_v46  ;;  %4868 = vmatmul.msk.bf16.vlgmr.msra.gmra.mxu1 %vm3521_vm0, %v4919_v47  ;;  %v2615_v46 = vshrl.u32 %v4690_v38, 16  ;;  %v2703_v53 = vrot.slane %v2701_v43, 5 }
 0x287   : > { %3037 = vst.msk [vmem:[#allocation2 + $0x6c] sm:$0xf] %vm3009_vm14, %v2968_v28  ;;  %v3245_v28 = vrot.slane %v4774_v21, 5  ;;  %v3161_v21 = vrot.slane %v4738_v14, 5 }
 0x288   : > { %v2617_v59 = vrot.slane %v2615_v46, 4 }
 0x289   : > { %v3247_v36 = vrot.slane %v3245_v28, 4  ;;  %v3246_v47 = vsel %vm5462_vm6, %v4791_v39, %v3245_v28  ;;  %v2717_v28 = vshll.u32 %v4703_v19, 16  ;;  %v3163_v29 = vrot.slane %v3161_v21, 4 }
 0x28a   : > { %2414 = vrot.lane.b32.xlu1 %v4679_v51, %s5229_s25  ;;  %v2700_v51 = vrot.slane %v2698_v42, 4  ;;  %v2618_v4 = vor.u32 %v2617_v59, %v2613_v58  ;;  %v4751_v42 = vld [vmem:[%s5276_s19 + $0x74] sm:$0x1] }
 0x28b   : > { %2412 = vrot.lane.b32.xlu0 %v4678_v56, %s5229_s25  ;;  %2398 = vrot.lane.b32.xlu2 %v4671_v60, %s5229_s25  ;;  %v3249_v44 = vsel %vm5462_vm6, %v3247_v36, %v3248_v33  ;;  %v4702_v56 = vld [vmem:[%s5276_s19 + $0x70] sm:$0xf] }
 0x28c   : > { %v2966_v52 = vpop.permute.xlu1 %2965  ;;  %v2704_v0 = vor.u32 %v2703_v53, %v2700_v51  ;;  %v2707_v2 = vshll.u32 %v4702_v56, 16  ;;  %v2619_v12 = vrot.slane %v2618_v4, 4 }
 0x28d   : > { %3036 = vst.msk [vmem:[#allocation2 + $0x68] sm:$0xf] %vm3009_vm14, %v2966_v52  ;;  %v2952_v3 = vpop.permute.xlu0 %2951  ;;  %v2375_v6 = vpop.permute.xlu2 %2374 }
 0x28e   : > { %3029 = vst.msk [vmem:[#allocation2 + $0x4c] sm:$0xf] %vm3009_vm14, %v2952_v3  ;;  %v4662_v3 = vld [vmem:[%s5276_s19 + $0x6c] sm:$0xf]  ;;  %v2705_v9 = vrot.slane %v2704_v0, 4 }
 0x28f   : > { %3373 = vst.msk [vmem:[#allocation2 + $0x68] sm:$0xf] %vm3346_vm15, %v3303_v50  ;;  %v2605_v50 = vshll.u32 %v4689_v48, 16 }
 0x290   : > { %2460 = vst.msk [vmem:[#allocation2 + $0x2c] sm:$0xf] %vm2448_vm12, %v2375_v6  ;;  %v2711_v6 = vshrl.u32 %v4702_v56, 16 }
 0x291   : > { %v2607_v63 = vrot.slane %v2605_v50, 5 }
 0x292   : > { %2973 = vrot.lane.b32.xlu1 %v2902_v8, %s5230_s26  ;;  %v2713_v17 = vrot.slane %v2711_v6, 4 }
 0x293   : > { %2959 = vrot.lane.b32.xlu0 %v2816_v10, %s5230_s26  ;;  %2957 = vrot.lane.b32.xlu2 %v2806_v13, %s5230_s26  ;;  %v2608_v8 = vor.u32 %v2607_v63, %v2604_v62  ;;  %v2709_v10 = vrot.slane %v2707_v2, 5  ;;  %v2623_v13 = vrot.slane %v2621_v5, 5  ;;  %v6658_v5 = vld [vmem:[%s7174_s2] ss:$0 sm:$0xff] }
 0x294   : > { %v3289_v18 = vpop.permute.xlu1 %3288 }
 0x295   : > { %3366 = vst.msk [vmem:[#allocation2 + $0x4c] sm:$0xf] %vm3346_vm15, %v3289_v18  ;;  %v3287_v20 = vpop.permute.xlu0 %3286  ;;  %v2934_v24 = vpop.permute.xlu2 %2933  ;;  %v2609_v16 = vrot.slane %v2608_v8, 4  ;;  %v2624_v22 = vsel %vm5287_vm2, %v2619_v12, %v2623_v13 }
 0x296   : > { %3365 = vst.msk [vmem:[#allocation2 + $0x48] sm:$0xf] %vm3346_vm15, %v3287_v20  ;;  %v2710_v20 = vsel %vm5287_vm2, %v2705_v9, %v2709_v10 }
 0x29a   : > { %3296 = vrot.lane.b32.xlu1 %v3221_v26, %s5231_s27  ;;  %v2614_v26 = vsel %vm5287_vm2, %v2609_v16, %v2613_v58 }
 0x29b   : > { %3294 = vrot.lane.b32.xlu0 %v3218_v27, %s5231_s27  ;;  %2975 = vrot.lane.b32.xlu2 %v2912_v31, %s5230_s26  ;;  %v2714_v27 = vor.u32 %v2713_v17, %v2709_v10  ;;  %v3164_v31 = vrot.slane %v4739_v23, 5 }
 0x29c   : > { %v2373_v34 = vpop.permute.xlu1 %2372 }
 0x29d   : > { %2459 = vst.msk [vmem:[#allocation2 + $0x28] sm:$0xf] %vm2448_vm12, %v2373_v34  ;;  %v3305_v35 = vpop.permute.xlu0 %3304  ;;  %v4924_v30 = vld [vmem:[#allocation2 + $0x48] sm:$0xff]  ;;  %v3257_v40 = vpop.permute.xlu2 %3256  ;;  %v3165_v39 = vsel %vm5462_vm6, %v3163_v29, %v3164_v31 }
 0x29e   : > { %3374 = vst.msk [vmem:[#allocation2 + $0x6c] sm:$0xf] %vm3346_vm15, %v3305_v35  ;;  %4873 = vmatmul.msk.bf16.gmra.mxu2 %vm3521_vm0, %v4924_v30  ;;  %v2715_v35 = vrot.slane %v2714_v27, 4  ;;  %v2719_v30 = vrot.slane %v2717_v28, 5 }
 0x29f   : > { %3020 = vst.msk [vmem:[#allocation2 + $0x28] sm:$0xf] %vm3009_vm14, %v2934_v24  ;;  %v4737_v24 = vld [vmem:[%s5276_s19 + $0x3c] sm:$0xe] }
 0x2a0   : > { %v4779_v36 = vrot.slane %v4737_v24, 9  ;;  %v2720_v43 = vsel %vm5287_vm2, %v2715_v35, %v2719_v30 }
 0x2a2   : > { %2364 = vrot.lane.b32.xlu1 %v4654_v41, %s5229_s25  ;;  %v3189_v41 = vrot.slane %v4750_v37, 5 }
 0x2a3   : > { %3312 = vrot.lane.b32.xlu0 %v3249_v44, %s5231_s27  ;;  %3310 = vrot.lane.b32.xlu2 %v3246_v47, %s5231_s27  ;;  %v4749_v44 = vld [vmem:[%s5276_s19 + $0x6c] sm:$0xe]  ;;  %v3192_v47 = vrot.slane %v4751_v42, 5 }
 0x2a4   : > { %v2920_v54 = vpop.permute.xlu1 %2919  ;;  %v3191_v46 = vrot.slane %v3189_v41, 4  ;;  %v4783_v50 = vrot.slane %v4749_v44, 9 }
 0x2a5   : > { %3013 = vst.msk [vmem:[#allocation2 + $0xc] sm:$0xf] %vm3009_vm14, %v2920_v54  ;;  %v2918_v60 = vpop.permute.xlu0 %2917  ;;  %v4928_v61 = vld [vmem:[#allocation2 + $0x68] sm:$0xff]  ;;  %v2393_v52 = vpop.permute.xlu2 %2392 }
 0x2a6   : > { %3012 = vst.msk [vmem:[#allocation2 + $0x8] sm:$0xf] %vm3009_vm14, %v2918_v60  ;;  %4877 = vmatmul.msk.bf16.gmra.mxu3 %vm3521_vm0, %v4928_v61  ;;  %v3193_v25 = vsel %vm5462_vm6, %v3191_v46, %v3192_v47  ;;  %v3190_v53 = vsel %vm5462_vm6, %v4783_v50, %v3189_v41 }
 0x2a7   : > { %3350 = vst.msk [vmem:[#allocation2 + $0xc] sm:$0xf] %vm3346_vm15, %v3257_v40  ;;  %v3162_v40 = vsel %vm5462_vm6, %v4779_v36, %v3161_v21 }
 0x2a8   : > { %2469 = vst.msk [vmem:[#allocation2 + $0x50] sm:$0xf] %vm2448_vm12, %v2393_v52 }
 0x2aa   : > { %2382 = vrot.lane.b32.xlu1 %v4663_v55, %s5229_s25 }
 0x2ab   : > { %2380 = vrot.lane.b32.xlu0 %v4662_v3, %s5229_s25  ;;  %2366 = vrot.lane.b32.xlu2 %v4655_v7, %s5229_s25 }
 0x2ac   : > { %v3255_v11 = vpop.permute.xlu1 %3254 }
 0x2ad   : > { %3349 = vst.msk [vmem:[#allocation2 + $0x8] sm:$0xf] %vm3346_vm15, %v3255_v11  ;;  %v2936_v15 = vpop.permute.xlu0 %2935  ;;  %v2411_v18 = vpop.permute.xlu2 %2410 }
 0x2ae   : > { %3021 = vst.msk [vmem:[#allocation2 + $0x2c] sm:$0xf] %vm3009_vm14, %v2936_v15 }
 0x2af   : > { %2478 = vst.msk [vmem:[#allocation2 + $0x74] sm:$0xf] %vm2448_vm12, %v2411_v18 }
 0x2b2   : > { %2941 = vrot.lane.b32.xlu1 %v2710_v20, %s5230_s26 }
 0x2b3   : > { %2927 = vrot.lane.b32.xlu0 %v2624_v22, %s5230_s26  ;;  %2925 = vrot.lane.b32.xlu2 %v2614_v26, %s5230_s26 }
 0x2b4   : > { %v3273_v32 = vpop.permute.xlu1 %3272  ;;  %v4916_v34 = vld [vmem:[#allocation2 + $0x8] sm:$0xff] }
 0x2b5   : > { %3358 = vst.msk [vmem:[#allocation2 + $0x2c] sm:$0xf] %vm3346_vm15, %v3273_v32  ;;  %v3271_v33 = vpop.permute.xlu0 %3270  ;;  %4865 = vmatmul.msk.bf16.gmra.mxu0 %vm3521_vm0, %v4916_v34  ;;  %v2970_v38 = vpop.permute.xlu2 %2969 }
 0x2b6   : > { %3357 = vst.msk [vmem:[#allocation2 + $0x28] sm:$0xf] %vm3346_vm15, %v3271_v33 }
 0x2ba   : > { %3264 = vrot.lane.b32.xlu1 %v3165_v39, %s5231_s27 }
 0x2bb   : > { %3262 = vrot.lane.b32.xlu0 %v3162_v40, %s5231_s27  ;;  %2943 = vrot.lane.b32.xlu2 %v2720_v43, %s5230_s26 }
 0x2bc   : > { %v2409_v45 = vpop.permute.xlu1 %2408 }
 0x2bd   : > { %2477 = vst.msk [vmem:[#allocation2 + $0x70] sm:$0xf] %vm2448_vm12, %v2409_v45  ;;  %v2395_v48 = vpop.permute.xlu0 %2394  ;;  %v4920_v49 = vld [vmem:[#allocation2 + $0x28] sm:$0xff]  ;;  %v3293_v51 = vpop.permute.xlu2 %3292 }
 0x2be   : > { %2470 = vst.msk [vmem:[#allocation2 + $0x54] sm:$0xf] %vm2448_vm12, %v2395_v48  ;;  %4869 = vmatmul.msk.bf16.gmra.mxu1 %vm3521_vm0, %v4920_v49 }
 0x2bf   : > { %3038 = vst.msk [vmem:[#allocation2 + $0x70] sm:$0xf] %vm3009_vm14, %v2970_v38 }
 0x2c3   : > { %3280 = vrot.lane.b32.xlu0 %v3193_v25, %s5231_s27  ;;  %3278 = vrot.lane.b32.xlu2 %v3190_v53, %s5231_s27 }
 0x2c4   : > { %v2956_v54 = vpop.permute.xlu1 %2955 }
 0x2c5   : > { %3031 = vst.msk [vmem:[#allocation2 + $0x54] sm:$0xf] %vm3009_vm14, %v2956_v54  ;;  %v2954_v56 = vpop.permute.xlu0 %2953  ;;  %v2363_v57 = vpop.permute.xlu2 %2362 }
 0x2c6   : > { %3030 = vst.msk [vmem:[#allocation2 + $0x50] sm:$0xf] %vm3009_vm14, %v2954_v56 }
 0x2c7   : > { %3368 = vst.msk [vmem:[#allocation2 + $0x54] sm:$0xf] %vm3346_vm15, %v3293_v51 }
 0x2c8   : > { %2454 = vst.msk [vmem:[#allocation2 + $0x14] sm:$0xf] %vm2448_vm12, %v2363_v57 }
 0x2cc   : > { %v3291_v58 = vpop.permute.xlu1 %3290 }
 0x2cd   : > { %3367 = vst.msk [vmem:[#allocation2 + $0x50] sm:$0xf] %vm3346_vm15, %v3291_v58  ;;  %v2972_v1 = vpop.permute.xlu0 %2971  ;;  %v2922_v59 = vpop.permute.xlu2 %2921 }
 0x2ce   : > { %3039 = vst.msk [vmem:[#allocation2 + $0x74] sm:$0xf] %vm3009_vm14, %v2972_v1 }
 0x2cf   : > { %3014 = vst.msk [vmem:[#allocation2 + $0x10] sm:$0xf] %vm3009_vm14, %v2922_v59 }
 0x2d4   : > { %v3309_v60 = vpop.permute.xlu1 %3308  ;;  %v4925_v61 = vld [vmem:[#allocation2 + $0x50] sm:$0xff] }
 0x2d5   : > { %3376 = vst.msk [vmem:[#allocation2 + $0x74] sm:$0xf] %vm3346_vm15, %v3309_v60  ;;  %v3307_v62 = vpop.permute.xlu0 %3306  ;;  %4874 = vmatmul.msk.bf16.gmra.mxu2 %vm3521_vm0, %v4925_v61  ;;  %v2940_v63 = vpop.permute.xlu2 %2939 }
 0x2d6   : > { %3375 = vst.msk [vmem:[#allocation2 + $0x70] sm:$0xf] %vm3346_vm15, %v3307_v62 }
 0x2dc   : > { %v2379_v52 = vpop.permute.xlu1 %2378 }
 0x2dd   : > { %2462 = vst.msk [vmem:[#allocation2 + $0x34] sm:$0xf] %vm2448_vm12, %v2379_v52  ;;  %v2377_v55 = vpop.permute.xlu0 %2376  ;;  %v4929_v0 = vld [vmem:[#allocation2 + $0x70] sm:$0xff]  ;;  %v3275_v2 = vpop.permute.xlu2 %3274 }
 0x2de   : > { %2461 = vst.msk [vmem:[#allocation2 + $0x30] sm:$0xf] %vm2448_vm12, %v2377_v55  ;;  %4878 = vmatmul.msk.bf16.gmra.mxu3 %vm3521_vm0, %v4929_v0 }
 0x2df   : > { %3023 = vst.msk [vmem:[#allocation2 + $0x34] sm:$0xf] %vm3009_vm14, %v2940_v63 }
 0x2e4   : > { %v2938_v3 = vpop.permute.xlu1 %2937 }
 0x2e5   : > { %3022 = vst.msk [vmem:[#allocation2 + $0x30] sm:$0xf] %vm3009_vm14, %v2938_v3  ;;  %v2924_v4 = vpop.permute.xlu0 %2923  ;;  %v2399_v6 = vpop.permute.xlu2 %2398 }
 0x2e6   : > { %3015 = vst.msk [vmem:[#allocation2 + $0x14] sm:$0xf] %vm3009_vm14, %v2924_v4 }
 0x2e7   : > { %3359 = vst.msk [vmem:[#allocation2 + $0x30] sm:$0xf] %vm3346_vm15, %v3275_v2 }
 0x2e8   : > { %2472 = vst.msk [vmem:[#allocation2 + $0x5c] sm:$0xf] %vm2448_vm12, %v2399_v6  ;;  %v3643_v7 = vpop.f32.mrf.mxu3 }
 0x2e9   : > { %v3623_v8 = vpop.f32.mrf.mxu2  ;;  %v6663_v9 = vadd.f32 %v6658_v5, %v3643_v7 }
 0x2ea   : > { %v6666_v10 = vadd.f32 %v6658_v5, %v3623_v8 }
 0x2eb   : > { %v4904_v11 = vmul.f32 -1.442695, %v6663_v9 }
 0x2ec   : > { %v3261_v12 = vpop.permute.xlu1 %3260  ;;  %v4896_v13 = vmul.f32 -1.442695, %v6666_v10 }
 0x2ed   : > { %3352 = vst.msk [vmem:[#allocation2 + $0x14] sm:$0xf] %vm3346_vm15, %v3261_v12  ;;  %v3259_v14 = vpop.permute.xlu0 %3258  ;;  %5071 = vpow2.f32 %v4904_v11  ;;  %v2958_v15 = vpop.permute.xlu2 %2957 }
 0x2ee   : > { %3351 = vst.msk [vmem:[#allocation2 + $0x10] sm:$0xf] %vm3346_vm15, %v3259_v14  ;;  %5073 = vpow2.f32 %v4896_v13 }
 0x2f0   : > { %v3645_v16 = vpop.f32.mrf.mxu3 }
 0x2f1   : > { %v3625_v17 = vpop.f32.mrf.mxu2  ;;  %v6673_v18 = vadd.f32 %v6658_v5, %v3645_v16 }
 0x2f2   : > { %v6676_v19 = vadd.f32 %v6658_v5, %v3625_v17 }
 0x2f3   : > { %v5072_v20 = vpop.eup %5071  ;;  %v4905_v21 = vmul.f32 -1.442695, %v6673_v18 }
 0x2f4   : > { %v2397_v22 = vpop.permute.xlu1 %2396  ;;  %v5074_v23 = vpop.eup %5073  ;;  %v6679_v24 = vadd.f32 1.0, %v5072_v20  ;;  %v4897_v26 = vmul.f32 -1.442695, %v6676_v19 }
 0x2f5   : > { %2471 = vst.msk [vmem:[#allocation2 + $0x58] sm:$0xf] %vm2448_vm12, %v2397_v22  ;;  %v3277_v27 = vpop.permute.xlu0 %3276  ;;  %v4917_v28 = vld [vmem:[#allocation2 + $0x10] sm:$0xff]  ;;  %v6683_v29 = vadd.f32 1.0, %v5074_v23  ;;  %5075 = vpow2.f32 %v4905_v21  ;;  %v2976_v31 = vpop.permute.xlu2 %2975 }
 0x2f6   : > { %3360 = vst.msk [vmem:[#allocation2 + $0x34] sm:$0xf] %vm3346_vm15, %v3277_v27  ;;  %5077 = vrcp.f32 %v6679_v24  ;;  %4866 = vmatmul.msk.bf16.gmra.mxu0 %vm3521_vm0, %v4917_v28  ;;  %v4160_v49 = vand.u32 2147483647, %v6679_v24  ;;  %v4162_v50 = vand.u32 2147483648, %v6679_v24  ;;  %vm4156_vm1 = vweird.f32 %v6679_v24 }
 0x2f7   : > { %3032 = vst.msk [vmem:[#allocation2 + $0x58] sm:$0xf] %vm3009_vm14, %v2958_v15  ;;  %5079 = vrcp.f32 %v6683_v29  ;;  %vm4036_vm2 = vweird.f32 %v6683_v29  ;;  %v4040_v56 = vand.u32 2147483647, %v6683_v29  ;;  %v4042_v57 = vand.u32 2147483648, %v6683_v29 }
 0x2f8   : > { %5081 = vpow2.f32 %v4897_v26  ;;  %vm6735_vm5 = vcmp.eq.f32.partialorder %v4160_v49, 8.507059e+37  ;;  %v4163_v55 = vor.u32 1.1754944e-38, %v4162_v50 }
 0x2f9   : > { %vm6745_vm6 = vcmp.eq.f32.partialorder %v4040_v56, 8.507059e+37 }
 0x2fb   : > { %v5076_v32 = vpop.eup %5075  ;;  %v3583_v36 = vpop.f32.mrf.mxu0 }
 0x2fc   : > { %v2415_v34 = vpop.permute.xlu1 %2414  ;;  %v6690_v33 = vpop.eup %5077  ;;  %v6692_v37 = vadd.f32 1.0, %v5076_v32  ;;  %v6696_v30 = vadd.f32 %v6658_v5, %v3583_v36 }
 0x2fd   : > { %2480 = vst.msk [vmem:[#allocation2 + $0x7c] sm:$0xf] %vm2448_vm12, %v2415_v34  ;;  %v2413_v35 = vpop.permute.xlu0 %2412  ;;  %v4921_v38 = vld [vmem:[#allocation2 + $0x30] sm:$0xff]  ;;  %v6698_v39 = vpop.eup %5079  ;;  %v4152_v40 = vmul.f32 %v6690_v33, %v6679_v24  ;;  %vm4157_vm3 = vweird.f32 %v6690_v33 }
 0x2fe   : > { %2479 = vst.msk [vmem:[#allocation2 + $0x78] sm:$0xf] %vm2448_vm12, %v2413_v35  ;;  %v3311_v41 = vpop.permute.xlu2 %3310  ;;  %v5082_v42 = vpop.eup %5081  ;;  %v4032_v43 = vmul.f32 %v6698_v39, %v6683_v29  ;;  %5083 = vrcp.f32 %v6692_v37  ;;  %4870 = vmatmul.msk.bf16.gmra.mxu1 %vm3521_vm0, %v4921_v38  ;;  %v4880_v47 = vmul.f32 -1.442695, %v6696_v30  ;;  %vm4037_vm4 = vweird.f32 %v6698_v39  ;;  %vm6753_vm7 = vmor %vm4156_vm1, %vm4157_vm3 }
 0x2ff   : > { %3041 = vst.msk [vmem:[#allocation2 + $0x7c] sm:$0xf] %vm3009_vm14, %v2976_v31  ;;  %v4153_v44 = vsub.f32 1.0, %v4152_v40  ;;  %v6708_v45 = vadd.f32 1.0, %v5082_v42  ;;  %v4177_v6 = vand.u32 2147483648, %v6692_v37  ;;  %vm6768_vm9 = vmor %vm4036_vm2, %vm4037_vm4  ;;  %vm4171_vm10 = vweird.f32 %v6692_v37 }
 0x300   : > { %v4033_v46 = vsub.f32 1.0, %v4032_v43  ;;  %v4175_v13 = vand.u32 2147483647, %v6692_v37 }
 0x301   : > { %v4154_v48 = vmul.f32 %v6690_v33, %v4153_v44  ;;  %5085 = vrcp.f32 %v6708_v45  ;;  %v4057_v21 = vand.u32 2147483648, %v6708_v45  ;;  %v4055_v24 = vand.u32 2147483647, %v6708_v45 }
 0x302   : > { %v4034_v51 = vmul.f32 %v6698_v39, %v4033_v46  ;;  %5087 = vpow2.f32 %v4880_v47  ;;  %v4178_v27 = vor.u32 1.1754944e-38, %v4177_v6  ;;  %vm4176_vm1 = vcmp.eq.f32.partialorder %v4175_v13, 8.507059e+37 }
 0x303   : > { %v3585_v53 = vpop.f32.mrf.mxu0  ;;  %v3603_v59 = vpop.f32.mrf.mxu1  ;;  %v4155_v60 = vadd.f32 %v6690_v33, %v4154_v48  ;;  %vm4051_vm2 = vweird.f32 %v6708_v45  ;;  %v4058_v40 = vor.u32 1.1754944e-38, %v4057_v21  ;;  %vm4056_vm4 = vcmp.eq.f32.partialorder %v4055_v24, 8.507059e+37 }
 0x304   : > { %v2974_v25 = vpop.permute.xlu1 %2973  ;;  %v6717_v54 = vpop.eup %5083  ;;  %v6724_v1 = vadd.f32 %v6658_v5, %v3585_v53  ;;  %v6732_v62 = vadd.f32 %v6658_v5, %v3603_v59  ;;  %v4035_v3 = vadd.f32 %v6698_v39, %v4034_v51 }
 0x305   : > { %3040 = vst.msk [vmem:[#allocation2 + $0x78] sm:$0xf] %vm3009_vm14, %v2974_v25  ;;  %v2960_v58 = vpop.permute.xlu0 %2959  ;;  %v4167_v61 = vmul.f32 %v6717_v54, %v6692_v37  ;;  %v4159_v15 = vsel %vm6753_vm7, %v6690_v33, %v4155_v60  ;;  %vm4172_vm8 = vweird.f32 %v6717_v54  ;;  %v4043_v33 = vor.u32 1.1754944e-38, %v4042_v57 }
 0x306   : > { %3033 = vst.msk [vmem:[#allocation2 + $0x5c] sm:$0xf] %vm3009_vm14, %v2960_v58  ;;  %v2367_v63 = vpop.permute.xlu2 %2366  ;;  %v4881_v0 = vmul.f32 -1.442695, %v6724_v1  ;;  %v4888_v7 = vmul.f32 -1.442695, %v6732_v62  ;;  %v4039_v23 = vsel %vm6768_vm9, %v6698_v39, %v4035_v3  ;;  %v4164_v29 = vsel %vm6735_vm5, %v4163_v55, %v4159_v15  ;;  %vm6785_vm13 = vmor %vm4171_vm10, %vm4172_vm8 }
 0x307   : > { %3377 = vst.msk [vmem:[#allocation2 + $0x78] sm:$0xf] %vm3346_vm15, %v3311_v41  ;;  %v5086_v2 = vpop.eup %5085  ;;  %v4168_v4 = vsub.f32 1.0, %v4167_v61  ;;  %v4044_v43 = vsel %vm6745_vm6, %v4043_v33, %v4039_v23  ;;  %v4295_v44 = vmul.f32 %v4164_v29, %v6663_v9 }
 0x308   : > { %2456 = vst.msk [vmem:[#allocation2 + $0x1c] sm:$0xf] %vm2448_vm12, %v2367_v63  ;;  %v4047_v12 = vmul.f32 %v5086_v2, %v6708_v45  ;;  %5089 = vpow2.f32 %v4881_v0  ;;  %v5088_v14 = vpop.eup %5087  ;;  %vm4052_vm11 = vweird.f32 %v5086_v2  ;;  %v4287_v25 = vmul.f32 %v4044_v43, %v6666_v10 }
 0x309   : > { %v4169_v16 = vmul.f32 %v6717_v54, %v4168_v4  ;;  %5091 = vpow2.f32 %v4888_v7  ;;  %v6774_v22 = vadd.f32 1.0, %v5088_v14  ;;  %vm4053_vm3 = vmor %vm4051_vm2, %vm4052_vm11 }
 0x30a   : > { %v4048_v20 = vsub.f32 1.0, %v4047_v12 }
 0x30b   : > { %v4170_v26 = vadd.f32 %v6717_v54, %v4169_v16  ;;  %5093 = vrcp.f32 %v6774_v22  ;;  %v3605_v36 = vpop.f32.mrf.mxu1  ;;  %v3802_v55 = vand.u32 2147483648, %v6774_v22  ;;  %vm3796_vm6 = vweird.f32 %v6774_v22 }
 0x30c   : > { %v3297_v28 = vpop.permute.xlu1 %3296  ;;  %v4049_v31 = vmul.f32 %v5086_v2, %v4048_v20  ;;  %v6797_v35 = vadd.f32 %v6658_v5, %v3605_v36 }
 0x30d   : > { %3370 = vst.msk [vmem:[#allocation2 + $0x5c] sm:$0xf] %vm3346_vm15, %v3297_v28  ;;  %v3295_v34 = vpop.permute.xlu0 %3294  ;;  %v4174_v37 = vsel %vm6785_vm13, %v6717_v54, %v4170_v26  ;;  %v3803_v20 = vor.u32 1.1754944e-38, %v3802_v55 }
 0x30e   : > { %3369 = vst.msk [vmem:[#allocation2 + $0x58] sm:$0xf] %vm3346_vm15, %v3295_v34  ;;  %v5090_v38 = vpop.eup %5089  ;;  %v4050_v39 = vadd.f32 %v5086_v2, %v4049_v31  ;;  %v4179_v41 = vsel %vm4176_vm1, %v4178_v27, %v4174_v37  ;;  %v2926_v49 = vpop.permute.xlu2 %2925  ;;  %v4889_v9 = vmul.f32 -1.442695, %v6797_v35 }
 0x30f   : > { %v5092_v42 = vpop.eup %5091  ;;  %v4296_v46 = vmul.f32 %v4179_v41, %v6673_v18  ;;  %v6805_v47 = vadd.f32 1.0, %v5090_v38 }
 0x310   : > { %v4054_v45 = vsel %vm4053_vm3, %v5086_v2, %v4050_v39  ;;  %v6812_v48 = vadd.f32 1.0, %v5092_v42  ;;  %v3800_v2 = vand.u32 2147483647, %v6774_v22 }
 0x311   : > { %v4059_v50 = vsel %vm4056_vm4, %v4058_v40, %v4054_v45  ;;  %v4996_v51 = vpack.c.bf16 %v4296_v46, %v4295_v44  ;;  %5095 = vrcp.f32 %v6805_v47  ;;  %v5094_v18 = vpop.eup %5093  ;;  %v3815_v8 = vand.u32 2147483647, %v6805_v47 }
 0x312   : > { %v4288_v53 = vmul.f32 %v4059_v50, %v6676_v19  ;;  %5097 = vrcp.f32 %v6812_v48  ;;  %v3792_v54 = vmul.f32 %v5094_v18, %v6774_v22  ;;  %vm3797_vm5 = vweird.f32 %v5094_v18 }
 0x313   : > { %5024 = vst [vmem:[%s6810_s12 + $0x60] sm:$0xff] %v4996_v51   ;;  %5099 = vpow2.f32 %v4889_v9  ;;  %vm6834_vm7 = vmor %vm3796_vm6, %vm3797_vm5  ;;  %v3817_v11 = vand.u32 2147483648, %v6805_v47  ;;  %vm3801_vm9 = vcmp.eq.f32.partialorder %v3800_v2, 8.507059e+37  ;;  %vm3811_vm10 = vweird.f32 %v6805_v47 }
 0x314   : > { %v2365_v56 = vpop.permute.xlu1 %2364  ;;  %v4976_v57 = vpack.c.bf16 %v4288_v53, %v4287_v25  ;;  %v3793_v60 = vsub.f32 1.0, %v3792_v54  ;;  %vm3816_vm13 = vcmp.eq.f32.partialorder %v3815_v8, 8.507059e+37  ;;  %vm3916_vm1 = vweird.f32 %v6812_v48 }
 0x315   : > { %2455 = vst.msk [vmem:[#allocation2 + $0x18] sm:$0xf] %vm2448_vm12, %v2365_v56  ;;  %v3313_v58 = vpop.permute.xlu0 %3312  ;;  %v4926_v59 = vld [vmem:[#allocation2 + $0x58] sm:$0xff]  ;;  %v3818_v24 = vor.u32 1.1754944e-38, %v3817_v11  ;;  %v3920_v42 = vand.u32 2147483647, %v6812_v48 }
 0x316   : > { %3378 = vst.msk [vmem:[#allocation2 + $0x7c] sm:$0xf] %vm3346_vm15, %v3313_v58  ;;  %4875 = vmatmul.msk.bf16.gmra.mxu2 %vm3521_vm0, %v4926_v59  ;;  %v3794_v19 = vmul.f32 %v5094_v18, %v3793_v60  ;;  %v2944_v4 = vpop.permute.xlu2 %2943 }
 0x317   : > { %5020 = vst [vmem:[%s6810_s12 + $0x40] sm:$0xff] %v4976_v57   ;;  %v5096_v10 = vpop.eup %5095  ;;  %vm3921_vm3 = vcmp.eq.f32.partialorder %v3920_v42, 8.507059e+37 }
 0x318   : > { %3016 = vst.msk [vmem:[#allocation2 + $0x18] sm:$0xf] %vm3009_vm14, %v2926_v49  ;;  %v6826_v61 = vpop.eup %5097  ;;  %v3807_v63 = vmul.f32 %v5096_v10, %v6805_v47  ;;  %v3795_v52 = vadd.f32 %v5094_v18, %v3794_v19  ;;  %vm3812_vm8 = vweird.f32 %v5096_v10 }
 0x319   : > { %v3912_v0 = vmul.f32 %v6826_v61, %v6812_v48  ;;  %v5100_v6 = vpop.eup %5099  ;;  %vm3813_vm11 = vmor %vm3811_vm10, %vm3812_vm8 }
 0x31a   : > { %v3808_v3 = vsub.f32 1.0, %v3807_v63  ;;  %v3799_v13 = vsel %vm6834_vm7, %v5094_v18, %v3795_v52  ;;  %v6842_v15 = vadd.f32 1.0, %v5100_v6 }
 0x31b   : > { %v3913_v21 = vsub.f32 1.0, %v3912_v0  ;;  %v3804_v23 = vsel %vm3801_vm9, %v3803_v20, %v3799_v13 }
 0x31c   : > { %v2383_v12 = vpop.permute.xlu1 %2382  ;;  %v3809_v14 = vmul.f32 %v5096_v10, %v3808_v3  ;;  %5101 = vrcp.f32 %v6842_v15  ;;  %v4271_v31 = vmul.f32 %v3804_v23, %v6696_v30  ;;  %v3937_v44 = vand.u32 2147483648, %v6842_v15 }
 0x31d   : > { %2464 = vst.msk [vmem:[#allocation2 + $0x3c] sm:$0xf] %vm2448_vm12, %v2383_v12  ;;  %v2381_v16 = vpop.permute.xlu0 %2380  ;;  %v4930_v17 = vld [vmem:[#allocation2 + $0x78] sm:$0xff]  ;;  %v3914_v28 = vmul.f32 %v6826_v61, %v3913_v21  ;;  %v3935_v49 = vand.u32 2147483647, %v6842_v15  ;;  %vm3931_vm4 = vweird.f32 %v6842_v15 }
 0x31e   : > { %2463 = vst.msk [vmem:[#allocation2 + $0x38] sm:$0xf] %vm2448_vm12, %v2381_v16  ;;  %v3810_v22 = vadd.f32 %v5096_v10, %v3809_v14  ;;  %4879 = vmatmul.msk.bf16.gmra.mxu3 %vm3521_vm0, %v4930_v17  ;;  %v3279_v40 = vpop.permute.xlu2 %3278  ;;  %vm3917_vm12 = vweird.f32 %v6826_v61  ;;  %v3938_v53 = vor.u32 1.1754944e-38, %v3937_v44 }
 0x31f   : > { %3025 = vst.msk [vmem:[#allocation2 + $0x3c] sm:$0xf] %vm3009_vm14, %v2944_v4  ;;  %v3915_v41 = vadd.f32 %v6826_v61, %v3914_v28  ;;  %vm6869_vm2 = vmor %vm3916_vm1, %vm3917_vm12  ;;  %vm3936_vm6 = vcmp.eq.f32.partialorder %v3935_v49, 8.507059e+37 }
 0x320   : > { %v3814_v26 = vsel %vm3813_vm11, %v5096_v10, %v3810_v22 }
 0x321   : > { %v3819_v27 = vsel %vm3816_vm13, %v3818_v24, %v3814_v26  ;;  %v3628_v29 = vpop.f32.mrf.mxu2  ;;  %v3919_v47 = vsel %vm6869_vm2, %v6826_v61, %v3915_v41 }
 0x322   : > { %v4272_v32 = vmul.f32 %v3819_v27, %v6724_v1  ;;  %v6855_v34 = vadd.f32 %v6658_v5, %v3628_v29  ;;  %v5102_v33 = vpop.eup %5101  ;;  %v3922_v1 = vand.u32 2147483648, %v6812_v48 }
 0x323   : > { %v3927_v30 = vmul.f32 %v5102_v33, %v6842_v15 }
 0x324   : > { %v2942_v36 = vpop.permute.xlu1 %2941  ;;  %v4936_v37 = vpack.c.bf16 %v4272_v32, %v4271_v31  ;;  %v4898_v38 = vmul.f32 -1.442695, %v6855_v34  ;;  %v3923_v48 = vor.u32 1.1754944e-38, %v3922_v1 }
 0x325   : > { %3024 = vst.msk [vmem:[#allocation2 + $0x38] sm:$0xf] %vm3009_vm14, %v2942_v36  ;;  %v2928_v39 = vpop.permute.xlu0 %2927  ;;  %v3928_v43 = vsub.f32 1.0, %v3927_v30 }
 0x326   : > { %3017 = vst.msk [vmem:[#allocation2 + $0x1c] sm:$0xf] %vm3009_vm14, %v2928_v39  ;;  %5103 = vpow2.f32 %v4898_v38  ;;  %vm3932_vm14 = vweird.f32 %v5102_v33  ;;  %v3924_v57 = vsel %vm3921_vm3, %v3923_v48, %v3919_v47 }
 0x327   : > { %4937 = vst [vmem:[%s6810_s12] sm:$0xff] %v4936_v37   ;;  %v3929_v45 = vmul.f32 %v5102_v33, %v3928_v43  ;;  %vm3933_vm5 = vmor %vm3931_vm4, %vm3932_vm14  ;;  %v4279_v63 = vmul.f32 %v3924_v57, %v6732_v62 }
 0x328   : > { %3361 = vst.msk [vmem:[#allocation2 + $0x38] sm:$0xf] %vm3346_vm15, %v3279_v40 }
 0x329   : > { %v3630_v50 = vpop.f32.mrf.mxu2  ;;  %v3648_v51 = vpop.f32.mrf.mxu3  ;;  %v3930_v25 = vadd.f32 %v5102_v33, %v3929_v45 }
 0x32a   : > { %v6878_v9 = vadd.f32 %v6658_v5, %v3630_v50  ;;  %v6881_v18 = vadd.f32 %v6658_v5, %v3648_v51 }
 0x32b   : > { %v3934_v10 = vsel %vm3933_vm5, %v5102_v33, %v3930_v25 }
 0x32c   : > { %v3265_v54 = vpop.permute.xlu1 %3264  ;;  %v5104_v56 = vpop.eup %5103  ;;  %v4899_v58 = vmul.f32 -1.442695, %v6878_v9  ;;  %v4906_v59 = vmul.f32 -1.442695, %v6881_v18  ;;  %v3939_v61 = vsel %vm3936_vm6, %v3938_v53, %v3934_v10 }
 0x32d   : > { %3354 = vst.msk [vmem:[#allocation2 + $0x1c] sm:$0xf] %vm3346_vm15, %v3265_v54  ;;  %v3263_v60 = vpop.permute.xlu0 %3262  ;;  %v6887_v19 = vadd.f32 1.0, %v5104_v56  ;;  %v4280_v52 = vmul.f32 %v3939_v61, %v6797_v35 }
 0x32e   : > { %3353 = vst.msk [vmem:[#allocation2 + $0x18] sm:$0xf] %vm3346_vm15, %v3263_v60  ;;  %5105 = vpow2.f32 %v4899_v58 }
 0x32f   : > { %5107 = vrcp.f32 %v6887_v19  ;;  %v4956_v55 = vpack.c.bf16 %v4280_v52, %v4279_v63  ;;  %v4072_v36 = vand.u32 2147483648, %v6887_v19  ;;  %vm4066_vm7 = vweird.f32 %v6887_v19 }
 0x330   : > { %5109 = vpow2.f32 %v4906_v59  ;;  %v4070_v37 = vand.u32 2147483647, %v6887_v19 }
 0x331   : > { %v3650_v0 = vpop.f32.mrf.mxu3  ;;  %5016 = vst [vmem:[%s6810_s12 + $0x20] sm:$0xff] %v4956_v55   ;;  %v4073_v46 = vor.u32 1.1754944e-38, %v4072_v36 }
 0x332   : > { %v6894_v2 = vadd.f32 %v6658_v5, %v3650_v0  ;;  %v3588_v3 = vpop.f32.mrf.mxu0  ;;  %vm4071_vm9 = vcmp.eq.f32.partialorder %v4070_v37, 8.507059e+37 }
 0x333   : > { %v6898_v4 = vadd.f32 %v6658_v5, %v3588_v3 }
 0x334   : > { %v5106_v6 = vpop.eup %5105  ;;  %v4907_v7 = vmul.f32 -1.442695, %v6894_v2 }
 0x335   : > { %v3281_v8 = vpop.permute.xlu0 %3280  ;;  %v4918_v62 = vld [vmem:[#allocation2 + $0x18] sm:$0xff]  ;;  %v5108_v11 = vpop.eup %5107  ;;  %v3778_v35 = vadd.f32 1.0, %v5106_v6  ;;  %v4882_v12 = vmul.f32 -1.442695, %v6898_v4 }
 0x336   : > { %3362 = vst.msk [vmem:[#allocation2 + $0x3c] sm:$0xf] %vm3346_vm15, %v3281_v8  ;;  %v5110_v13 = vpop.eup %5109  ;;  %v4062_v14 = vmul.f32 %v5108_v11, %v6887_v19  ;;  %5111 = vpow2.f32 %v4907_v7  ;;  %4867 = vmatmul.msk.bf16.gmra.mxu0 %vm3521_vm0, %v4918_v62  ;;  %vm4067_vm15 = vweird.f32 %v5108_v11 }
 0x337   : > { %5113 = vrcp.f32 %v3778_v35  ;;  %v6905_v16 = vadd.f32 1.0, %v5110_v13  ;;  %vm6923_vm8 = vmor %vm4066_vm7, %vm4067_vm15  ;;  %v4085_v30 = vand.u32 2147483647, %v3778_v35  ;;  %v4087_v43 = vand.u32 2147483648, %v3778_v35 }
 0x338   : > { %v4063_v15 = vsub.f32 1.0, %v4062_v14  ;;  %5115 = vpow2.f32 %v4882_v12  ;;  %vm4081_vm10 = vweird.f32 %v3778_v35 }
 0x339   : > { %5117 = vrcp.f32 %v6905_v16  ;;  %vm4086_vm11 = vcmp.eq.f32.partialorder %v4085_v30, 8.507059e+37  ;;  %v4088_v53 = vor.u32 1.1754944e-38, %v4087_v43  ;;  %vm4186_vm12 = vweird.f32 %v6905_v16 }
 0x33a   : > { %v4064_v17 = vmul.f32 %v5108_v11, %v4063_v15  ;;  %v3590_v20 = vpop.f32.mrf.mxu0  ;;  %v4190_v56 = vand.u32 2147483647, %v6905_v16  ;;  %v4192_v63 = vand.u32 2147483648, %v6905_v16 }
 0x33b   : > { %v6909_v21 = vadd.f32 %v6658_v5, %v3590_v20  ;;  %v3608_v22 = vpop.f32.mrf.mxu1 }
 0x33c   : > { %v5112_v23 = vpop.eup %5111  ;;  %v6912_v24 = vadd.f32 %v6658_v5, %v3608_v22  ;;  %v4065_v28 = vadd.f32 %v5108_v11, %v4064_v17  ;;  %v4193_v12 = vor.u32 1.1754944e-38, %v4192_v63  ;;  %vm4191_vm3 = vcmp.eq.f32.partialorder %v4190_v56, 8.507059e+37 }
 0x33d   : > { %v4922_v26 = vld [vmem:[#allocation2 + $0x38] sm:$0xff]  ;;  %v5114_v27 = vpop.eup %5113  ;;  %v6914_v29 = vadd.f32 1.0, %v5112_v23  ;;  %v4883_v31 = vmul.f32 -1.442695, %v6909_v21 }
 0x33e   : > { %v5116_v32 = vpop.eup %5115  ;;  %v4077_v33 = vmul.f32 %v5114_v27, %v3778_v35  ;;  %4871 = vmatmul.msk.bf16.gmra.mxu1 %vm3521_vm0, %v4922_v26  ;;  %v4890_v38 = vmul.f32 -1.442695, %v6912_v24  ;;  %v4069_v42 = vsel %vm6923_vm8, %v5108_v11, %v4065_v28  ;;  %vm4082_vm0 = vweird.f32 %v5114_v27 }
 0x33f   : > { %5119 = vrcp.f32 %v6914_v29  ;;  %v5118_v39 = vpop.eup %5117  ;;  %v6927_v1 = vadd.f32 1.0, %v5116_v32  ;;  %v4074_v50 = vsel %vm4071_vm9, %v4073_v46, %v4069_v42  ;;  %vm4083_vm13 = vmor %vm4081_vm10, %vm4082_vm0  ;;  %v4207_v8 = vand.u32 2147483648, %v6914_v29 }
 0x340   : > { %v4078_v41 = vsub.f32 1.0, %v4077_v33  ;;  %v4182_v44 = vmul.f32 %v5118_v39, %v6905_v16  ;;  %5121 = vpow2.f32 %v4883_v31  ;;  %vm4187_vm1 = vweird.f32 %v5118_v39 }
 0x341   : > { %5123 = vrcp.f32 %v6927_v1  ;;  %v4289_v10 = vmul.f32 %v4074_v50, %v6855_v34  ;;  %vm6945_vm2 = vmor %vm4186_vm12, %vm4187_vm1  ;;  %v4205_v34 = vand.u32 2147483647, %v6914_v29  ;;  %vm4201_vm4 = vweird.f32 %v6914_v29 }
 0x342   : > { %v4079_v47 = vmul.f32 %v5114_v27, %v4078_v41  ;;  %v4183_v45 = vsub.f32 1.0, %v4182_v44  ;;  %5125 = vpow2.f32 %v4890_v38  ;;  %v4208_v17 = vor.u32 1.1754944e-38, %v4207_v8 }
 0x343   : > { %v3610_v49 = vpop.f32.mrf.mxu1  ;;  %vm4206_vm6 = vcmp.eq.f32.partialorder %v4205_v34, 8.507059e+37  ;;  %vm3826_vm15 = vweird.f32 %v6927_v1  ;;  %v3832_v37 = vand.u32 2147483648, %v6927_v1  ;;  %v3830_v38 = vand.u32 2147483647, %v6927_v1 }
 0x344   : > { %v4080_v51 = vadd.f32 %v5114_v27, %v4079_v47  ;;  %v6934_v48 = vadd.f32 %v6658_v5, %v3610_v49  ;;  %v4184_v54 = vmul.f32 %v5118_v39, %v4183_v45 }
 0x345   : > { %v5120_v25 = vpop.eup %5119  ;;  %v3833_v43 = vor.u32 1.1754944e-38, %v3832_v37  ;;  %vm3831_vm9 = vcmp.eq.f32.partialorder %v3830_v38, 8.507059e+37 }
 0x346   : > { %v4084_v57 = vsel %vm4083_vm13, %v5114_v27, %v4080_v51  ;;  %v4197_v58 = vmul.f32 %v5120_v25, %v6914_v29  ;;  %v4891_v59 = vmul.f32 -1.442695, %v6934_v48  ;;  %v5122_v60 = vpop.eup %5121  ;;  %v4185_v61 = vadd.f32 %v5118_v39, %v4184_v54 }
 0x347   : > { %v4089_v19 = vsel %vm4086_vm11, %v4088_v53, %v4084_v57  ;;  %v5124_v52 = vpop.eup %5123  ;;  %v3762_v3 = vadd.f32 1.0, %v5122_v60  ;;  %vm4202_vm14 = vweird.f32 %v5120_v25 }
 0x348   : > { %v4290_v55 = vmul.f32 %v4089_v19, %v6878_v9  ;;  %v4198_v0 = vsub.f32 1.0, %v4197_v58  ;;  %5127 = vpow2.f32 %v4891_v59  ;;  %v5126_v6 = vpop.eup %5125  ;;  %v3822_v62 = vmul.f32 %v5124_v52, %v6927_v1  ;;  %vm4203_vm5 = vmor %vm4201_vm4, %vm4202_vm14 }
 0x349   : > { %v4189_v9 = vsel %vm6945_vm2, %v5118_v39, %v4185_v61  ;;  %5129 = vrcp.f32 %v3762_v3  ;;  %v6956_v15 = vadd.f32 1.0, %v5126_v6  ;;  %vm3827_vm7 = vweird.f32 %v5124_v52 }
 0x34a   : > { %v4981_v11 = vpack.c.bf16 %v4290_v55, %v4289_v10  ;;  %v4199_v35 = vmul.f32 %v5120_v25, %v4198_v0  ;;  %v3823_v13 = vsub.f32 1.0, %v3822_v62  ;;  %v4194_v16 = vsel %vm4191_vm3, %v4193_v12, %v4189_v9  ;;  %vm3828_vm8 = vmor %vm3826_vm15, %vm3827_vm7 }
 0x34b   : > { %5131 = vrcp.f32 %v6956_v15  ;;  %v4297_v28 = vmul.f32 %v4194_v16, %v6881_v18  ;;  %v3845_v18 = vand.u32 2147483647, %v3762_v3  ;;  %vm3841_vm10 = vweird.f32 %v3762_v3 }
 0x34c   : > { %5021 = vst [vmem:[%s6810_s12 + $0x48] sm:$0xff] %v4981_v11   ;;  %v4200_v14 = vadd.f32 %v5120_v25, %v4199_v35  ;;  %v3824_v20 = vmul.f32 %v5124_v52, %v3823_v13  ;;  %vm3946_vm12 = vweird.f32 %v6956_v15  ;;  %v3950_v54 = vand.u32 2147483647, %v6956_v15 }
 0x34d   : > { %vm3846_vm13 = vcmp.eq.f32.partialorder %v3845_v18, 8.507059e+37  ;;  %v3952_v56 = vand.u32 2147483648, %v6956_v15 }
 0x34e   : > { %v5128_v22 = vpop.eup %5127  ;;  %v4204_v23 = vsel %vm4203_vm5, %v5120_v25, %v4200_v14  ;;  %v3825_v32 = vadd.f32 %v5124_v52, %v3824_v20  ;;  %vm3951_vm3 = vcmp.eq.f32.partialorder %v3950_v54, 8.507059e+37 }
 0x34f   : > { %v4209_v26 = vsel %vm4206_vm6, %v4208_v17, %v4204_v23  ;;  %v5130_v27 = vpop.eup %5129  ;;  %v6962_v29 = vadd.f32 1.0, %v5128_v22 }
 0x350   : > { %v4298_v31 = vmul.f32 %v4209_v26, %v6894_v2  ;;  %v3837_v36 = vmul.f32 %v5130_v27, %v3762_v3  ;;  %v3847_v2 = vand.u32 2147483648, %v3762_v3  ;;  %v3829_v41 = vsel %vm3828_vm8, %v5124_v52, %v3825_v32 }
 0x351   : > { %5133 = vrcp.f32 %v6962_v29  ;;  %v5132_v40 = vpop.eup %5131  ;;  %vm3842_vm0 = vweird.f32 %v5130_v27  ;;  %v3834_v45 = vsel %vm3831_vm9, %v3833_v43, %v3829_v41  ;;  %v3965_v19 = vand.u32 2147483647, %v6962_v29 }
 0x352   : > { %v5001_v33 = vpack.c.bf16 %v4298_v31, %v4297_v28  ;;  %v3838_v39 = vsub.f32 1.0, %v3837_v36  ;;  %v3942_v42 = vmul.f32 %v5132_v40, %v6956_v15  ;;  %vm3843_vm11 = vmor %vm3841_vm10, %vm3842_vm0  ;;  %v3848_v1 = vor.u32 1.1754944e-38, %v3847_v2 }
 0x353   : > { %vm3947_vm1 = vweird.f32 %v5132_v40  ;;  %v4273_v58 = vmul.f32 %v3834_v45, %v6898_v4  ;;  %v3967_v61 = vand.u32 2147483648, %v6962_v29  ;;  %v3953_v3 = vor.u32 1.1754944e-38, %v3952_v56 }
 0x354   : > { %5025 = vst [vmem:[%s6810_s12 + $0x68] sm:$0xff] %v5001_v33   ;;  %v3839_v30 = vmul.f32 %v5130_v27, %v3838_v39  ;;  %v3943_v46 = vsub.f32 1.0, %v3942_v42  ;;  %vm3948_vm2 = vmor %vm3946_vm12, %vm3947_vm1  ;;  %vm3961_vm4 = vweird.f32 %v6962_v29  ;;  %vm3966_vm6 = vcmp.eq.f32.partialorder %v3965_v19, 8.507059e+37 }
 0x355   : > { %v3968_v6 = vor.u32 1.1754944e-38, %v3967_v61 }
 0x356   : > { %v3840_v44 = vadd.f32 %v5130_v27, %v3839_v30  ;;  %v3944_v51 = vmul.f32 %v5132_v40, %v3943_v46 }
 0x357   : > { %v5134_v47 = vpop.eup %5133 }
 0x358   : > { %v3633_v49 = vpop.f32.mrf.mxu2  ;;  %v3844_v50 = vsel %vm3843_vm11, %v5130_v27, %v3840_v44  ;;  %v3957_v25 = vmul.f32 %v5134_v47, %v6962_v29  ;;  %v3945_v60 = vadd.f32 %v5132_v40, %v3944_v51  ;;  %vm3962_vm14 = vweird.f32 %v5134_v47 }
 0x359   : > { %v3849_v53 = vsel %vm3846_vm13, %v3848_v1, %v3844_v50  ;;  %v6975_v57 = vadd.f32 %v6658_v5, %v3633_v49  ;;  %vm3963_vm5 = vmor %vm3961_vm4, %vm3962_vm14 }
 0x35a   : > { %v4274_v59 = vmul.f32 %v3849_v53, %v6909_v21  ;;  %v3958_v10 = vsub.f32 1.0, %v3957_v25  ;;  %v3949_v55 = vsel %vm3948_vm2, %v5132_v40, %v3945_v60 }
 0x35b   : > { %v4900_v63 = vmul.f32 -1.442695, %v6975_v57  ;;  %v3954_v21 = vsel %vm3951_vm3, %v3953_v3, %v3949_v55 }
 0x35c   : > { %v4941_v52 = vpack.c.bf16 %v4274_v59, %v4273_v58  ;;  %v3959_v0 = vmul.f32 %v5134_v47, %v3958_v10  ;;  %v4281_v35 = vmul.f32 %v3954_v21, %v6912_v24 }
 0x35d   : > { %5135 = vpow2.f32 %v4900_v63 }
 0x35e   : > { %5013 = vst [vmem:[%s6810_s12 + $0x8] sm:$0xff] %v4941_v52   ;;  %v3960_v4 = vadd.f32 %v5134_v47, %v3959_v0 }
 0x360   : > { %v3635_v7 = vpop.f32.mrf.mxu2  ;;  %v3964_v34 = vsel %vm3963_vm5, %v5134_v47, %v3960_v4 }
 0x361   : > { %v6985_v8 = vadd.f32 %v6658_v5, %v3635_v7  ;;  %v3653_v62 = vpop.f32.mrf.mxu3  ;;  %v3969_v11 = vsel %vm3966_vm6, %v3968_v6, %v3964_v34 }
 0x362   : > { %v6988_v9 = vadd.f32 %v6658_v5, %v3653_v62  ;;  %v4282_v12 = vmul.f32 %v3969_v11, %v6934_v48 }
 0x363   : > { %v4901_v13 = vmul.f32 -1.442695, %v6985_v8  ;;  %v5136_v14 = vpop.eup %5135 }
 0x364   : > { %v4908_v15 = vmul.f32 -1.442695, %v6988_v9  ;;  %v4961_v16 = vpack.c.bf16 %v4282_v12, %v4281_v35  ;;  %v3779_v17 = vadd.f32 1.0, %v5136_v14 }
 0x365   : > { %5137 = vpow2.f32 %v4901_v13 }
 0x366   : > { %5139 = vpow2.f32 %v4908_v15  ;;  %5017 = vst [vmem:[%s6810_s12 + $0x28] sm:$0xff] %v4961_v16   ;;  %vm4096_vm15 = vweird.f32 %v3779_v17  ;;  %v4102_v2 = vand.u32 2147483648, %v3779_v17  ;;  %v4100_v42 = vand.u32 2147483647, %v3779_v17  ;;  %v7052_v15 = vld [vmem:[%s7174_s2] ss:$0 sm:$0xff] }
 0x367   : > { %5141 = vrcp.f32 %v3779_v17 }
 0x368   : > { %v4103_v51 = vor.u32 1.1754944e-38, %v4102_v2  ;;  %vm4101_vm9 = vcmp.eq.f32.partialorder %v4100_v42, 8.507059e+37 }
 0x369   : > { %v3655_v20 = vpop.f32.mrf.mxu3 }
 0x36a   : > { %v6996_v22 = vadd.f32 %v6658_v5, %v3655_v20 }
 0x36b   : > { %v5138_v23 = vpop.eup %5137 }
 0x36c   : > { %v5140_v26 = vpop.eup %5139  ;;  %v3780_v24 = vadd.f32 1.0, %v5138_v23  ;;  %v4909_v48 = vmul.f32 -1.442695, %v6996_v22 }
 0x36d   : > { %v5142_v27 = vpop.eup %5141  ;;  %v6999_v28 = vadd.f32 1.0, %v5140_v26 }
 0x36e   : > { %v4092_v31 = vmul.f32 %v5142_v27, %v3779_v17  ;;  %5143 = vrcp.f32 %v3780_v24  ;;  %vm4097_vm7 = vweird.f32 %v5142_v27  ;;  %v4117_v44 = vand.u32 2147483648, %v3780_v24 }
 0x36f   : > { %5145 = vrcp.f32 %v6999_v28  ;;  %vm7012_vm8 = vmor %vm4096_vm15, %vm4097_vm7  ;;  %v4115_v45 = vand.u32 2147483647, %v3780_v24  ;;  %vm4111_vm10 = vweird.f32 %v3780_v24  ;;  %v4222_v34 = vand.u32 2147483648, %v6999_v28 }
 0x370   : > { %v4093_v29 = vsub.f32 1.0, %v4092_v31  ;;  %5147 = vpow2.f32 %v4909_v48  ;;  %v4118_v53 = vor.u32 1.1754944e-38, %v4117_v44  ;;  %vm4216_vm1 = vweird.f32 %v6999_v28 }
 0x371   : > { %vm4116_vm13 = vcmp.eq.f32.partialorder %v4115_v45, 8.507059e+37  ;;  %v4223_v17 = vor.u32 1.1754944e-38, %v4222_v34 }
 0x372   : > { %v4094_v32 = vmul.f32 %v5142_v27, %v4093_v29 }
 0x373   : > { %v3593_v36 = vpop.f32.mrf.mxu0 }
 0x374   : > { %v5144_v33 = vpop.eup %5143  ;;  %v7003_v37 = vadd.f32 %v6658_v5, %v3593_v36  ;;  %v4095_v39 = vadd.f32 %v5142_v27, %v4094_v32 }
 0x375   : > { %v7005_v38 = vpop.eup %5145  ;;  %v4107_v40 = vmul.f32 %v5144_v33, %v3780_v24  ;;  %vm4112_vm0 = vweird.f32 %v5144_v33 }
 0x376   : > { %v5148_v18 = vpop.eup %5147  ;;  %v4212_v41 = vmul.f32 %v7005_v38, %v6999_v28  ;;  %v4884_v30 = vmul.f32 -1.442695, %v7003_v37  ;;  %v4099_v49 = vsel %vm7012_vm8, %v5142_v27, %v4095_v39  ;;  %vm4113_vm11 = vmor %vm4111_vm10, %vm4112_vm0  ;;  %vm4217_vm12 = vweird.f32 %v7005_v38 }
 0x377   : > { %v4108_v43 = vsub.f32 1.0, %v4107_v40  ;;  %v7010_v46 = vadd.f32 1.0, %v5148_v18  ;;  %v4104_v58 = vsel %vm4101_vm9, %v4103_v51, %v4099_v49  ;;  %vm7040_vm2 = vmor %vm4216_vm1, %vm4217_vm12 }
 0x378   : > { %v4213_v1 = vsub.f32 1.0, %v4212_v41  ;;  %5149 = vpow2.f32 %v4884_v30  ;;  %v4291_v3 = vmul.f32 %v4104_v58, %v6975_v57  ;;  %v4220_v57 = vand.u32 2147483647, %v6999_v28 }
 0x379   : > { %v4109_v50 = vmul.f32 %v5144_v33, %v4108_v43  ;;  %5151 = vrcp.f32 %v7010_v46  ;;  %v4235_v11 = vand.u32 2147483647, %v7010_v46  ;;  %v4237_v35 = vand.u32 2147483648, %v7010_v46 }
 0x37a   : > { %v4214_v59 = vmul.f32 %v7005_v38, %v4213_v1  ;;  %vm4221_vm3 = vcmp.eq.f32.partialorder %v4220_v57, 8.507059e+37  ;;  %vm4231_vm4 = vweird.f32 %v7010_v46 }
 0x37b   : > { %v4110_v25 = vadd.f32 %v5144_v33, %v4109_v50  ;;  %v3595_v54 = vpop.f32.mrf.mxu0  ;;  %v3613_v56 = vpop.f32.mrf.mxu1  ;;  %v4238_v27 = vor.u32 1.1754944e-38, %v4237_v35  ;;  %vm4236_vm6 = vcmp.eq.f32.partialorder %v4235_v11, 8.507059e+37 }
 0x37c   : > { %v7021_v60 = vadd.f32 %v6658_v5, %v3595_v54  ;;  %v7024_v10 = vadd.f32 %v6658_v5, %v3613_v56  ;;  %v4215_v6 = vadd.f32 %v7005_v38, %v4214_v59 }
 0x37d   : > { %v4114_v19 = vsel %vm4113_vm11, %v5144_v33, %v4110_v25 }
 0x37e   : > { %v5150_v61 = vpop.eup %5149  ;;  %v4119_v63 = vsel %vm4116_vm13, %v4118_v53, %v4114_v19  ;;  %v4885_v52 = vmul.f32 -1.442695, %v7021_v60  ;;  %v4892_v55 = vmul.f32 -1.442695, %v7024_v10  ;;  %v4219_v13 = vsel %vm7040_vm2, %v7005_v38, %v4215_v6 }
 0x37f   : > { %v5152_v0 = vpop.eup %5151  ;;  %v4292_v4 = vmul.f32 %v4119_v63, %v6985_v8  ;;  %v7030_v21 = vadd.f32 1.0, %v5150_v61  ;;  %v4224_v48 = vsel %vm4221_vm3, %v4223_v17, %v4219_v13 }
 0x380   : > { %v4227_v5 = vmul.f32 %v5152_v0, %v7010_v46  ;;  %5153 = vpow2.f32 %v4885_v52  ;;  %vm4232_vm14 = vweird.f32 %v5152_v0  ;;  %v4299_v33 = vmul.f32 %v4224_v48, %v6988_v9 }
 0x381   : > { %v4986_v7 = vpack.c.bf16 %v4292_v4, %v4291_v3  ;;  %5155 = vrcp.f32 %v7030_v21  ;;  %vm4233_vm5 = vmor %vm4231_vm4, %vm4232_vm14  ;;  %v3862_v46 = vand.u32 2147483648, %v7030_v21  ;;  %vm3856_vm7 = vweird.f32 %v7030_v21 }
 0x382   : > { %v4228_v62 = vsub.f32 1.0, %v4227_v5  ;;  %5157 = vpow2.f32 %v4892_v55  ;;  %v3860_v9 = vand.u32 2147483647, %v7030_v21 }
 0x383   : > { %5022 = vst [vmem:[%s6810_s12 + $0x50] sm:$0xff] %v4986_v7   ;;  %v3615_v12 = vpop.f32.mrf.mxu1  ;;  %v3863_v25 = vor.u32 1.1754944e-38, %v3862_v46 }
 0x384   : > { %v4229_v14 = vmul.f32 %v5152_v0, %v4228_v62  ;;  %v7055_v16 = vadd.f32 %v7052_v15, %v3615_v12  ;;  %vm3861_vm9 = vcmp.eq.f32.partialorder %v3860_v9, 8.507059e+37 }
 0x386   : > { %v5154_v20 = vpop.eup %5153  ;;  %v4230_v23 = vadd.f32 %v5152_v0, %v4229_v14  ;;  %v4893_v26 = vmul.f32 -1.442695, %v7055_v16 }
 0x387   : > { %v5156_v24 = vpop.eup %5155  ;;  %v3764_v28 = vadd.f32 1.0, %v5154_v20 }
 0x388   : > { %v5158_v31 = vpop.eup %5157  ;;  %v4234_v29 = vsel %vm4233_vm5, %v5152_v0, %v4230_v23  ;;  %v3852_v32 = vmul.f32 %v5156_v24, %v7030_v21  ;;  %5159 = vpow2.f32 %v4893_v26  ;;  %vm3857_vm15 = vweird.f32 %v5156_v24 }
 0x389   : > { %v4239_v36 = vsel %vm4236_vm6, %v4238_v27, %v4234_v29  ;;  %5161 = vrcp.f32 %v3764_v28  ;;  %v3771_v40 = vadd.f32 1.0, %v5158_v31  ;;  %vm3858_vm8 = vmor %vm3856_vm7, %vm3857_vm15  ;;  %v3875_v45 = vand.u32 2147483647, %v3764_v28 }
 0x38a   : > { %v4300_v38 = vmul.f32 %v4239_v36, %v6996_v22  ;;  %v3853_v39 = vsub.f32 1.0, %v3852_v32  ;;  %v3877_v1 = vand.u32 2147483648, %v3764_v28  ;;  %vm3871_vm10 = vweird.f32 %v3764_v28 }
 0x38b   : > { %5163 = vrcp.f32 %v3771_v40  ;;  %vm3876_vm13 = vcmp.eq.f32.partialorder %v3875_v45, 8.507059e+37  ;;  %vm3976_vm12 = vweird.f32 %v3771_v40  ;;  %v3980_v0 = vand.u32 2147483647, %v3771_v40 }
 0x38c   : > { %v5006_v18 = vpack.c.bf16 %v4300_v38, %v4299_v33  ;;  %v3854_v2 = vmul.f32 %v5156_v24, %v3853_v39  ;;  %v3878_v59 = vor.u32 1.1754944e-38, %v3877_v1  ;;  %v3982_v3 = vand.u32 2147483648, %v3771_v40 }
 0x38d   : > { %vm3981_vm3 = vcmp.eq.f32.partialorder %v3980_v0, 8.507059e+37 }
 0x38e   : > { %v5160_v41 = vpop.eup %5159  ;;  %5026 = vst [vmem:[%s6810_s12 + $0x70] sm:$0xff] %v5006_v18   ;;  %v3855_v43 = vadd.f32 %v5156_v24, %v3854_v2  ;;  %v3983_v12 = vor.u32 1.1754944e-38, %v3982_v3 }
 0x38f   : > { %v5162_v30 = vpop.eup %5161  ;;  %v3772_v42 = vadd.f32 1.0, %v5160_v41 }
 0x390   : > { %v3867_v44 = vmul.f32 %v5162_v30, %v3764_v28  ;;  %v3859_v50 = vsel %vm3858_vm8, %v5156_v24, %v3855_v43  ;;  %vm3872_vm0 = vweird.f32 %v5162_v30 }
 0x391   : > { %5165 = vrcp.f32 %v3772_v42  ;;  %v5164_v47 = vpop.eup %5163  ;;  %v3864_v58 = vsel %vm3861_vm9, %v3863_v25, %v3859_v50  ;;  %vm3873_vm11 = vmor %vm3871_vm10, %vm3872_vm0  ;;  %v3995_v34 = vand.u32 2147483647, %v3772_v42  ;;  %v3997_v57 = vand.u32 2147483648, %v3772_v42 }
 0x392   : > { %v3868_v22 = vsub.f32 1.0, %v3867_v44  ;;  %v3972_v49 = vmul.f32 %v5164_v47, %v3771_v40  ;;  %vm3977_vm1 = vweird.f32 %v5164_v47  ;;  %v4275_v21 = vmul.f32 %v3864_v58, %v7003_v37 }
 0x393   : > { %vm3978_vm2 = vmor %vm3976_vm12, %vm3977_vm1  ;;  %vm3991_vm4 = vweird.f32 %v3772_v42  ;;  %vm3996_vm6 = vcmp.eq.f32.partialorder %v3995_v34, 8.507059e+37 }
 0x394   : > { %v3869_v51 = vmul.f32 %v5162_v30, %v3868_v22  ;;  %v3973_v53 = vsub.f32 1.0, %v3972_v49 }
 0x396   : > { %v3870_v54 = vadd.f32 %v5162_v30, %v3869_v51  ;;  %v3974_v19 = vmul.f32 %v5164_v47, %v3973_v53 }
 0x397   : > { %v5166_v56 = vpop.eup %5165 }
 0x398   : > { %v3874_v61 = vsel %vm3873_vm11, %v5162_v30, %v3870_v54  ;;  %v3987_v63 = vmul.f32 %v5166_v56, %v3772_v42  ;;  %v3975_v55 = vadd.f32 %v5164_v47, %v3974_v19  ;;  %vm3992_vm14 = vweird.f32 %v5166_v56 }
 0x399   : > { %v3879_v52 = vsel %vm3876_vm13, %v3878_v59, %v3874_v61  ;;  %v3638_v4 = vpop.f32.mrf.mxu2  ;;  %vm3993_vm5 = vmor %vm3991_vm4, %vm3992_vm14 }
 0x39a   : > { %v4276_v6 = vmul.f32 %v3879_v52, %v7021_v60  ;;  %v3988_v5 = vsub.f32 1.0, %v3987_v63  ;;  %v7069_v7 = vadd.f32 %v7052_v15, %v3638_v4  ;;  %v3979_v8 = vsel %vm3978_vm2, %v5164_v47, %v3975_v55 }
 0x39b   : > { %v3984_v37 = vsel %vm3981_vm3, %v3983_v12, %v3979_v8  ;;  %v3998_v60 = vor.u32 1.1754944e-38, %v3997_v57 }
 0x39c   : > { %v4946_v62 = vpack.c.bf16 %v4276_v6, %v4275_v21  ;;  %v3989_v11 = vmul.f32 %v5166_v56, %v3988_v5  ;;  %v4902_v35 = vmul.f32 -1.442695, %v7069_v7  ;;  %v4283_v26 = vmul.f32 %v3984_v37, %v7024_v10 }
 0x39e   : > { %5014 = vst [vmem:[%s6810_s12 + $0x10] sm:$0xff] %v4946_v62   ;;  %v3990_v13 = vadd.f32 %v5166_v56, %v3989_v11  ;;  %5167 = vpow2.f32 %v4902_v35 }
 0x3a0   : > { %v3994_v14 = vsel %vm3993_vm5, %v5166_v56, %v3990_v13 }
 0x3a1   : > { %v3999_v17 = vsel %vm3996_vm6, %v3998_v60, %v3994_v14  ;;  %v3640_v20 = vpop.f32.mrf.mxu2  ;;  %v3658_v23 = vpop.f32.mrf.mxu3 }
 0x3a2   : > { %v4284_v24 = vmul.f32 %v3999_v17, %v7055_v16  ;;  %v7076_v48 = vadd.f32 %v7052_v15, %v3640_v20  ;;  %v7079_v27 = vadd.f32 %v7052_v15, %v3658_v23 }
 0x3a4   : > { %v5168_v28 = vpop.eup %5167  ;;  %v4966_v31 = vpack.c.bf16 %v4284_v24, %v4283_v26  ;;  %v4903_v29 = vmul.f32 -1.442695, %v7076_v48  ;;  %v4910_v32 = vmul.f32 -1.442695, %v7079_v27 }
 0x3a5   : > { %v3781_v36 = vadd.f32 1.0, %v5168_v28 }
 0x3a6   : > { %5018 = vst [vmem:[%s6810_s12 + $0x30] sm:$0xff] %v4966_v31   ;;  %5169 = vpow2.f32 %v4903_v29 }
 0x3a7   : > { %5171 = vrcp.f32 %v3781_v36  ;;  %v4130_v9 = vand.u32 2147483647, %v3781_v36  ;;  %v4132_v22 = vand.u32 2147483648, %v3781_v36  ;;  %vm4126_vm7 = vweird.f32 %v3781_v36 }
 0x3a8   : > { %5173 = vpow2.f32 %v4910_v32 }
 0x3a9   : > { %v3660_v10 = vpop.f32.mrf.mxu3  ;;  %vm7102_vm0 = vcmp.eq.f32.partialorder %v4130_v9, 8.507059e+37  ;;  %v4133_v61 = vor.u32 1.1754944e-38, %v4132_v22 }
 0x3aa   : > { %v7085_v16 = vadd.f32 %v7052_v15, %v3660_v10 }
 0x3ac   : > { %v5170_v33 = vpop.eup %5169  ;;  %v4911_v38 = vmul.f32 -1.442695, %v7085_v16 }
 0x3ad   : > { %v5172_v39 = vpop.eup %5171  ;;  %v3782_v40 = vadd.f32 1.0, %v5170_v33 }
 0x3ae   : > { %v5174_v18 = vpop.eup %5173  ;;  %v4122_v2 = vmul.f32 %v5172_v39, %v3781_v36  ;;  %5175 = vpow2.f32 %v4911_v38  ;;  %vm4127_vm15 = vweird.f32 %v5172_v39 }
 0x3af   : > { %5177 = vrcp.f32 %v3782_v40  ;;  %v7088_v30 = vadd.f32 1.0, %v5174_v18  ;;  %v4145_v51 = vand.u32 2147483647, %v3782_v40  ;;  %v4147_v25 = vand.u32 2147483648, %v3782_v40  ;;  %vm7098_vm8 = vmor %vm4126_vm7, %vm4127_vm15 }
 0x3b0   : > { %v4123_v41 = vsub.f32 1.0, %v4122_v2  ;;  %vm4141_vm10 = vweird.f32 %v3782_v40 }
 0x3b1   : > { %5179 = vrcp.f32 %v7088_v30  ;;  %vm7109_vm11 = vcmp.eq.f32.partialorder %v4145_v51, 8.507059e+37  ;;  %v4148_v55 = vor.u32 1.1754944e-38, %v4147_v25  ;;  %vm4246_vm13 = vweird.f32 %v7088_v30 }
 0x3b2   : > { %v4124_v42 = vmul.f32 %v5172_v39, %v4123_v41  ;;  %v4250_v8 = vand.u32 2147483647, %v7088_v30  ;;  %v4252_v11 = vand.u32 2147483648, %v7088_v30 }
 0x3b3   : > { %v3598_v43 = vpop.f32.mrf.mxu0 }
 0x3b4   : > { %v5176_v44 = vpop.eup %5175  ;;  %v7092_v46 = vadd.f32 %v7052_v15, %v3598_v43  ;;  %v4125_v1 = vadd.f32 %v5172_v39, %v4124_v42  ;;  %vm4251_vm3 = vcmp.eq.f32.partialorder %v4250_v8, 8.507059e+37 }
 0x3b5   : > { %v5178_v47 = vpop.eup %5177  ;;  %v7094_v45 = vadd.f32 1.0, %v5176_v44 }
 0x3b6   : > { %v4137_v49 = vmul.f32 %v5178_v47, %v3782_v40  ;;  %v4886_v50 = vmul.f32 -1.442695, %v7092_v46  ;;  %v4129_v19 = vsel %vm7098_vm8, %v5172_v39, %v4125_v1  ;;  %vm4142_vm9 = vweird.f32 %v5178_v47 }
 0x3b7   : > { %5181 = vrcp.f32 %v7094_v45  ;;  %v5180_v53 = vpop.eup %5179  ;;  %v4134_v57 = vsel %vm7102_vm0, %v4133_v61, %v4129_v19  ;;  %vm4143_vm12 = vmor %vm4141_vm10, %vm4142_vm9  ;;  %v4265_v31 = vand.u32 2147483647, %v7094_v45  ;;  %v4267_v29 = vand.u32 2147483648, %v7094_v45 }
 0x3b8   : > { %v4138_v54 = vsub.f32 1.0, %v4137_v49  ;;  %5183 = vpow2.f32 %v4886_v50  ;;  %v4242_v59 = vmul.f32 %v5180_v53, %v7088_v30  ;;  %vm4247_vm1 = vweird.f32 %v5180_v53 }
 0x3b9   : > { %v4293_v23 = vmul.f32 %v4134_v57, %v7069_v7  ;;  %vm7135_vm2 = vmor %vm4246_vm13, %vm4247_vm1  ;;  %vm4261_vm4 = vweird.f32 %v7094_v45  ;;  %v4268_v40 = vor.u32 1.1754944e-38, %v4267_v29  ;;  %vm4266_vm6 = vcmp.eq.f32.partialorder %v4265_v31, 8.507059e+37 }
 0x3ba   : > { %v4139_v63 = vmul.f32 %v5178_v47, %v4138_v54  ;;  %v4243_v0 = vsub.f32 1.0, %v4242_v59 }
 0x3bb   : > { %v3600_v3 = vpop.f32.mrf.mxu0  ;;  %v3618_v4 = vpop.f32.mrf.mxu1 }
 0x3bc   : > { %v4140_v21 = vadd.f32 %v5178_v47, %v4139_v63  ;;  %v7115_v6 = vadd.f32 %v7052_v15, %v3600_v3  ;;  %v7118_v5 = vadd.f32 %v7052_v15, %v3618_v4  ;;  %v4244_v62 = vmul.f32 %v5180_v53, %v4243_v0 }
 0x3bd   : > { %v5182_v34 = vpop.eup %5181 }
 0x3be   : > { %v5184_v35 = vpop.eup %5183  ;;  %v4144_v12 = vsel %vm4143_vm12, %v5178_v47, %v4140_v21  ;;  %v4257_v13 = vmul.f32 %v5182_v34, %v7094_v45  ;;  %v4887_v37 = vmul.f32 -1.442695, %v7115_v6  ;;  %v4245_v14 = vadd.f32 %v5180_v53, %v4244_v62 }
 0x3bf   : > { %v4149_v60 = vsel %vm7109_vm11, %v4148_v55, %v4144_v12  ;;  %v7128_v17 = vadd.f32 1.0, %v5184_v35  ;;  %v4894_v20 = vmul.f32 -1.442695, %v7118_v5  ;;  %vm4262_vm14 = vweird.f32 %v5182_v34 }
 0x3c0   : > { %v4294_v26 = vmul.f32 %v4149_v60, %v7076_v48  ;;  %v4258_v24 = vsub.f32 1.0, %v4257_v13  ;;  %5185 = vpow2.f32 %v4887_v37  ;;  %v4249_v7 = vsel %vm7135_vm2, %v5180_v53, %v4245_v14  ;;  %vm4263_vm5 = vmor %vm4261_vm4, %vm4262_vm14 }
 0x3c1   : > { %5187 = vrcp.f32 %v7128_v17  ;;  %v4253_v48 = vor.u32 1.1754944e-38, %v4252_v11  ;;  %vm3886_vm7 = vweird.f32 %v7128_v17  ;;  %v3890_v56 = vand.u32 2147483647, %v7128_v17 }
 0x3c2   : > { %v4991_v32 = vpack.c.bf16 %v4294_v26, %v4293_v23  ;;  %v4259_v36 = vmul.f32 %v5182_v34, %v4258_v24  ;;  %5189 = vpow2.f32 %v4894_v20 }
 0x3c3   : > { %v3620_v10 = vpop.f32.mrf.mxu1  ;;  %v4254_v39 = vsel %vm4251_vm3, %v4253_v48, %v4249_v7  ;;  %vm3891_vm9 = vcmp.eq.f32.partialorder %v3890_v56, 8.507059e+37 }
 0x3c4   : > { %5023 = vst [vmem:[%s6810_s12 + $0x58] sm:$0xff] %v4991_v32   ;;  %v4260_v33 = vadd.f32 %v5182_v34, %v4259_v36  ;;  %v7147_v38 = vadd.f32 %v7052_v15, %v3620_v10  ;;  %v4301_v44 = vmul.f32 %v4254_v39, %v7079_v27  ;;  %v3892_v27 = vand.u32 2147483648, %v7128_v17 }
 0x3c6   : > { %v5186_v18 = vpop.eup %5185  ;;  %v4264_v2 = vsel %vm4263_vm5, %v5182_v34, %v4260_v33  ;;  %v4895_v41 = vmul.f32 -1.442695, %v7147_v38  ;;  %v3893_v55 = vor.u32 1.1754944e-38, %v3892_v27 }
 0x3c7   : > { %v5188_v30 = vpop.eup %5187  ;;  %v4269_v42 = vsel %vm4266_vm6, %v4268_v40, %v4264_v2  ;;  %v3766_v43 = vadd.f32 1.0, %v5186_v18 }
 0x3c8   : > { %v4302_v47 = vmul.f32 %v4269_v42, %v7085_v16  ;;  %v3882_v9 = vmul.f32 %v5188_v30, %v7128_v17  ;;  %5191 = vpow2.f32 %v4895_v41  ;;  %v5190_v15 = vpop.eup %5189  ;;  %vm3887_vm15 = vweird.f32 %v5188_v30 }
 0x3c9   : > { %5193 = vrcp.f32 %v3766_v43  ;;  %v3773_v1 = vadd.f32 1.0, %v5190_v15  ;;  %vm3888_vm8 = vmor %vm3886_vm7, %vm3887_vm15  ;;  %v3907_v59 = vand.u32 2147483648, %v3766_v43  ;;  %v3905_v52 = vand.u32 2147483647, %v3766_v43 }
 0x3ca   : > { %v5011_v22 = vpack.c.bf16 %v4302_v47, %v4301_v44  ;;  %v3883_v45 = vsub.f32 1.0, %v3882_v9  ;;  %vm3901_vm10 = vweird.f32 %v3766_v43 }
 0x3cb   : > { %5195 = vrcp.f32 %v3773_v1  ;;  %v3908_v34 = vor.u32 1.1754944e-38, %v3907_v59  ;;  %vm3906_vm13 = vcmp.eq.f32.partialorder %v3905_v52, 8.507059e+37  ;;  %vm4006_vm1 = vweird.f32 %v3773_v1 }
 0x3cc   : > { %5027 = vst [vmem:[%s6810_s12 + $0x78] sm:$0xff] %v5011_v22   ;;  %v3884_v49 = vmul.f32 %v5188_v30, %v3883_v45  ;;  %v4012_v12 = vand.u32 2147483648, %v3773_v1  ;;  %v4010_v60 = vand.u32 2147483647, %v3773_v1 }
 0x3ce   : > { %v5192_v50 = vpop.eup %5191  ;;  %v3885_v53 = vadd.f32 %v5188_v30, %v3884_v49  ;;  %v4013_v28 = vor.u32 1.1754944e-38, %v4012_v12  ;;  %vm4011_vm3 = vcmp.eq.f32.partialorder %v4010_v60, 8.507059e+37 }
 0x3cf   : > { %v5194_v51 = vpop.eup %5193  ;;  %v3774_v25 = vadd.f32 1.0, %v5192_v50 }
 0x3d0   : > { %v3897_v54 = vmul.f32 %v5194_v51, %v3766_v43  ;;  %v3889_v61 = vsel %vm3888_vm8, %v5188_v30, %v3885_v53  ;;  %vm3902_vm0 = vweird.f32 %v5194_v51 }
 0x3d1   : > { %5197 = vrcp.f32 %v3774_v25  ;;  %v5196_v16 = vpop.eup %5195  ;;  %v3894_v21 = vsel %vm3891_vm9, %v3893_v55, %v3889_v61  ;;  %vm3903_vm11 = vmor %vm3901_vm10, %vm3902_vm0  ;;  %v4025_v17 = vand.u32 2147483647, %v3774_v25  ;;  %v4027_v20 = vand.u32 2147483648, %v3774_v25 }
 0x3d2   : > { %v3898_v58 = vsub.f32 1.0, %v3897_v54  ;;  %v4002_v19 = vmul.f32 %v5196_v16, %v3773_v1  ;;  %vm4007_vm12 = vweird.f32 %v5196_v16  ;;  %v4277_v13 = vmul.f32 %v3894_v21, %v7092_v46 }
 0x3d3   : > { %vm4008_vm2 = vmor %vm4006_vm1, %vm4007_vm12  ;;  %vm4021_vm4 = vweird.f32 %v3774_v25  ;;  %v4028_v46 = vor.u32 1.1754944e-38, %v4027_v20  ;;  %vm4026_vm6 = vcmp.eq.f32.partialorder %v4025_v17, 8.507059e+37 }
 0x3d4   : > { %v3899_v63 = vmul.f32 %v5194_v51, %v3898_v58  ;;  %v4003_v0 = vsub.f32 1.0, %v4002_v19 }
 0x3d6   : > { %v3900_v3 = vadd.f32 %v5194_v51, %v3899_v63  ;;  %v4004_v57 = vmul.f32 %v5196_v16, %v4003_v0 }
 0x3d7   : > { %v5198_v4 = vpop.eup %5197 }
 0x3d8   : > { %v3904_v62 = vsel %vm3903_vm11, %v5194_v51, %v3900_v3  ;;  %v4017_v8 = vmul.f32 %v5198_v4, %v3774_v25  ;;  %v4005_v35 = vadd.f32 %v5196_v16, %v4004_v57  ;;  %vm4022_vm14 = vweird.f32 %v5198_v4 }
 0x3d9   : > { %v3909_v11 = vsel %vm3906_vm13, %v3908_v34, %v3904_v62  ;;  %vm4023_vm5 = vmor %vm4021_vm4, %vm4022_vm14 }
 0x3da   : > { %v4278_v37 = vmul.f32 %v3909_v11, %v7115_v6  ;;  %v4018_v14 = vsub.f32 1.0, %v4017_v8  ;;  %v4009_v26 = vsel %vm4008_vm2, %v5196_v16, %v4005_v35 }
 0x3db   : > { %v4014_v29 = vsel %vm4011_vm3, %v4013_v28, %v4009_v26 }
 0x3dc   : > { %v4951_v23 = vpack.c.bf16 %v4278_v37, %v4277_v13  ;;  %v4019_v24 = vmul.f32 %v5198_v4, %v4018_v14  ;;  %v4285_v7 = vmul.f32 %v4014_v29, %v7118_v5 }
 0x3de   : > { %5015 = vst [vmem:[%s6810_s12 + $0x18] sm:$0xff] %v4951_v23   ;;  %v4020_v31 = vadd.f32 %v5198_v4, %v4019_v24 }
 0x3e0   : > { %v4024_v32 = vsel %vm4023_vm5, %v5198_v4, %v4020_v31 }
 0x3e1   : > { %v4029_v6 = vsel %vm4026_vm6, %v4028_v46, %v4024_v32 }
 0x3e2   : > { %v4286_v36 = vmul.f32 %v4029_v6, %v7147_v38 }
 0x3e4   : > { %v4971_v48 = vpack.c.bf16 %v4286_v36, %v4285_v7 }
 0x3e6   : > { %5019 = vst [vmem:[%s6810_s12 + $0x38] sm:$0xff] %v4971_v48  }
 0x3e7 PF: > { %s13_s14 = sadd.s32 1, %s5222_s14   ;;  %s7210_s12 = smov %s5218_s13 }
 0x3e8   : > { %p10_p5 = scmp.ge.s32.totalorder %s13_s14, 4   ;;  %s7211_s13 = smov %s7213_s15 }
 0x3ea   :  { %12 = sbr.rel (!%p10_p5) target bundleno = 2 (0x2), region = 71 }

</bundles_post_ra>
